<compile_context>
chip_gen: v5e
topology: v5e:2x2
jax: 0.10.0
libtpu: 0.0.40
codegen_flags: <defaults>
</compile_context>

<pallas_src>
import numpy as np
import jax
import jax.numpy as jnp
from jax.experimental import pallas as pl
from jax.experimental.pallas import tpu as pltpu


def _band_matrices(H, W, r):
    """Constant separable band matrices (built deterministically in numpy).

    Replicate-pad box filter:
        hsum = img @ Mh        (sum over dx in [-r, r], edge-clamped columns)
        box  = (Mv @ hsum) / K^2
    Zero-pad side-window partial sums:
        Hl/Hr/Hf : column (W,W) matrices for dx in [-r,0] / [0,r] / [-r,r]
        Vu/Vd/Vf : row    (H,H) matrices for dy in [-r,0] / [0,r] / [-r,r]
    """
    Mh = np.zeros((W, W), np.float32)
    for j in range(W):
        for dx in range(-r, r + 1):
            Mh[min(max(j + dx, 0), W - 1), j] += 1.0
    Mv = np.zeros((H, H), np.float32)
    for i in range(H):
        for dy in range(-r, r + 1):
            Mv[i, min(max(i + dy, 0), H - 1)] += 1.0

    def h_mat(lo, hi):
        M = np.zeros((W, W), np.float32)
        for j in range(W):
            for dx in range(lo, hi + 1):
                jj = j + dx
                if 0 <= jj < W:
                    M[jj, j] += 1.0
        return M

    def v_mat(lo, hi):
        M = np.zeros((H, H), np.float32)
        for i in range(H):
            for dy in range(lo, hi + 1):
                ii = i + dy
                if 0 <= ii < H:
                    M[i, ii] += 1.0
        return M

    Hl, Hr, Hf = h_mat(-r, 0), h_mat(0, r), h_mat(-r, r)
    Vu, Vd, Vf = v_mat(-r, 0), v_mat(0, r), v_mat(-r, r)
    return Mh, Mv, Hl, Hr, Hf, Vu, Vd, Vf


def _make_kernel(C, H, W, r, eps):
    K = 2 * r + 1
    inv_k2 = 1.0 / float(K * K)
    inv_side = 1.0 / float((r + 1) * (2 * r + 1))
    inv_corner = 1.0 / float((r + 1) * (r + 1))

    def kernel(lrx_ref, lry_ref, mh_ref, mv_ref, hl_ref, hr_ref, hf_ref,
               vu_ref, vd_ref, vf_ref, out_ref):
        f32 = jnp.float32
        mh = mh_ref[...]
        mv = mv_ref[...]
        hl = hl_ref[...]
        hr = hr_ref[...]
        hf = hf_ref[...]
        vu = vu_ref[...]
        vd = vd_ref[...]
        vf = vf_ref[...]

        def mm(a, b):  # MXU matmul, f32 accumulate
            return jnp.dot(a, b, preferred_element_type=jnp.float32)

        for c in range(C):  # unrolled at trace time (C == 3)
            x = lrx_ref[0, c].astype(f32)   # (H, W) current channel of lr_x
            y = lry_ref[0, c].astype(f32)   # (H, W) current channel of lr_y

            # --- boxfilter = ReplicationPad2d(r) + 1/K^2 depthwise conv,
            #     as separable banded matmuls (MXU) -------------------------
            def box(img):
                return mm(mv, mm(img, mh)) * inv_k2

            mean_x = box(x)
            mean_y = box(y)
            mean_xy = box(x * y)
            mean_xx = box(x * x)
            cov_xy = mean_xy - mean_x * mean_y
            var_x = mean_xx - mean_x * mean_x
            A = cov_xy / (var_x + eps)          # exact divide (bit-parity)
            b = mean_y - A * mean_x

            # --- 8 side-window zero-padded convolutions, separable:
            #     3 horizontal partial sums, then short vertical sums --------
            A_hl, A_hr, A_hf = mm(A, hl), mm(A, hr), mm(A, hf)
            b_hl, b_hr, b_hf = mm(b, hl), mm(b, hr), mm(b, hf)

            # fixed order L, R, U, D, NW, NE, SW, SE  (torch.argmin first-min)
            combos = (
                (vf, A_hl, b_hl, inv_side),    # L
                (vf, A_hr, b_hr, inv_side),    # R
                (vu, A_hf, b_hf, inv_side),    # U
                (vd, A_hf, b_hf, inv_side),    # D
                (vu, A_hl, b_hl, inv_corner),  # NW
                (vu, A_hr, b_hr, inv_corner),  # NE
                (vd, A_hl, b_hl, inv_corner),  # SW
                (vd, A_hr, b_hr, inv_corner),  # SE
            )
            best_d = None
            best_abs = None
            for vmat, ah, bh, scale in combos:
                # conv(A)*x + conv(b) - x, with the per-filter scalar hoisted
                d = (mm(vmat, ah) * x + mm(vmat, bh)) * scale - x
                da = jnp.abs(d)
                if best_d is None:
                    best_d, best_abs = d, da
                else:
                    take = da < best_abs      # strict < keeps first minimum
                    best_d = jnp.where(take, d, best_d)
                    best_abs = jnp.where(take, da, best_abs)

            res = best_d + x
            # torch: res.int() (trunc toward 0) -> clamp(0,255) -> float().
            # clip-then-floor in float is identical for finite values and
            # robust to NaN/Inf / out-of-int32 values.
            res = jnp.floor(jnp.clip(res, 0.0, 255.0))
            out_ref[0, c] = res

    return kernel


def _cost_estimate(C, H, W):
    # matmul MACs per channel: box = 4*(H*W*W + H*H*W); side = 6*H*W*W + 16*H*H*W
    macs = C * (4 * (H * W * W + H * H * W) + 6 * H * W * W + 16 * H * H * W)
    flops = 2 * macs + C * 60 * H * W          # + elementwise work
    bytes_accessed = 4 * (3 * C * H * W + 4 * W * W + 4 * H * H)
    return pl.CostEstimate(flops=flops, transcendentals=0,
                           bytes_accessed=bytes_accessed)


def s_fast_guided_filter(lr_x, lr_y, hr_x, radius=1, eps=1e-4, magnification=8):
    """Forward pass of sFastGuidedFilter. Returns float32 [1, 3, H, W]."""
    del magnification  # unused by the reference compute path
    n, c, h, w = lr_x.shape
    n2, c2, h2, w2 = lr_y.shape
    n3, c3, h3, w3 = hr_x.shape
    assert n == n2 and n2 == n3
    assert c == c3 and (c == 1 or c == c2)
    assert h == h2 and w == w2
    assert h > 2 * radius + 1 and w > 2 * radius + 1
    # The reference forward's per-channel .view(1,1,h,w) only works for batch=1, 3 ch.
    assert n == 1 and c == 3

    mats = _band_matrices(h, w, radius)
    mats = tuple(jnp.asarray(m) for m in mats)
    kernel = _make_kernel(c, h, w, radius, float(eps))

    full_img_spec = pl.BlockSpec((1, c, h, w), lambda i: (0, 0, 0, 0))
    col_spec = pl.BlockSpec((w, w), lambda i: (0, 0))
    row_spec = pl.BlockSpec((h, h), lambda i: (0, 0))

    out = pl.pallas_call(
        kernel,
        out_shape=jax.ShapeDtypeStruct((1, c, h, w), jnp.float32),
        grid=(1,),  # single invocation: all channels, no extra grid/DMA overhead
        in_specs=[
            full_img_spec, full_img_spec,          # lr_x, lr_y
            col_spec, row_spec,                    # Mh, Mv   (box, replicate pad)
            col_spec, col_spec, col_spec,          # Hl, Hr, Hf
            row_spec, row_spec, row_spec,          # Vu, Vd, Vf
        ],
        out_specs=full_img_spec,
        cost_estimate=_cost_estimate(c, h, w),
        compiler_params=pltpu.CompilerParams(
            dimension_semantics=("arbitrary",)),
    )(lr_x, lr_y, *mats)
    return out


if __name__ == "__main__":
    key = jax.random.PRNGKey(0)
    k1, k2, k3 = jax.random.split(key, 3)
    # Small shapes consistent with the module: batch=1, 3 channels, 16x16 low-res,
    # 32x32 "high-res" guide (hr_x only participates in shape asserts).
    lr_x = jax.random.uniform(k1, (1, 3, 16, 16), jnp.float32, 0.0, 255.0)
    lr_y = jax.random.uniform(k2, (1, 3, 16, 16), jnp.float32, 0.0, 255.0)
    hr_x = jax.random.uniform(k3, (1, 3, 32, 32), jnp.float32, 0.0, 255.0)

    res = s_fast_guided_filter(lr_x, lr_y, hr_x, radius=1, eps=1e-4, magnification=8)
    jax.block_until_ready(res)
    assert res.shape == (1, 3, 16, 16) and res.dtype == jnp.float32
    print("KERNEL_OK")
</pallas_src>

<mosaic_0001>
module attributes {stable_mosaic.version = 11 : i64} {
  func.func @kernel(%arg0: i32, %arg1: memref<1x3x16x16xf32, #tpu.memory_space<vmem>>, %arg2: memref<1x3x16x16xf32, #tpu.memory_space<vmem>>, %arg3: memref<16x16xf32, #tpu.memory_space<vmem>>, %arg4: memref<16x16xf32, #tpu.memory_space<vmem>>, %arg5: memref<16x16xf32, #tpu.memory_space<vmem>>, %arg6: memref<16x16xf32, #tpu.memory_space<vmem>>, %arg7: memref<16x16xf32, #tpu.memory_space<vmem>>, %arg8: memref<16x16xf32, #tpu.memory_space<vmem>>, %arg9: memref<16x16xf32, #tpu.memory_space<vmem>>, %arg10: memref<16x16xf32, #tpu.memory_space<vmem>>, %arg11: memref<1x3x16x16xf32, #tpu.memory_space<vmem>>) attributes {dimension_semantics = [#tpu.dimension_semantics<arbitrary>], iteration_bounds = array<i64: 1>, scalar_prefetch = 0 : i64, scratch_operands = 0 : i64, tpu.core_type = #tpu.core_type<tc>, window_params = [{pipeline_mode = #tpu.pipeline_mode<synchronous>, transform_indices = @transform_0, window_bounds = array<i64: 1, 3, 16, 16>}, {pipeline_mode = #tpu.pipeline_mode<synchronous>, transform_indices = @transform_1, window_bounds = array<i64: 1, 3, 16, 16>}, {pipeline_mode = #tpu.pipeline_mode<synchronous>, transform_indices = @transform_2, window_bounds = array<i64: 16, 16>}, {pipeline_mode = #tpu.pipeline_mode<synchronous>, transform_indices = @transform_3, window_bounds = array<i64: 16, 16>}, {pipeline_mode = #tpu.pipeline_mode<synchronous>, transform_indices = @transform_4, window_bounds = array<i64: 16, 16>}, {pipeline_mode = #tpu.pipeline_mode<synchronous>, transform_indices = @transform_5, window_bounds = array<i64: 16, 16>}, {pipeline_mode = #tpu.pipeline_mode<synchronous>, transform_indices = @transform_6, window_bounds = array<i64: 16, 16>}, {pipeline_mode = #tpu.pipeline_mode<synchronous>, transform_indices = @transform_7, window_bounds = array<i64: 16, 16>}, {pipeline_mode = #tpu.pipeline_mode<synchronous>, transform_indices = @transform_8, window_bounds = array<i64: 16, 16>}, {pipeline_mode = #tpu.pipeline_mode<synchronous>, transform_indices = @transform_9, window_bounds = array<i64: 16, 16>}, {pipeline_mode = #tpu.pipeline_mode<synchronous>, transform_indices = @transform_10, window_bounds = array<i64: 1, 3, 16, 16>}]} {
    %c0 = arith.constant 0 : index
    %c0_0 = arith.constant 0 : index
    %0 = vector.load %arg3[%c0, %c0_0] : memref<16x16xf32, #tpu.memory_space<vmem>>, vector<16x16xf32>
    %c0_1 = arith.constant 0 : index
    %c0_2 = arith.constant 0 : index
    %1 = vector.load %arg4[%c0_1, %c0_2] : memref<16x16xf32, #tpu.memory_space<vmem>>, vector<16x16xf32>
    %c0_3 = arith.constant 0 : index
    %c0_4 = arith.constant 0 : index
    %2 = vector.load %arg5[%c0_3, %c0_4] : memref<16x16xf32, #tpu.memory_space<vmem>>, vector<16x16xf32>
    %c0_5 = arith.constant 0 : index
    %c0_6 = arith.constant 0 : index
    %3 = vector.load %arg6[%c0_5, %c0_6] : memref<16x16xf32, #tpu.memory_space<vmem>>, vector<16x16xf32>
    %c0_7 = arith.constant 0 : index
    %c0_8 = arith.constant 0 : index
    %4 = vector.load %arg7[%c0_7, %c0_8] : memref<16x16xf32, #tpu.memory_space<vmem>>, vector<16x16xf32>
    %c0_9 = arith.constant 0 : index
    %c0_10 = arith.constant 0 : index
    %5 = vector.load %arg8[%c0_9, %c0_10] : memref<16x16xf32, #tpu.memory_space<vmem>>, vector<16x16xf32>
    %c0_11 = arith.constant 0 : index
    %c0_12 = arith.constant 0 : index
    %6 = vector.load %arg9[%c0_11, %c0_12] : memref<16x16xf32, #tpu.memory_space<vmem>>, vector<16x16xf32>
    %c0_13 = arith.constant 0 : index
    %c0_14 = arith.constant 0 : index
    %7 = vector.load %arg10[%c0_13, %c0_14] : memref<16x16xf32, #tpu.memory_space<vmem>>, vector<16x16xf32>
    %c0_15 = arith.constant 0 : index
    %c0_16 = arith.constant 0 : index
    %c0_17 = arith.constant 0 : index
    %c0_18 = arith.constant 0 : index
    %8 = vector.load %arg1[%c0_15, %c0_16, %c0_17, %c0_18] : memref<1x3x16x16xf32, #tpu.memory_space<vmem>>, vector<1x1x16x16xf32>
    %9 = vector.shape_cast %8 : vector<1x1x16x16xf32> to vector<16x16xf32>
    %c0_19 = arith.constant 0 : index
    %c0_20 = arith.constant 0 : index
    %c0_21 = arith.constant 0 : index
    %c0_22 = arith.constant 0 : index
    %10 = vector.load %arg2[%c0_19, %c0_20, %c0_21, %c0_22] : memref<1x3x16x16xf32, #tpu.memory_space<vmem>>, vector<1x1x16x16xf32>
    %11 = vector.shape_cast %10 : vector<1x1x16x16xf32> to vector<16x16xf32>
    %cst = arith.constant dense<0.000000e+00> : vector<16x16xf32>
    %12 = tpu.matmul %9, %0, %cst {dimension_numbers = #tpu.dot_dimension_numbers<[1], [0], [0], [1], [0, 0, 1, 1], [], []>} : vector<16x16xf32>, vector<16x16xf32>, vector<16x16xf32> -> vector<16x16xf32>
    %cst_23 = arith.constant dense<0.000000e+00> : vector<16x16xf32>
    %13 = tpu.matmul %1, %12, %cst_23 {dimension_numbers = #tpu.dot_dimension_numbers<[1], [0], [0], [1], [0, 0, 1, 1], [], []>} : vector<16x16xf32>, vector<16x16xf32>, vector<16x16xf32> -> vector<16x16xf32>
    %cst_24 = arith.constant 0.111111112 : f32
    %14 = vector.broadcast %cst_24 : f32 to vector<16x16xf32>
    %15 = arith.mulf %13, %14 : vector<16x16xf32>
    %cst_25 = arith.constant dense<0.000000e+00> : vector<16x16xf32>
    %16 = tpu.matmul %11, %0, %cst_25 {dimension_numbers = #tpu.dot_dimension_numbers<[1], [0], [0], [1], [0, 0, 1, 1], [], []>} : vector<16x16xf32>, vector<16x16xf32>, vector<16x16xf32> -> vector<16x16xf32>
    %cst_26 = arith.constant dense<0.000000e+00> : vector<16x16xf32>
    %17 = tpu.matmul %1, %16, %cst_26 {dimension_numbers = #tpu.dot_dimension_numbers<[1], [0], [0], [1], [0, 0, 1, 1], [], []>} : vector<16x16xf32>, vector<16x16xf32>, vector<16x16xf32> -> vector<16x16xf32>
    %cst_27 = arith.constant 0.111111112 : f32
    %18 = vector.broadcast %cst_27 : f32 to vector<16x16xf32>
    %19 = arith.mulf %17, %18 : vector<16x16xf32>
    %20 = arith.mulf %9, %11 : vector<16x16xf32>
    %cst_28 = arith.constant dense<0.000000e+00> : vector<16x16xf32>
    %21 = tpu.matmul %20, %0, %cst_28 {dimension_numbers = #tpu.dot_dimension_numbers<[1], [0], [0], [1], [0, 0, 1, 1], [], []>} : vector<16x16xf32>, vector<16x16xf32>, vector<16x16xf32> -> vector<16x16xf32>
    %cst_29 = arith.constant dense<0.000000e+00> : vector<16x16xf32>
    %22 = tpu.matmul %1, %21, %cst_29 {dimension_numbers = #tpu.dot_dimension_numbers<[1], [0], [0], [1], [0, 0, 1, 1], [], []>} : vector<16x16xf32>, vector<16x16xf32>, vector<16x16xf32> -> vector<16x16xf32>
    %cst_30 = arith.constant 0.111111112 : f32
    %23 = vector.broadcast %cst_30 : f32 to vector<16x16xf32>
    %24 = arith.mulf %22, %23 : vector<16x16xf32>
    %25 = arith.mulf %9, %9 : vector<16x16xf32>
    %cst_31 = arith.constant dense<0.000000e+00> : vector<16x16xf32>
    %26 = tpu.matmul %25, %0, %cst_31 {dimension_numbers = #tpu.dot_dimension_numbers<[1], [0], [0], [1], [0, 0, 1, 1], [], []>} : vector<16x16xf32>, vector<16x16xf32>, vector<16x16xf32> -> vector<16x16xf32>
    %cst_32 = arith.constant dense<0.000000e+00> : vector<16x16xf32>
    %27 = tpu.matmul %1, %26, %cst_32 {dimension_numbers = #tpu.dot_dimension_numbers<[1], [0], [0], [1], [0, 0, 1, 1], [], []>} : vector<16x16xf32>, vector<16x16xf32>, vector<16x16xf32> -> vector<16x16xf32>
    %cst_33 = arith.constant 0.111111112 : f32
    %28 = vector.broadcast %cst_33 : f32 to vector<16x16xf32>
    %29 = arith.mulf %27, %28 : vector<16x16xf32>
    %30 = arith.mulf %15, %19 : vector<16x16xf32>
    %31 = arith.subf %24, %30 : vector<16x16xf32>
    %32 = arith.mulf %15, %15 : vector<16x16xf32>
    %33 = arith.subf %29, %32 : vector<16x16xf32>
    %cst_34 = arith.constant 9.99999974E-5 : f32
    %34 = vector.broadcast %cst_34 : f32 to vector<16x16xf32>
    %35 = arith.addf %33, %34 : vector<16x16xf32>
    %36 = arith.divf %31, %35 : vector<16x16xf32>
    %37 = arith.mulf %36, %15 : vector<16x16xf32>
    %38 = arith.subf %19, %37 : vector<16x16xf32>
    %cst_35 = arith.constant dense<0.000000e+00> : vector<16x16xf32>
    %39 = tpu.matmul %36, %2, %cst_35 {dimension_numbers = #tpu.dot_dimension_numbers<[1], [0], [0], [1], [0, 0, 1, 1], [], []>} : vector<16x16xf32>, vector<16x16xf32>, vector<16x16xf32> -> vector<16x16xf32>
    %cst_36 = arith.constant dense<0.000000e+00> : vector<16x16xf32>
    %40 = tpu.matmul %36, %3, %cst_36 {dimension_numbers = #tpu.dot_dimension_numbers<[1], [0], [0], [1], [0, 0, 1, 1], [], []>} : vector<16x16xf32>, vector<16x16xf32>, vector<16x16xf32> -> vector<16x16xf32>
    %cst_37 = arith.constant dense<0.000000e+00> : vector<16x16xf32>
    %41 = tpu.matmul %36, %4, %cst_37 {dimension_numbers = #tpu.dot_dimension_numbers<[1], [0], [0], [1], [0, 0, 1, 1], [], []>} : vector<16x16xf32>, vector<16x16xf32>, vector<16x16xf32> -> vector<16x16xf32>
    %cst_38 = arith.constant dense<0.000000e+00> : vector<16x16xf32>
    %42 = tpu.matmul %38, %2, %cst_38 {dimension_numbers = #tpu.dot_dimension_numbers<[1], [0], [0], [1], [0, 0, 1, 1], [], []>} : vector<16x16xf32>, vector<16x16xf32>, vector<16x16xf32> -> vector<16x16xf32>
    %cst_39 = arith.constant dense<0.000000e+00> : vector<16x16xf32>
    %43 = tpu.matmul %38, %3, %cst_39 {dimension_numbers = #tpu.dot_dimension_numbers<[1], [0], [0], [1], [0, 0, 1, 1], [], []>} : vector<16x16xf32>, vector<16x16xf32>, vector<16x16xf32> -> vector<16x16xf32>
    %cst_40 = arith.constant dense<0.000000e+00> : vector<16x16xf32>
    %44 = tpu.matmul %38, %4, %cst_40 {dimension_numbers = #tpu.dot_dimension_numbers<[1], [0], [0], [1], [0, 0, 1, 1], [], []>} : vector<16x16xf32>, vector<16x16xf32>, vector<16x16xf32> -> vector<16x16xf32>
    %cst_41 = arith.constant dense<0.000000e+00> : vector<16x16xf32>
    %45 = tpu.matmul %7, %39, %cst_41 {dimension_numbers = #tpu.dot_dimension_numbers<[1], [0], [0], [1], [0, 0, 1, 1], [], []>} : vector<16x16xf32>, vector<16x16xf32>, vector<16x16xf32> -> vector<16x16xf32>
    %46 = arith.mulf %45, %9 : vector<16x16xf32>
    %cst_42 = arith.constant dense<0.000000e+00> : vector<16x16xf32>
    %47 = tpu.matmul %7, %42, %cst_42 {dimension_numbers = #tpu.dot_dimension_numbers<[1], [0], [0], [1], [0, 0, 1, 1], [], []>} : vector<16x16xf32>, vector<16x16xf32>, vector<16x16xf32> -> vector<16x16xf32>
    %48 = arith.addf %46, %47 : vector<16x16xf32>
    %cst_43 = arith.constant 0.166666672 : f32
    %49 = vector.broadcast %cst_43 : f32 to vector<16x16xf32>
    %50 = arith.mulf %48, %49 : vector<16x16xf32>
    %51 = arith.subf %50, %9 : vector<16x16xf32>
    %52 = math.absf %51 : vector<16x16xf32>
    %cst_44 = arith.constant dense<0.000000e+00> : vector<16x16xf32>
    %53 = tpu.matmul %7, %40, %cst_44 {dimension_numbers = #tpu.dot_dimension_numbers<[1], [0], [0], [1], [0, 0, 1, 1], [], []>} : vector<16x16xf32>, vector<16x16xf32>, vector<16x16xf32> -> vector<16x16xf32>
    %54 = arith.mulf %53, %9 : vector<16x16xf32>
    %cst_45 = arith.constant dense<0.000000e+00> : vector<16x16xf32>
    %55 = tpu.matmul %7, %43, %cst_45 {dimension_numbers = #tpu.dot_dimension_numbers<[1], [0], [0], [1], [0, 0, 1, 1], [], []>} : vector<16x16xf32>, vector<16x16xf32>, vector<16x16xf32> -> vector<16x16xf32>
    %56 = arith.addf %54, %55 : vector<16x16xf32>
    %cst_46 = arith.constant 0.166666672 : f32
    %57 = vector.broadcast %cst_46 : f32 to vector<16x16xf32>
    %58 = arith.mulf %56, %57 : vector<16x16xf32>
    %59 = arith.subf %58, %9 : vector<16x16xf32>
    %60 = math.absf %59 : vector<16x16xf32>
    %61 = arith.cmpf olt, %60, %52 : vector<16x16xf32>
    %62 = arith.select %61, %59, %51 : vector<16x16xi1>, vector<16x16xf32>
    %63 = arith.select %61, %60, %52 : vector<16x16xi1>, vector<16x16xf32>
    %cst_47 = arith.constant dense<0.000000e+00> : vector<16x16xf32>
    %64 = tpu.matmul %5, %41, %cst_47 {dimension_numbers = #tpu.dot_dimension_numbers<[1], [0], [0], [1], [0, 0, 1, 1], [], []>} : vector<16x16xf32>, vector<16x16xf32>, vector<16x16xf32> -> vector<16x16xf32>
    %65 = arith.mulf %64, %9 : vector<16x16xf32>
    %cst_48 = arith.constant dense<0.000000e+00> : vector<16x16xf32>
    %66 = tpu.matmul %5, %44, %cst_48 {dimension_numbers = #tpu.dot_dimension_numbers<[1], [0], [0], [1], [0, 0, 1, 1], [], []>} : vector<16x16xf32>, vector<16x16xf32>, vector<16x16xf32> -> vector<16x16xf32>
    %67 = arith.addf %65, %66 : vector<16x16xf32>
    %cst_49 = arith.constant 0.166666672 : f32
    %68 = vector.broadcast %cst_49 : f32 to vector<16x16xf32>
    %69 = arith.mulf %67, %68 : vector<16x16xf32>
    %70 = arith.subf %69, %9 : vector<16x16xf32>
    %71 = math.absf %70 : vector<16x16xf32>
    %72 = arith.cmpf olt, %71, %63 : vector<16x16xf32>
    %73 = arith.select %72, %70, %62 : vector<16x16xi1>, vector<16x16xf32>
    %74 = arith.select %72, %71, %63 : vector<16x16xi1>, vector<16x16xf32>
    %cst_50 = arith.constant dense<0.000000e+00> : vector<16x16xf32>
    %75 = tpu.matmul %6, %41, %cst_50 {dimension_numbers = #tpu.dot_dimension_numbers<[1], [0], [0], [1], [0, 0, 1, 1], [], []>} : vector<16x16xf32>, vector<16x16xf32>, vector<16x16xf32> -> vector<16x16xf32>
    %76 = arith.mulf %75, %9 : vector<16x16xf32>
    %cst_51 = arith.constant dense<0.000000e+00> : vector<16x16xf32>
    %77 = tpu.matmul %6, %44, %cst_51 {dimension_numbers = #tpu.dot_dimension_numbers<[1], [0], [0], [1], [0, 0, 1, 1], [], []>} : vector<16x16xf32>, vector<16x16xf32>, vector<16x16xf32> -> vector<16x16xf32>
    %78 = arith.addf %76, %77 : vector<16x16xf32>
    %cst_52 = arith.constant 0.166666672 : f32
    %79 = vector.broadcast %cst_52 : f32 to vector<16x16xf32>
    %80 = arith.mulf %78, %79 : vector<16x16xf32>
    %81 = arith.subf %80, %9 : vector<16x16xf32>
    %82 = math.absf %81 : vector<16x16xf32>
    %83 = arith.cmpf olt, %82, %74 : vector<16x16xf32>
    %84 = arith.select %83, %81, %73 : vector<16x16xi1>, vector<16x16xf32>
    %85 = arith.select %83, %82, %74 : vector<16x16xi1>, vector<16x16xf32>
    %cst_53 = arith.constant dense<0.000000e+00> : vector<16x16xf32>
    %86 = tpu.matmul %5, %39, %cst_53 {dimension_numbers = #tpu.dot_dimension_numbers<[1], [0], [0], [1], [0, 0, 1, 1], [], []>} : vector<16x16xf32>, vector<16x16xf32>, vector<16x16xf32> -> vector<16x16xf32>
    %87 = arith.mulf %86, %9 : vector<16x16xf32>
    %cst_54 = arith.constant dense<0.000000e+00> : vector<16x16xf32>
    %88 = tpu.matmul %5, %42, %cst_54 {dimension_numbers = #tpu.dot_dimension_numbers<[1], [0], [0], [1], [0, 0, 1, 1], [], []>} : vector<16x16xf32>, vector<16x16xf32>, vector<16x16xf32> -> vector<16x16xf32>
    %89 = arith.addf %87, %88 : vector<16x16xf32>
    %cst_55 = arith.constant 2.500000e-01 : f32
    %90 = vector.broadcast %cst_55 : f32 to vector<16x16xf32>
    %91 = arith.mulf %89, %90 : vector<16x16xf32>
    %92 = arith.subf %91, %9 : vector<16x16xf32>
    %93 = math.absf %92 : vector<16x16xf32>
    %94 = arith.cmpf olt, %93, %85 : vector<16x16xf32>
    %95 = arith.select %94, %92, %84 : vector<16x16xi1>, vector<16x16xf32>
    %96 = arith.select %94, %93, %85 : vector<16x16xi1>, vector<16x16xf32>
    %cst_56 = arith.constant dense<0.000000e+00> : vector<16x16xf32>
    %97 = tpu.matmul %5, %40, %cst_56 {dimension_numbers = #tpu.dot_dimension_numbers<[1], [0], [0], [1], [0, 0, 1, 1], [], []>} : vector<16x16xf32>, vector<16x16xf32>, vector<16x16xf32> -> vector<16x16xf32>
    %98 = arith.mulf %97, %9 : vector<16x16xf32>
    %cst_57 = arith.constant dense<0.000000e+00> : vector<16x16xf32>
    %99 = tpu.matmul %5, %43, %cst_57 {dimension_numbers = #tpu.dot_dimension_numbers<[1], [0], [0], [1], [0, 0, 1, 1], [], []>} : vector<16x16xf32>, vector<16x16xf32>, vector<16x16xf32> -> vector<16x16xf32>
    %100 = arith.addf %98, %99 : vector<16x16xf32>
    %cst_58 = arith.constant 2.500000e-01 : f32
    %101 = vector.broadcast %cst_58 : f32 to vector<16x16xf32>
    %102 = arith.mulf %100, %101 : vector<16x16xf32>
    %103 = arith.subf %102, %9 : vector<16x16xf32>
    %104 = math.absf %103 : vector<16x16xf32>
    %105 = arith.cmpf olt, %104, %96 : vector<16x16xf32>
    %106 = arith.select %105, %103, %95 : vector<16x16xi1>, vector<16x16xf32>
    %107 = arith.select %105, %104, %96 : vector<16x16xi1>, vector<16x16xf32>
    %cst_59 = arith.constant dense<0.000000e+00> : vector<16x16xf32>
    %108 = tpu.matmul %6, %39, %cst_59 {dimension_numbers = #tpu.dot_dimension_numbers<[1], [0], [0], [1], [0, 0, 1, 1], [], []>} : vector<16x16xf32>, vector<16x16xf32>, vector<16x16xf32> -> vector<16x16xf32>
    %109 = arith.mulf %108, %9 : vector<16x16xf32>
    %cst_60 = arith.constant dense<0.000000e+00> : vector<16x16xf32>
    %110 = tpu.matmul %6, %42, %cst_60 {dimension_numbers = #tpu.dot_dimension_numbers<[1], [0], [0], [1], [0, 0, 1, 1], [], []>} : vector<16x16xf32>, vector<16x16xf32>, vector<16x16xf32> -> vector<16x16xf32>
    %111 = arith.addf %109, %110 : vector<16x16xf32>
    %cst_61 = arith.constant 2.500000e-01 : f32
    %112 = vector.broadcast %cst_61 : f32 to vector<16x16xf32>
    %113 = arith.mulf %111, %112 : vector<16x16xf32>
    %114 = arith.subf %113, %9 : vector<16x16xf32>
    %115 = math.absf %114 : vector<16x16xf32>
    %116 = arith.cmpf olt, %115, %107 : vector<16x16xf32>
    %117 = arith.select %116, %114, %106 : vector<16x16xi1>, vector<16x16xf32>
    %118 = arith.select %116, %115, %107 : vector<16x16xi1>, vector<16x16xf32>
    %cst_62 = arith.constant dense<0.000000e+00> : vector<16x16xf32>
    %119 = tpu.matmul %6, %40, %cst_62 {dimension_numbers = #tpu.dot_dimension_numbers<[1], [0], [0], [1], [0, 0, 1, 1], [], []>} : vector<16x16xf32>, vector<16x16xf32>, vector<16x16xf32> -> vector<16x16xf32>
    %120 = arith.mulf %119, %9 : vector<16x16xf32>
    %cst_63 = arith.constant dense<0.000000e+00> : vector<16x16xf32>
    %121 = tpu.matmul %6, %43, %cst_63 {dimension_numbers = #tpu.dot_dimension_numbers<[1], [0], [0], [1], [0, 0, 1, 1], [], []>} : vector<16x16xf32>, vector<16x16xf32>, vector<16x16xf32> -> vector<16x16xf32>
    %122 = arith.addf %120, %121 : vector<16x16xf32>
    %cst_64 = arith.constant 2.500000e-01 : f32
    %123 = vector.broadcast %cst_64 : f32 to vector<16x16xf32>
    %124 = arith.mulf %122, %123 : vector<16x16xf32>
    %125 = arith.subf %124, %9 : vector<16x16xf32>
    %126 = math.absf %125 : vector<16x16xf32>
    %127 = arith.cmpf olt, %126, %118 : vector<16x16xf32>
    %128 = arith.select %127, %125, %117 : vector<16x16xi1>, vector<16x16xf32>
    %129 = arith.addf %128, %9 : vector<16x16xf32>
    %cst_65 = arith.constant 0.000000e+00 : f32
    %cst_66 = arith.constant 2.550000e+02 : f32
    %130 = vector.broadcast %cst_65 : f32 to vector<16x16xf32>
    %131 = arith.maximumf %130, %129 : vector<16x16xf32>
    %132 = vector.broadcast %cst_66 : f32 to vector<16x16xf32>
    %133 = arith.minimumf %132, %131 : vector<16x16xf32>
    %134 = math.floor %133 : vector<16x16xf32>
    %c0_67 = arith.constant 0 : index
    %c0_68 = arith.constant 0 : index
    %c0_69 = arith.constant 0 : index
    %c0_70 = arith.constant 0 : index
    %135 = vector.load %arg11[%c0_67, %c0_68, %c0_69, %c0_70] : memref<1x3x16x16xf32, #tpu.memory_space<vmem>>, vector<1x1x16x16xf32>
    %136 = vector.shape_cast %135 : vector<1x1x16x16xf32> to vector<16x16xf32>
    %137 = vector.shape_cast %134 : vector<16x16xf32> to vector<1x1x16x16xf32>
    tpu.vector_store %arg11[%c0_67, %c0_68, %c0_69, %c0_70], %137 {strides = array<i32>} : memref<1x3x16x16xf32, #tpu.memory_space<vmem>>, vector<1x1x16x16xf32>,
    %c0_71 = arith.constant 0 : index
    %c1 = arith.constant 1 : index
    %c0_72 = arith.constant 0 : index
    %c0_73 = arith.constant 0 : index
    %138 = vector.load %arg1[%c0_71, %c1, %c0_72, %c0_73] : memref<1x3x16x16xf32, #tpu.memory_space<vmem>>, vector<1x1x16x16xf32>
    %139 = vector.shape_cast %138 : vector<1x1x16x16xf32> to vector<16x16xf32>
    %c0_74 = arith.constant 0 : index
    %c1_75 = arith.constant 1 : index
    %c0_76 = arith.constant 0 : index
    %c0_77 = arith.constant 0 : index
    %140 = vector.load %arg2[%c0_74, %c1_75, %c0_76, %c0_77] : memref<1x3x16x16xf32, #tpu.memory_space<vmem>>, vector<1x1x16x16xf32>
    %141 = vector.shape_cast %140 : vector<1x1x16x16xf32> to vector<16x16xf32>
    %cst_78 = arith.constant dense<0.000000e+00> : vector<16x16xf32>
    %142 = tpu.matmul %139, %0, %cst_78 {dimension_numbers = #tpu.dot_dimension_numbers<[1], [0], [0], [1], [0, 0, 1, 1], [], []>} : vector<16x16xf32>, vector<16x16xf32>, vector<16x16xf32> -> vector<16x16xf32>
    %cst_79 = arith.constant dense<0.000000e+00> : vector<16x16xf32>
    %143 = tpu.matmul %1, %142, %cst_79 {dimension_numbers = #tpu.dot_dimension_numbers<[1], [0], [0], [1], [0, 0, 1, 1], [], []>} : vector<16x16xf32>, vector<16x16xf32>, vector<16x16xf32> -> vector<16x16xf32>
    %cst_80 = arith.constant 0.111111112 : f32
    %144 = vector.broadcast %cst_80 : f32 to vector<16x16xf32>
    %145 = arith.mulf %143, %144 : vector<16x16xf32>
    %cst_81 = arith.constant dense<0.000000e+00> : vector<16x16xf32>
    %146 = tpu.matmul %141, %0, %cst_81 {dimension_numbers = #tpu.dot_dimension_numbers<[1], [0], [0], [1], [0, 0, 1, 1], [], []>} : vector<16x16xf32>, vector<16x16xf32>, vector<16x16xf32> -> vector<16x16xf32>
    %cst_82 = arith.constant dense<0.000000e+00> : vector<16x16xf32>
    %147 = tpu.matmul %1, %146, %cst_82 {dimension_numbers = #tpu.dot_dimension_numbers<[1], [0], [0], [1], [0, 0, 1, 1], [], []>} : vector<16x16xf32>, vector<16x16xf32>, vector<16x16xf32> -> vector<16x16xf32>
    %cst_83 = arith.constant 0.111111112 : f32
    %148 = vector.broadcast %cst_83 : f32 to vector<16x16xf32>
    %149 = arith.mulf %147, %148 : vector<16x16xf32>
    %150 = arith.mulf %139, %141 : vector<16x16xf32>
    %cst_84 = arith.constant dense<0.000000e+00> : vector<16x16xf32>
    %151 = tpu.matmul %150, %0, %cst_84 {dimension_numbers = #tpu.dot_dimension_numbers<[1], [0], [0], [1], [0, 0, 1, 1], [], []>} : vector<16x16xf32>, vector<16x16xf32>, vector<16x16xf32> -> vector<16x16xf32>
    %cst_85 = arith.constant dense<0.000000e+00> : vector<16x16xf32>
    %152 = tpu.matmul %1, %151, %cst_85 {dimension_numbers = #tpu.dot_dimension_numbers<[1], [0], [0], [1], [0, 0, 1, 1], [], []>} : vector<16x16xf32>, vector<16x16xf32>, vector<16x16xf32> -> vector<16x16xf32>
    %cst_86 = arith.constant 0.111111112 : f32
    %153 = vector.broadcast %cst_86 : f32 to vector<16x16xf32>
    %154 = arith.mulf %152, %153 : vector<16x16xf32>
    %155 = arith.mulf %139, %139 : vector<16x16xf32>
    %cst_87 = arith.constant dense<0.000000e+00> : vector<16x16xf32>
    %156 = tpu.matmul %155, %0, %cst_87 {dimension_numbers = #tpu.dot_dimension_numbers<[1], [0], [0], [1], [0, 0, 1, 1], [], []>} : vector<16x16xf32>, vector<16x16xf32>, vector<16x16xf32> -> vector<16x16xf32>
    %cst_88 = arith.constant dense<0.000000e+00> : vector<16x16xf32>
    %157 = tpu.matmul %1, %156, %cst_88 {dimension_numbers = #tpu.dot_dimension_numbers<[1], [0], [0], [1], [0, 0, 1, 1], [], []>} : vector<16x16xf32>, vector<16x16xf32>, vector<16x16xf32> -> vector<16x16xf32>
    %cst_89 = arith.constant 0.111111112 : f32
    %158 = vector.broadcast %cst_89 : f32 to vector<16x16xf32>
    %159 = arith.mulf %157, %158 : vector<16x16xf32>
    %160 = arith.mulf %145, %149 : vector<16x16xf32>
    %161 = arith.subf %154, %160 : vector<16x16xf32>
    %162 = arith.mulf %145, %145 : vector<16x16xf32>
    %163 = arith.subf %159, %162 : vector<16x16xf32>
    %cst_90 = arith.constant 9.99999974E-5 : f32
    %164 = vector.broadcast %cst_90 : f32 to vector<16x16xf32>
    %165 = arith.addf %163, %164 : vector<16x16xf32>
    %166 = arith.divf %161, %165 : vector<16x16xf32>
    %167 = arith.mulf %166, %145 : vector<16x16xf32>
    %168 = arith.subf %149, %167 : vector<16x16xf32>
    %cst_91 = arith.constant dense<0.000000e+00> : vector<16x16xf32>
    %169 = tpu.matmul %166, %2, %cst_91 {dimension_numbers = #tpu.dot_dimension_numbers<[1], [0], [0], [1], [0, 0, 1, 1], [], []>} : vector<16x16xf32>, vector<16x16xf32>, vector<16x16xf32> -> vector<16x16xf32>
    %cst_92 = arith.constant dense<0.000000e+00> : vector<16x16xf32>
    %170 = tpu.matmul %166, %3, %cst_92 {dimension_numbers = #tpu.dot_dimension_numbers<[1], [0], [0], [1], [0, 0, 1, 1], [], []>} : vector<16x16xf32>, vector<16x16xf32>, vector<16x16xf32> -> vector<16x16xf32>
    %cst_93 = arith.constant dense<0.000000e+00> : vector<16x16xf32>
    %171 = tpu.matmul %166, %4, %cst_93 {dimension_numbers = #tpu.dot_dimension_numbers<[1], [0], [0], [1], [0, 0, 1, 1], [], []>} : vector<16x16xf32>, vector<16x16xf32>, vector<16x16xf32> -> vector<16x16xf32>
    %cst_94 = arith.constant dense<0.000000e+00> : vector<16x16xf32>
    %172 = tpu.matmul %168, %2, %cst_94 {dimension_numbers = #tpu.dot_dimension_numbers<[1], [0], [0], [1], [0, 0, 1, 1], [], []>} : vector<16x16xf32>, vector<16x16xf32>, vector<16x16xf32> -> vector<16x16xf32>
    %cst_95 = arith.constant dense<0.000000e+00> : vector<16x16xf32>
    %173 = tpu.matmul %168, %3, %cst_95 {dimension_numbers = #tpu.dot_dimension_numbers<[1], [0], [0], [1], [0, 0, 1, 1], [], []>} : vector<16x16xf32>, vector<16x16xf32>, vector<16x16xf32> -> vector<16x16xf32>
    %cst_96 = arith.constant dense<0.000000e+00> : vector<16x16xf32>
    %174 = tpu.matmul %168, %4, %cst_96 {dimension_numbers = #tpu.dot_dimension_numbers<[1], [0], [0], [1], [0, 0, 1, 1], [], []>} : vector<16x16xf32>, vector<16x16xf32>, vector<16x16xf32> -> vector<16x16xf32>
    %cst_97 = arith.constant dense<0.000000e+00> : vector<16x16xf32>
    %175 = tpu.matmul %7, %169, %cst_97 {dimension_numbers = #tpu.dot_dimension_numbers<[1], [0], [0], [1], [0, 0, 1, 1], [], []>} : vector<16x16xf32>, vector<16x16xf32>, vector<16x16xf32> -> vector<16x16xf32>
    %176 = arith.mulf %175, %139 : vector<16x16xf32>
    %cst_98 = arith.constant dense<0.000000e+00> : vector<16x16xf32>
    %177 = tpu.matmul %7, %172, %cst_98 {dimension_numbers = #tpu.dot_dimension_numbers<[1], [0], [0], [1], [0, 0, 1, 1], [], []>} : vector<16x16xf32>, vector<16x16xf32>, vector<16x16xf32> -> vector<16x16xf32>
    %178 = arith.addf %176, %177 : vector<16x16xf32>
    %cst_99 = arith.constant 0.166666672 : f32
    %179 = vector.broadcast %cst_99 : f32 to vector<16x16xf32>
    %180 = arith.mulf %178, %179 : vector<16x16xf32>
    %181 = arith.subf %180, %139 : vector<16x16xf32>
    %182 = math.absf %181 : vector<16x16xf32>
    %cst_100 = arith.constant dense<0.000000e+00> : vector<16x16xf32>
    %183 = tpu.matmul %7, %170, %cst_100 {dimension_numbers = #tpu.dot_dimension_numbers<[1], [0], [0], [1], [0, 0, 1, 1], [], []>} : vector<16x16xf32>, vector<16x16xf32>, vector<16x16xf32> -> vector<16x16xf32>
    %184 = arith.mulf %183, %139 : vector<16x16xf32>
    %cst_101 = arith.constant dense<0.000000e+00> : vector<16x16xf32>
    %185 = tpu.matmul %7, %173, %cst_101 {dimension_numbers = #tpu.dot_dimension_numbers<[1], [0], [0], [1], [0, 0, 1, 1], [], []>} : vector<16x16xf32>, vector<16x16xf32>, vector<16x16xf32> -> vector<16x16xf32>
    %186 = arith.addf %184, %185 : vector<16x16xf32>
    %cst_102 = arith.constant 0.166666672 : f32
    %187 = vector.broadcast %cst_102 : f32 to vector<16x16xf32>
    %188 = arith.mulf %186, %187 : vector<16x16xf32>
    %189 = arith.subf %188, %139 : vector<16x16xf32>
    %190 = math.absf %189 : vector<16x16xf32>
    %191 = arith.cmpf olt, %190, %182 : vector<16x16xf32>
    %192 = arith.select %191, %189, %181 : vector<16x16xi1>, vector<16x16xf32>
    %193 = arith.select %191, %190, %182 : vector<16x16xi1>, vector<16x16xf32>
    %cst_103 = arith.constant dense<0.000000e+00> : vector<16x16xf32>
    %194 = tpu.matmul %5, %171, %cst_103 {dimension_numbers = #tpu.dot_dimension_numbers<[1], [0], [0], [1], [0, 0, 1, 1], [], []>} : vector<16x16xf32>, vector<16x16xf32>, vector<16x16xf32> -> vector<16x16xf32>
    %195 = arith.mulf %194, %139 : vector<16x16xf32>
    %cst_104 = arith.constant dense<0.000000e+00> : vector<16x16xf32>
    %196 = tpu.matmul %5, %174, %cst_104 {dimension_numbers = #tpu.dot_dimension_numbers<[1], [0], [0], [1], [0, 0, 1, 1], [], []>} : vector<16x16xf32>, vector<16x16xf32>, vector<16x16xf32> -> vector<16x16xf32>
    %197 = arith.addf %195, %196 : vector<16x16xf32>
    %cst_105 = arith.constant 0.166666672 : f32
    %198 = vector.broadcast %cst_105 : f32 to vector<16x16xf32>
    %199 = arith.mulf %197, %198 : vector<16x16xf32>
    %200 = arith.subf %199, %139 : vector<16x16xf32>
    %201 = math.absf %200 : vector<16x16xf32>
    %202 = arith.cmpf olt, %201, %193 : vector<16x16xf32>
    %203 = arith.select %202, %200, %192 : vector<16x16xi1>, vector<16x16xf32>
    %204 = arith.select %202, %201, %193 : vector<16x16xi1>, vector<16x16xf32>
    %cst_106 = arith.constant dense<0.000000e+00> : vector<16x16xf32>
    %205 = tpu.matmul %6, %171, %cst_106 {dimension_numbers = #tpu.dot_dimension_numbers<[1], [0], [0], [1], [0, 0, 1, 1], [], []>} : vector<16x16xf32>, vector<16x16xf32>, vector<16x16xf32> -> vector<16x16xf32>
    %206 = arith.mulf %205, %139 : vector<16x16xf32>
    %cst_107 = arith.constant dense<0.000000e+00> : vector<16x16xf32>
    %207 = tpu.matmul %6, %174, %cst_107 {dimension_numbers = #tpu.dot_dimension_numbers<[1], [0], [0], [1], [0, 0, 1, 1], [], []>} : vector<16x16xf32>, vector<16x16xf32>, vector<16x16xf32> -> vector<16x16xf32>
    %208 = arith.addf %206, %207 : vector<16x16xf32>
    %cst_108 = arith.constant 0.166666672 : f32
    %209 = vector.broadcast %cst_108 : f32 to vector<16x16xf32>
    %210 = arith.mulf %208, %209 : vector<16x16xf32>
    %211 = arith.subf %210, %139 : vector<16x16xf32>
    %212 = math.absf %211 : vector<16x16xf32>
    %213 = arith.cmpf olt, %212, %204 : vector<16x16xf32>
    %214 = arith.select %213, %211, %203 : vector<16x16xi1>, vector<16x16xf32>
    %215 = arith.select %213, %212, %204 : vector<16x16xi1>, vector<16x16xf32>
    %cst_109 = arith.constant dense<0.000000e+00> : vector<16x16xf32>
    %216 = tpu.matmul %5, %169, %cst_109 {dimension_numbers = #tpu.dot_dimension_numbers<[1], [0], [0], [1], [0, 0, 1, 1], [], []>} : vector<16x16xf32>, vector<16x16xf32>, vector<16x16xf32> -> vector<16x16xf32>
    %217 = arith.mulf %216, %139 : vector<16x16xf32>
    %cst_110 = arith.constant dense<0.000000e+00> : vector<16x16xf32>
    %218 = tpu.matmul %5, %172, %cst_110 {dimension_numbers = #tpu.dot_dimension_numbers<[1], [0], [0], [1], [0, 0, 1, 1], [], []>} : vector<16x16xf32>, vector<16x16xf32>, vector<16x16xf32> -> vector<16x16xf32>
    %219 = arith.addf %217, %218 : vector<16x16xf32>
    %cst_111 = arith.constant 2.500000e-01 : f32
    %220 = vector.broadcast %cst_111 : f32 to vector<16x16xf32>
    %221 = arith.mulf %219, %220 : vector<16x16xf32>
    %222 = arith.subf %221, %139 : vector<16x16xf32>
    %223 = math.absf %222 : vector<16x16xf32>
    %224 = arith.cmpf olt, %223, %215 : vector<16x16xf32>
    %225 = arith.select %224, %222, %214 : vector<16x16xi1>, vector<16x16xf32>
    %226 = arith.select %224, %223, %215 : vector<16x16xi1>, vector<16x16xf32>
    %cst_112 = arith.constant dense<0.000000e+00> : vector<16x16xf32>
    %227 = tpu.matmul %5, %170, %cst_112 {dimension_numbers = #tpu.dot_dimension_numbers<[1], [0], [0], [1], [0, 0, 1, 1], [], []>} : vector<16x16xf32>, vector<16x16xf32>, vector<16x16xf32> -> vector<16x16xf32>
    %228 = arith.mulf %227, %139 : vector<16x16xf32>
    %cst_113 = arith.constant dense<0.000000e+00> : vector<16x16xf32>
    %229 = tpu.matmul %5, %173, %cst_113 {dimension_numbers = #tpu.dot_dimension_numbers<[1], [0], [0], [1], [0, 0, 1, 1], [], []>} : vector<16x16xf32>, vector<16x16xf32>, vector<16x16xf32> -> vector<16x16xf32>
    %230 = arith.addf %228, %229 : vector<16x16xf32>
    %cst_114 = arith.constant 2.500000e-01 : f32
    %231 = vector.broadcast %cst_114 : f32 to vector<16x16xf32>
    %232 = arith.mulf %230, %231 : vector<16x16xf32>
    %233 = arith.subf %232, %139 : vector<16x16xf32>
    %234 = math.absf %233 : vector<16x16xf32>
    %235 = arith.cmpf olt, %234, %226 : vector<16x16xf32>
    %236 = arith.select %235, %233, %225 : vector<16x16xi1>, vector<16x16xf32>
    %237 = arith.select %235, %234, %226 : vector<16x16xi1>, vector<16x16xf32>
    %cst_115 = arith.constant dense<0.000000e+00> : vector<16x16xf32>
    %238 = tpu.matmul %6, %169, %cst_115 {dimension_numbers = #tpu.dot_dimension_numbers<[1], [0], [0], [1], [0, 0, 1, 1], [], []>} : vector<16x16xf32>, vector<16x16xf32>, vector<16x16xf32> -> vector<16x16xf32>
    %239 = arith.mulf %238, %139 : vector<16x16xf32>
    %cst_116 = arith.constant dense<0.000000e+00> : vector<16x16xf32>
    %240 = tpu.matmul %6, %172, %cst_116 {dimension_numbers = #tpu.dot_dimension_numbers<[1], [0], [0], [1], [0, 0, 1, 1], [], []>} : vector<16x16xf32>, vector<16x16xf32>, vector<16x16xf32> -> vector<16x16xf32>
    %241 = arith.addf %239, %240 : vector<16x16xf32>
    %cst_117 = arith.constant 2.500000e-01 : f32
    %242 = vector.broadcast %cst_117 : f32 to vector<16x16xf32>
    %243 = arith.mulf %241, %242 : vector<16x16xf32>
    %244 = arith.subf %243, %139 : vector<16x16xf32>
    %245 = math.absf %244 : vector<16x16xf32>
    %246 = arith.cmpf olt, %245, %237 : vector<16x16xf32>
    %247 = arith.select %246, %244, %236 : vector<16x16xi1>, vector<16x16xf32>
    %248 = arith.select %246, %245, %237 : vector<16x16xi1>, vector<16x16xf32>
    %cst_118 = arith.constant dense<0.000000e+00> : vector<16x16xf32>
    %249 = tpu.matmul %6, %170, %cst_118 {dimension_numbers = #tpu.dot_dimension_numbers<[1], [0], [0], [1], [0, 0, 1, 1], [], []>} : vector<16x16xf32>, vector<16x16xf32>, vector<16x16xf32> -> vector<16x16xf32>
    %250 = arith.mulf %249, %139 : vector<16x16xf32>
    %cst_119 = arith.constant dense<0.000000e+00> : vector<16x16xf32>
    %251 = tpu.matmul %6, %173, %cst_119 {dimension_numbers = #tpu.dot_dimension_numbers<[1], [0], [0], [1], [0, 0, 1, 1], [], []>} : vector<16x16xf32>, vector<16x16xf32>, vector<16x16xf32> -> vector<16x16xf32>
    %252 = arith.addf %250, %251 : vector<16x16xf32>
    %cst_120 = arith.constant 2.500000e-01 : f32
    %253 = vector.broadcast %cst_120 : f32 to vector<16x16xf32>
    %254 = arith.mulf %252, %253 : vector<16x16xf32>
    %255 = arith.subf %254, %139 : vector<16x16xf32>
    %256 = math.absf %255 : vector<16x16xf32>
    %257 = arith.cmpf olt, %256, %248 : vector<16x16xf32>
    %258 = arith.select %257, %255, %247 : vector<16x16xi1>, vector<16x16xf32>
    %259 = arith.addf %258, %139 : vector<16x16xf32>
    %cst_121 = arith.constant 0.000000e+00 : f32
    %cst_122 = arith.constant 2.550000e+02 : f32
    %260 = vector.broadcast %cst_121 : f32 to vector<16x16xf32>
    %261 = arith.maximumf %260, %259 : vector<16x16xf32>
    %262 = vector.broadcast %cst_122 : f32 to vector<16x16xf32>
    %263 = arith.minimumf %262, %261 : vector<16x16xf32>
    %264 = math.floor %263 : vector<16x16xf32>
    %c0_123 = arith.constant 0 : index
    %c1_124 = arith.constant 1 : index
    %c0_125 = arith.constant 0 : index
    %c0_126 = arith.constant 0 : index
    %265 = vector.load %arg11[%c0_123, %c1_124, %c0_125, %c0_126] : memref<1x3x16x16xf32, #tpu.memory_space<vmem>>, vector<1x1x16x16xf32>
    %266 = vector.shape_cast %265 : vector<1x1x16x16xf32> to vector<16x16xf32>
    %267 = vector.shape_cast %264 : vector<16x16xf32> to vector<1x1x16x16xf32>
    tpu.vector_store %arg11[%c0_123, %c1_124, %c0_125, %c0_126], %267 {strides = array<i32>} : memref<1x3x16x16xf32, #tpu.memory_space<vmem>>, vector<1x1x16x16xf32>,
    %c0_127 = arith.constant 0 : index
    %c2 = arith.constant 2 : index
    %c0_128 = arith.constant 0 : index
    %c0_129 = arith.constant 0 : index
    %268 = vector.load %arg1[%c0_127, %c2, %c0_128, %c0_129] : memref<1x3x16x16xf32, #tpu.memory_space<vmem>>, vector<1x1x16x16xf32>
    %269 = vector.shape_cast %268 : vector<1x1x16x16xf32> to vector<16x16xf32>
    %c0_130 = arith.constant 0 : index
    %c2_131 = arith.constant 2 : index
    %c0_132 = arith.constant 0 : index
    %c0_133 = arith.constant 0 : index
    %270 = vector.load %arg2[%c0_130, %c2_131, %c0_132, %c0_133] : memref<1x3x16x16xf32, #tpu.memory_space<vmem>>, vector<1x1x16x16xf32>
    %271 = vector.shape_cast %270 : vector<1x1x16x16xf32> to vector<16x16xf32>
    %cst_134 = arith.constant dense<0.000000e+00> : vector<16x16xf32>
    %272 = tpu.matmul %269, %0, %cst_134 {dimension_numbers = #tpu.dot_dimension_numbers<[1], [0], [0], [1], [0, 0, 1, 1], [], []>} : vector<16x16xf32>, vector<16x16xf32>, vector<16x16xf32> -> vector<16x16xf32>
    %cst_135 = arith.constant dense<0.000000e+00> : vector<16x16xf32>
    %273 = tpu.matmul %1, %272, %cst_135 {dimension_numbers = #tpu.dot_dimension_numbers<[1], [0], [0], [1], [0, 0, 1, 1], [], []>} : vector<16x16xf32>, vector<16x16xf32>, vector<16x16xf32> -> vector<16x16xf32>
    %cst_136 = arith.constant 0.111111112 : f32
    %274 = vector.broadcast %cst_136 : f32 to vector<16x16xf32>
    %275 = arith.mulf %273, %274 : vector<16x16xf32>
    %cst_137 = arith.constant dense<0.000000e+00> : vector<16x16xf32>
    %276 = tpu.matmul %271, %0, %cst_137 {dimension_numbers = #tpu.dot_dimension_numbers<[1], [0], [0], [1], [0, 0, 1, 1], [], []>} : vector<16x16xf32>, vector<16x16xf32>, vector<16x16xf32> -> vector<16x16xf32>
    %cst_138 = arith.constant dense<0.000000e+00> : vector<16x16xf32>
    %277 = tpu.matmul %1, %276, %cst_138 {dimension_numbers = #tpu.dot_dimension_numbers<[1], [0], [0], [1], [0, 0, 1, 1], [], []>} : vector<16x16xf32>, vector<16x16xf32>, vector<16x16xf32> -> vector<16x16xf32>
    %cst_139 = arith.constant 0.111111112 : f32
    %278 = vector.broadcast %cst_139 : f32 to vector<16x16xf32>
    %279 = arith.mulf %277, %278 : vector<16x16xf32>
    %280 = arith.mulf %269, %271 : vector<16x16xf32>
    %cst_140 = arith.constant dense<0.000000e+00> : vector<16x16xf32>
    %281 = tpu.matmul %280, %0, %cst_140 {dimension_numbers = #tpu.dot_dimension_numbers<[1], [0], [0], [1], [0, 0, 1, 1], [], []>} : vector<16x16xf32>, vector<16x16xf32>, vector<16x16xf32> -> vector<16x16xf32>
    %cst_141 = arith.constant dense<0.000000e+00> : vector<16x16xf32>
    %282 = tpu.matmul %1, %281, %cst_141 {dimension_numbers = #tpu.dot_dimension_numbers<[1], [0], [0], [1], [0, 0, 1, 1], [], []>} : vector<16x16xf32>, vector<16x16xf32>, vector<16x16xf32> -> vector<16x16xf32>
    %cst_142 = arith.constant 0.111111112 : f32
    %283 = vector.broadcast %cst_142 : f32 to vector<16x16xf32>
    %284 = arith.mulf %282, %283 : vector<16x16xf32>
    %285 = arith.mulf %269, %269 : vector<16x16xf32>
    %cst_143 = arith.constant dense<0.000000e+00> : vector<16x16xf32>
    %286 = tpu.matmul %285, %0, %cst_143 {dimension_numbers = #tpu.dot_dimension_numbers<[1], [0], [0], [1], [0, 0, 1, 1], [], []>} : vector<16x16xf32>, vector<16x16xf32>, vector<16x16xf32> -> vector<16x16xf32>
    %cst_144 = arith.constant dense<0.000000e+00> : vector<16x16xf32>
    %287 = tpu.matmul %1, %286, %cst_144 {dimension_numbers = #tpu.dot_dimension_numbers<[1], [0], [0], [1], [0, 0, 1, 1], [], []>} : vector<16x16xf32>, vector<16x16xf32>, vector<16x16xf32> -> vector<16x16xf32>
    %cst_145 = arith.constant 0.111111112 : f32
    %288 = vector.broadcast %cst_145 : f32 to vector<16x16xf32>
    %289 = arith.mulf %287, %288 : vector<16x16xf32>
    %290 = arith.mulf %275, %279 : vector<16x16xf32>
    %291 = arith.subf %284, %290 : vector<16x16xf32>
    %292 = arith.mulf %275, %275 : vector<16x16xf32>
    %293 = arith.subf %289, %292 : vector<16x16xf32>
    %cst_146 = arith.constant 9.99999974E-5 : f32
    %294 = vector.broadcast %cst_146 : f32 to vector<16x16xf32>
    %295 = arith.addf %293, %294 : vector<16x16xf32>
    %296 = arith.divf %291, %295 : vector<16x16xf32>
    %297 = arith.mulf %296, %275 : vector<16x16xf32>
    %298 = arith.subf %279, %297 : vector<16x16xf32>
    %cst_147 = arith.constant dense<0.000000e+00> : vector<16x16xf32>
    %299 = tpu.matmul %296, %2, %cst_147 {dimension_numbers = #tpu.dot_dimension_numbers<[1], [0], [0], [1], [0, 0, 1, 1], [], []>} : vector<16x16xf32>, vector<16x16xf32>, vector<16x16xf32> -> vector<16x16xf32>
    %cst_148 = arith.constant dense<0.000000e+00> : vector<16x16xf32>
    %300 = tpu.matmul %296, %3, %cst_148 {dimension_numbers = #tpu.dot_dimension_numbers<[1], [0], [0], [1], [0, 0, 1, 1], [], []>} : vector<16x16xf32>, vector<16x16xf32>, vector<16x16xf32> -> vector<16x16xf32>
    %cst_149 = arith.constant dense<0.000000e+00> : vector<16x16xf32>
    %301 = tpu.matmul %296, %4, %cst_149 {dimension_numbers = #tpu.dot_dimension_numbers<[1], [0], [0], [1], [0, 0, 1, 1], [], []>} : vector<16x16xf32>, vector<16x16xf32>, vector<16x16xf32> -> vector<16x16xf32>
    %cst_150 = arith.constant dense<0.000000e+00> : vector<16x16xf32>
    %302 = tpu.matmul %298, %2, %cst_150 {dimension_numbers = #tpu.dot_dimension_numbers<[1], [0], [0], [1], [0, 0, 1, 1], [], []>} : vector<16x16xf32>, vector<16x16xf32>, vector<16x16xf32> -> vector<16x16xf32>
    %cst_151 = arith.constant dense<0.000000e+00> : vector<16x16xf32>
    %303 = tpu.matmul %298, %3, %cst_151 {dimension_numbers = #tpu.dot_dimension_numbers<[1], [0], [0], [1], [0, 0, 1, 1], [], []>} : vector<16x16xf32>, vector<16x16xf32>, vector<16x16xf32> -> vector<16x16xf32>
    %cst_152 = arith.constant dense<0.000000e+00> : vector<16x16xf32>
    %304 = tpu.matmul %298, %4, %cst_152 {dimension_numbers = #tpu.dot_dimension_numbers<[1], [0], [0], [1], [0, 0, 1, 1], [], []>} : vector<16x16xf32>, vector<16x16xf32>, vector<16x16xf32> -> vector<16x16xf32>
    %cst_153 = arith.constant dense<0.000000e+00> : vector<16x16xf32>
    %305 = tpu.matmul %7, %299, %cst_153 {dimension_numbers = #tpu.dot_dimension_numbers<[1], [0], [0], [1], [0, 0, 1, 1], [], []>} : vector<16x16xf32>, vector<16x16xf32>, vector<16x16xf32> -> vector<16x16xf32>
    %306 = arith.mulf %305, %269 : vector<16x16xf32>
    %cst_154 = arith.constant dense<0.000000e+00> : vector<16x16xf32>
    %307 = tpu.matmul %7, %302, %cst_154 {dimension_numbers = #tpu.dot_dimension_numbers<[1], [0], [0], [1], [0, 0, 1, 1], [], []>} : vector<16x16xf32>, vector<16x16xf32>, vector<16x16xf32> -> vector<16x16xf32>
    %308 = arith.addf %306, %307 : vector<16x16xf32>
    %cst_155 = arith.constant 0.166666672 : f32
    %309 = vector.broadcast %cst_155 : f32 to vector<16x16xf32>
    %310 = arith.mulf %308, %309 : vector<16x16xf32>
    %311 = arith.subf %310, %269 : vector<16x16xf32>
    %312 = math.absf %311 : vector<16x16xf32>
    %cst_156 = arith.constant dense<0.000000e+00> : vector<16x16xf32>
    %313 = tpu.matmul %7, %300, %cst_156 {dimension_numbers = #tpu.dot_dimension_numbers<[1], [0], [0], [1], [0, 0, 1, 1], [], []>} : vector<16x16xf32>, vector<16x16xf32>, vector<16x16xf32> -> vector<16x16xf32>
    %314 = arith.mulf %313, %269 : vector<16x16xf32>
    %cst_157 = arith.constant dense<0.000000e+00> : vector<16x16xf32>
    %315 = tpu.matmul %7, %303, %cst_157 {dimension_numbers = #tpu.dot_dimension_numbers<[1], [0], [0], [1], [0, 0, 1, 1], [], []>} : vector<16x16xf32>, vector<16x16xf32>, vector<16x16xf32> -> vector<16x16xf32>
    %316 = arith.addf %314, %315 : vector<16x16xf32>
    %cst_158 = arith.constant 0.166666672 : f32
    %317 = vector.broadcast %cst_158 : f32 to vector<16x16xf32>
    %318 = arith.mulf %316, %317 : vector<16x16xf32>
    %319 = arith.subf %318, %269 : vector<16x16xf32>
    %320 = math.absf %319 : vector<16x16xf32>
    %321 = arith.cmpf olt, %320, %312 : vector<16x16xf32>
    %322 = arith.select %321, %319, %311 : vector<16x16xi1>, vector<16x16xf32>
    %323 = arith.select %321, %320, %312 : vector<16x16xi1>, vector<16x16xf32>
    %cst_159 = arith.constant dense<0.000000e+00> : vector<16x16xf32>
    %324 = tpu.matmul %5, %301, %cst_159 {dimension_numbers = #tpu.dot_dimension_numbers<[1], [0], [0], [1], [0, 0, 1, 1], [], []>} : vector<16x16xf32>, vector<16x16xf32>, vector<16x16xf32> -> vector<16x16xf32>
    %325 = arith.mulf %324, %269 : vector<16x16xf32>
    %cst_160 = arith.constant dense<0.000000e+00> : vector<16x16xf32>
    %326 = tpu.matmul %5, %304, %cst_160 {dimension_numbers = #tpu.dot_dimension_numbers<[1], [0], [0], [1], [0, 0, 1, 1], [], []>} : vector<16x16xf32>, vector<16x16xf32>, vector<16x16xf32> -> vector<16x16xf32>
    %327 = arith.addf %325, %326 : vector<16x16xf32>
    %cst_161 = arith.constant 0.166666672 : f32
    %328 = vector.broadcast %cst_161 : f32 to vector<16x16xf32>
    %329 = arith.mulf %327, %328 : vector<16x16xf32>
    %330 = arith.subf %329, %269 : vector<16x16xf32>
    %331 = math.absf %330 : vector<16x16xf32>
    %332 = arith.cmpf olt, %331, %323 : vector<16x16xf32>
    %333 = arith.select %332, %330, %322 : vector<16x16xi1>, vector<16x16xf32>
    %334 = arith.select %332, %331, %323 : vector<16x16xi1>, vector<16x16xf32>
    %cst_162 = arith.constant dense<0.000000e+00> : vector<16x16xf32>
    %335 = tpu.matmul %6, %301, %cst_162 {dimension_numbers = #tpu.dot_dimension_numbers<[1], [0], [0], [1], [0, 0, 1, 1], [], []>} : vector<16x16xf32>, vector<16x16xf32>, vector<16x16xf32> -> vector<16x16xf32>
    %336 = arith.mulf %335, %269 : vector<16x16xf32>
    %cst_163 = arith.constant dense<0.000000e+00> : vector<16x16xf32>
    %337 = tpu.matmul %6, %304, %cst_163 {dimension_numbers = #tpu.dot_dimension_numbers<[1], [0], [0], [1], [0, 0, 1, 1], [], []>} : vector<16x16xf32>, vector<16x16xf32>, vector<16x16xf32> -> vector<16x16xf32>
    %338 = arith.addf %336, %337 : vector<16x16xf32>
    %cst_164 = arith.constant 0.166666672 : f32
    %339 = vector.broadcast %cst_164 : f32 to vector<16x16xf32>
    %340 = arith.mulf %338, %339 : vector<16x16xf32>
    %341 = arith.subf %340, %269 : vector<16x16xf32>
    %342 = math.absf %341 : vector<16x16xf32>
    %343 = arith.cmpf olt, %342, %334 : vector<16x16xf32>
    %344 = arith.select %343, %341, %333 : vector<16x16xi1>, vector<16x16xf32>
    %345 = arith.select %343, %342, %334 : vector<16x16xi1>, vector<16x16xf32>
    %cst_165 = arith.constant dense<0.000000e+00> : vector<16x16xf32>
    %346 = tpu.matmul %5, %299, %cst_165 {dimension_numbers = #tpu.dot_dimension_numbers<[1], [0], [0], [1], [0, 0, 1, 1], [], []>} : vector<16x16xf32>, vector<16x16xf32>, vector<16x16xf32> -> vector<16x16xf32>
    %347 = arith.mulf %346, %269 : vector<16x16xf32>
    %cst_166 = arith.constant dense<0.000000e+00> : vector<16x16xf32>
    %348 = tpu.matmul %5, %302, %cst_166 {dimension_numbers = #tpu.dot_dimension_numbers<[1], [0], [0], [1], [0, 0, 1, 1], [], []>} : vector<16x16xf32>, vector<16x16xf32>, vector<16x16xf32> -> vector<16x16xf32>
    %349 = arith.addf %347, %348 : vector<16x16xf32>
    %cst_167 = arith.constant 2.500000e-01 : f32
    %350 = vector.broadcast %cst_167 : f32 to vector<16x16xf32>
    %351 = arith.mulf %349, %350 : vector<16x16xf32>
    %352 = arith.subf %351, %269 : vector<16x16xf32>
    %353 = math.absf %352 : vector<16x16xf32>
    %354 = arith.cmpf olt, %353, %345 : vector<16x16xf32>
    %355 = arith.select %354, %352, %344 : vector<16x16xi1>, vector<16x16xf32>
    %356 = arith.select %354, %353, %345 : vector<16x16xi1>, vector<16x16xf32>
    %cst_168 = arith.constant dense<0.000000e+00> : vector<16x16xf32>
    %357 = tpu.matmul %5, %300, %cst_168 {dimension_numbers = #tpu.dot_dimension_numbers<[1], [0], [0], [1], [0, 0, 1, 1], [], []>} : vector<16x16xf32>, vector<16x16xf32>, vector<16x16xf32> -> vector<16x16xf32>
    %358 = arith.mulf %357, %269 : vector<16x16xf32>
    %cst_169 = arith.constant dense<0.000000e+00> : vector<16x16xf32>
    %359 = tpu.matmul %5, %303, %cst_169 {dimension_numbers = #tpu.dot_dimension_numbers<[1], [0], [0], [1], [0, 0, 1, 1], [], []>} : vector<16x16xf32>, vector<16x16xf32>, vector<16x16xf32> -> vector<16x16xf32>
    %360 = arith.addf %358, %359 : vector<16x16xf32>
    %cst_170 = arith.constant 2.500000e-01 : f32
    %361 = vector.broadcast %cst_170 : f32 to vector<16x16xf32>
    %362 = arith.mulf %360, %361 : vector<16x16xf32>
    %363 = arith.subf %362, %269 : vector<16x16xf32>
    %364 = math.absf %363 : vector<16x16xf32>
    %365 = arith.cmpf olt, %364, %356 : vector<16x16xf32>
    %366 = arith.select %365, %363, %355 : vector<16x16xi1>, vector<16x16xf32>
    %367 = arith.select %365, %364, %356 : vector<16x16xi1>, vector<16x16xf32>
    %cst_171 = arith.constant dense<0.000000e+00> : vector<16x16xf32>
    %368 = tpu.matmul %6, %299, %cst_171 {dimension_numbers = #tpu.dot_dimension_numbers<[1], [0], [0], [1], [0, 0, 1, 1], [], []>} : vector<16x16xf32>, vector<16x16xf32>, vector<16x16xf32> -> vector<16x16xf32>
    %369 = arith.mulf %368, %269 : vector<16x16xf32>
    %cst_172 = arith.constant dense<0.000000e+00> : vector<16x16xf32>
    %370 = tpu.matmul %6, %302, %cst_172 {dimension_numbers = #tpu.dot_dimension_numbers<[1], [0], [0], [1], [0, 0, 1, 1], [], []>} : vector<16x16xf32>, vector<16x16xf32>, vector<16x16xf32> -> vector<16x16xf32>
    %371 = arith.addf %369, %370 : vector<16x16xf32>
    %cst_173 = arith.constant 2.500000e-01 : f32
    %372 = vector.broadcast %cst_173 : f32 to vector<16x16xf32>
    %373 = arith.mulf %371, %372 : vector<16x16xf32>
    %374 = arith.subf %373, %269 : vector<16x16xf32>
    %375 = math.absf %374 : vector<16x16xf32>
    %376 = arith.cmpf olt, %375, %367 : vector<16x16xf32>
    %377 = arith.select %376, %374, %366 : vector<16x16xi1>, vector<16x16xf32>
    %378 = arith.select %376, %375, %367 : vector<16x16xi1>, vector<16x16xf32>
    %cst_174 = arith.constant dense<0.000000e+00> : vector<16x16xf32>
    %379 = tpu.matmul %6, %300, %cst_174 {dimension_numbers = #tpu.dot_dimension_numbers<[1], [0], [0], [1], [0, 0, 1, 1], [], []>} : vector<16x16xf32>, vector<16x16xf32>, vector<16x16xf32> -> vector<16x16xf32>
    %380 = arith.mulf %379, %269 : vector<16x16xf32>
    %cst_175 = arith.constant dense<0.000000e+00> : vector<16x16xf32>
    %381 = tpu.matmul %6, %303, %cst_175 {dimension_numbers = #tpu.dot_dimension_numbers<[1], [0], [0], [1], [0, 0, 1, 1], [], []>} : vector<16x16xf32>, vector<16x16xf32>, vector<16x16xf32> -> vector<16x16xf32>
    %382 = arith.addf %380, %381 : vector<16x16xf32>
    %cst_176 = arith.constant 2.500000e-01 : f32
    %383 = vector.broadcast %cst_176 : f32 to vector<16x16xf32>
    %384 = arith.mulf %382, %383 : vector<16x16xf32>
    %385 = arith.subf %384, %269 : vector<16x16xf32>
    %386 = math.absf %385 : vector<16x16xf32>
    %387 = arith.cmpf olt, %386, %378 : vector<16x16xf32>
    %388 = arith.select %387, %385, %377 : vector<16x16xi1>, vector<16x16xf32>
    %389 = arith.addf %388, %269 : vector<16x16xf32>
    %cst_177 = arith.constant 0.000000e+00 : f32
    %cst_178 = arith.constant 2.550000e+02 : f32
    %390 = vector.broadcast %cst_177 : f32 to vector<16x16xf32>
    %391 = arith.maximumf %390, %389 : vector<16x16xf32>
    %392 = vector.broadcast %cst_178 : f32 to vector<16x16xf32>
    %393 = arith.minimumf %392, %391 : vector<16x16xf32>
    %394 = math.floor %393 : vector<16x16xf32>
    %c0_179 = arith.constant 0 : index
    %c2_180 = arith.constant 2 : index
    %c0_181 = arith.constant 0 : index
    %c0_182 = arith.constant 0 : index
    %395 = vector.load %arg11[%c0_179, %c2_180, %c0_181, %c0_182] : memref<1x3x16x16xf32, #tpu.memory_space<vmem>>, vector<1x1x16x16xf32>
    %396 = vector.shape_cast %395 : vector<1x1x16x16xf32> to vector<16x16xf32>
    %397 = vector.shape_cast %394 : vector<16x16xf32> to vector<1x1x16x16xf32>
    tpu.vector_store %arg11[%c0_179, %c2_180, %c0_181, %c0_182], %397 {strides = array<i32>} : memref<1x3x16x16xf32, #tpu.memory_space<vmem>>, vector<1x1x16x16xf32>,
    return
  }
  func.func @transform_0(%arg0: i32) -> (i32, i32, i32, i32) {
    %c0_i32 = arith.constant 0 : i32
    %c0_i32_0 = arith.constant 0 : i32
    %c0_i32_1 = arith.constant 0 : i32
    %c0_i32_2 = arith.constant 0 : i32
    %c0_i32_3 = arith.constant 0 : i32
    return %c0_i32, %c0_i32_0, %c0_i32_1, %c0_i32_2 : i32, i32, i32, i32
  }
  func.func @transform_1(%arg0: i32) -> (i32, i32, i32, i32) {
    %c0_i32 = arith.constant 0 : i32
    %c0_i32_0 = arith.constant 0 : i32
    %c0_i32_1 = arith.constant 0 : i32
    %c0_i32_2 = arith.constant 0 : i32
    %c0_i32_3 = arith.constant 0 : i32
    return %c0_i32, %c0_i32_0, %c0_i32_1, %c0_i32_2 : i32, i32, i32, i32
  }
  func.func @transform_2(%arg0: i32) -> (i32, i32) {
    %c0_i32 = arith.constant 0 : i32
    %c0_i32_0 = arith.constant 0 : i32
    %c0_i32_1 = arith.constant 0 : i32
    return %c0_i32, %c0_i32_0 : i32, i32
  }
  func.func @transform_3(%arg0: i32) -> (i32, i32) {
    %c0_i32 = arith.constant 0 : i32
    %c0_i32_0 = arith.constant 0 : i32
    %c0_i32_1 = arith.constant 0 : i32
    return %c0_i32, %c0_i32_0 : i32, i32
  }
  func.func @transform_4(%arg0: i32) -> (i32, i32) {
    %c0_i32 = arith.constant 0 : i32
    %c0_i32_0 = arith.constant 0 : i32
    %c0_i32_1 = arith.constant 0 : i32
    return %c0_i32, %c0_i32_0 : i32, i32
  }
  func.func @transform_5(%arg0: i32) -> (i32, i32) {
    %c0_i32 = arith.constant 0 : i32
    %c0_i32_0 = arith.constant 0 : i32
    %c0_i32_1 = arith.constant 0 : i32
    return %c0_i32, %c0_i32_0 : i32, i32
  }
  func.func @transform_6(%arg0: i32) -> (i32, i32) {
    %c0_i32 = arith.constant 0 : i32
    %c0_i32_0 = arith.constant 0 : i32
    %c0_i32_1 = arith.constant 0 : i32
    return %c0_i32, %c0_i32_0 : i32, i32
  }
  func.func @transform_7(%arg0: i32) -> (i32, i32) {
    %c0_i32 = arith.constant 0 : i32
    %c0_i32_0 = arith.constant 0 : i32
    %c0_i32_1 = arith.constant 0 : i32
    return %c0_i32, %c0_i32_0 : i32, i32
  }
  func.func @transform_8(%arg0: i32) -> (i32, i32) {
    %c0_i32 = arith.constant 0 : i32
    %c0_i32_0 = arith.constant 0 : i32
    %c0_i32_1 = arith.constant 0 : i32
    return %c0_i32, %c0_i32_0 : i32, i32
  }
  func.func @transform_9(%arg0: i32) -> (i32, i32) {
    %c0_i32 = arith.constant 0 : i32
    %c0_i32_0 = arith.constant 0 : i32
    %c0_i32_1 = arith.constant 0 : i32
    return %c0_i32, %c0_i32_0 : i32, i32
  }
  func.func @transform_10(%arg0: i32) -> (i32, i32, i32, i32) {
    %c0_i32 = arith.constant 0 : i32
    %c0_i32_0 = arith.constant 0 : i32
    %c0_i32_1 = arith.constant 0 : i32
    %c0_i32_2 = arith.constant 0 : i32
    %c0_i32_3 = arith.constant 0 : i32
    return %c0_i32, %c0_i32_0, %c0_i32_1, %c0_i32_2 : i32, i32, i32, i32
  }
}

</mosaic_0001>

<bundles_post_ra>
// kernel: tpu_custom_call.1
= control target key start
LH: loop header
LB: loop body
LE: loop exit
PB: predicated region body
PF: predicated region fallthrough
CT: control target
= control target key end

     0   :  { %15 = vsyncpa [#allocation3], 0  ;;  %s4462_s0 = inlined_call_operand.hbm [shape: f32[1,3,16,16], index: 0, kind: input, shape index: {}]   ;;  %s4463_s1 = inlined_call_operand.hbm [shape: f32[1,3,16,16], index: 1, kind: input, shape index: {}]   ;;  %s4464_s2 = inlined_call_operand.hbm [shape: f32[16,16], index: 2, kind: input, shape index: {}]   ;;  %s4465_s3 = inlined_call_operand.hbm [shape: f32[16,16], index: 3, kind: input, shape index: {}]   ;;  %s4466_s4 = inlined_call_operand.hbm [shape: f32[16,16], index: 4, kind: input, shape index: {}]   ;;  %s4467_s5 = inlined_call_operand.hbm [shape: f32[16,16], index: 5, kind: input, shape index: {}]   ;;  %s4468_s6 = inlined_call_operand.hbm [shape: f32[16,16], index: 6, kind: input, shape index: {}]   ;;  %s4469_s7 = inlined_call_operand.hbm [shape: f32[16,16], index: 7, kind: input, shape index: {}]   ;;  %s4470_s8 = inlined_call_operand.hbm [shape: f32[16,16], index: 8, kind: input, shape index: {}]   ;;  %s4471_s9 = inlined_call_operand.hbm [shape: f32[16,16], index: 9, kind: input, shape index: {}]   ;;  %s4472_s10 = inlined_call_operand.hbm [shape: f32[1,3,16,16], index: 10, kind: output, shape index: {}]  }
   0x1   :  { %16 = vsyncpa [#allocation6], 0 }
   0x2   :  { %17 = vsyncpa [#allocation9], 0 }
   0x3   :  { %18 = vsyncpa [#allocation12], 0 }
   0x4   :  { %19 = vsyncpa [#allocation15], 0 }
   0x5   :  { %20 = vsyncpa [#allocation18], 0 }
   0x6   :  { %21 = vsyncpa [#allocation4], 0  ;;  %s39_s15 = sshll.u32 %s4463_s1, 4  ;;  %s3517_s16 = smov [#allocation5]   ;;  %s40_s15 = int_to_ptr.hbm [resolvable:$true] %s39_s15 }
   0x7   :  { %s41_s17 = sshll.u32 %s3517_s16, 4  ;;  %s65_s20 = sshll.u32 %s4465_s3, 4  ;;  %s42_s17 = int_to_ptr.vmem [resolvable:$true] %s41_s17  ;;  %s66_s20 = int_to_ptr.hbm [resolvable:$true] %s65_s20 }
   0x8   :  { %s3518_s21 = smov 128   ;;  %s3519_s22 = smov 8  }
   0x9   :  { %47 = dma.hbm_to_vmem [thread:$0]  %s40_s15, 768, %s42_s17, [#allocation6], %s3518_s21, %s3518_s21, %s3519_s22  }
   0xa   :  { %s3520_s23 = smov [#allocation8]   ;;  %s91_s1 = sshll.u32 %s4467_s5, 4  ;;  %s92_s1 = int_to_ptr.hbm [resolvable:$true] %s91_s1 }
   0xb   :  { %s67_s24 = sshll.u32 %s3520_s23, 4  ;;  %s117_s28 = sshll.u32 %s4469_s7, 4  ;;  %s68_s24 = int_to_ptr.vmem [resolvable:$true] %s67_s24  ;;  %s118_s28 = int_to_ptr.hbm [resolvable:$true] %s117_s28 }
   0xc   :  { %73 = dma.hbm_to_vmem [thread:$0]  %s66_s20, 256, %s68_s24, [#allocation9], %s3518_s21, %s3518_s21, %s3519_s22  }
   0xd   :  { %s3521_s29 = smov [#allocation11]   ;;  %s3522_s11 = smov [#allocation14]  }
   0xe   :  { %s93_s30 = sshll.u32 %s3521_s29, 4  ;;  %s119_s5 = sshll.u32 %s3522_s11, 4  ;;  %s94_s30 = int_to_ptr.vmem [resolvable:$true] %s93_s30  ;;  %s120_s5 = int_to_ptr.vmem [resolvable:$true] %s119_s5 }
   0xf   :  { %99 = dma.hbm_to_vmem [thread:$0]  %s92_s1, 256, %s94_s30, [#allocation12], %s3518_s21, %s3518_s21, %s3519_s22  }
  0x10   :  { %s26_s14 = sshll.u32 %s4462_s0, 4  ;;  %s52_s16 = sshll.u32 %s4464_s2, 4  ;;  %s27_s14 = int_to_ptr.hbm [resolvable:$true] %s26_s14  ;;  %s53_s16 = int_to_ptr.hbm [resolvable:$true] %s52_s16 }
  0x11   :  { %125 = dma.hbm_to_vmem [thread:$0]  %s118_s28, 256, %s120_s5, [#allocation15], %s3518_s21, %s3518_s21, %s3519_s22  }
  0x12   :  { %s3523_s17 = smov [#allocation2]   ;;  %s3524_s19 = smov [#allocation7]  }
  0x13   :  { %s28_s18 = sshll.u32 %s3523_s17, 4  ;;  %s54_s0 = sshll.u32 %s3524_s19, 4  ;;  %s29_s18 = int_to_ptr.vmem [resolvable:$true] %s28_s18  ;;  %s55_s0 = int_to_ptr.vmem [resolvable:$true] %s54_s0 }
  0x14   :  { %34 = dma.hbm_to_vmem [thread:$0]  %s27_s14, 768, %s29_s18, [#allocation3], %s3518_s21, %s3518_s21, %s3519_s22  }
  0x15   :  { %s78_s24 = sshll.u32 %s4466_s4, 4  ;;  %s104_s26 = sshll.u32 %s4468_s6, 4  ;;  %s79_s24 = int_to_ptr.hbm [resolvable:$true] %s78_s24  ;;  %s105_s26 = int_to_ptr.hbm [resolvable:$true] %s104_s26 }
  0x16   :  { %60 = dma.hbm_to_vmem [thread:$0]  %s53_s16, 256, %s55_s0, [#allocation6], %s3518_s21, %s3518_s21, %s3519_s22  }
  0x17   :  { %s3525_s1 = smov [#allocation10]   ;;  %s3526_s27 = smov [#allocation13]  }
  0x18   :  { %s80_s3 = sshll.u32 %s3525_s1, 4  ;;  %s106_s4 = sshll.u32 %s3526_s27, 4  ;;  %s81_s3 = int_to_ptr.vmem [resolvable:$true] %s80_s3  ;;  %s107_s4 = int_to_ptr.vmem [resolvable:$true] %s106_s4 }
  0x19   :  { %86 = dma.hbm_to_vmem [thread:$0]  %s79_s24, 256, %s81_s3, [#allocation9], %s3518_s21, %s3518_s21, %s3519_s22  }
  0x1a   :  { %s130_s30 = sshll.u32 %s4470_s8, 4  ;;  %s143_s5 = sshll.u32 %s4471_s9, 4  ;;  %s131_s30 = int_to_ptr.hbm [resolvable:$true] %s130_s30  ;;  %s144_s5 = int_to_ptr.hbm [resolvable:$true] %s143_s5 }
  0x1b   :  { %112 = dma.hbm_to_vmem [thread:$0]  %s105_s26, 256, %s107_s4, [#allocation12], %s3518_s21, %s3518_s21, %s3519_s22  }
  0x1c   :  { %s3527_s12 = smov [#allocation16]   ;;  %s3528_s14 = smov [#allocation17]  }
  0x1d   :  { %s132_s13 = sshll.u32 %s3527_s12, 4  ;;  %s145_s8 = sshll.u32 %s3528_s14, 4  ;;  %s133_s13 = int_to_ptr.vmem [resolvable:$true] %s132_s13  ;;  %s146_s8 = int_to_ptr.vmem [resolvable:$true] %s145_s8 }
  0x1e   :  { %138 = dma.hbm_to_vmem [thread:$0]  %s131_s30, 256, %s133_s13, [#allocation15], %s3518_s21, %s3518_s21, %s3519_s22  }
  0x1f   :  { %151 = dma.hbm_to_vmem [thread:$0]  %s144_s5, 256, %s146_s8, [#allocation18], %s3518_s21, %s3518_s21, %s3519_s22  }
  0x20   :  { %3503 = dma.done.wait [#allocation3], 768  }
  0x21   :  { %3504 = vsyncadd [#allocation3], 4294966528 }
  0x22   :  { %3505 = dma.done.wait [#allocation6], 1024  }
  0x23   :  { %3506 = vsyncadd [#allocation6], 4294966272 }
  0x24   :  { %3507 = dma.done.wait [#allocation9], 512  }
  0x25   :  { %3508 = vsyncadd [#allocation9], 4294966784 }
  0x26   :  { %3509 = dma.done.wait [#allocation12], 512  }
  0x27   :  { %3510 = vsyncadd [#allocation12], 4294966784 }
  0x28   :  { %3511 = dma.done.wait [#allocation15], 512  }
  0x29   :  { %3512 = vsyncadd [#allocation15], 4294966784 }
  0x2a   :  { %3513 = dma.done.wait [#allocation18], 256  }
  0x2b   :  { %3514 = vsyncadd [#allocation18], 4294967040  ;;  %v3645_v0 = vld [vmem:[#allocation7 + $0x8] sm:$0xff]  ;;  %v3647_v1 = vld [vmem:[#allocation7] sm:$0xff]  ;;  %vm212_vm0 = vcmask 130048   ;;  %s3529_s9 = smov [#allocation19]  }
  0x2c   :  { %3191 = vmatpush.msra.mxu2 %v3645_v0  ;;  %v3650_v2 = vld [vmem:[#allocation2 + $0x8] sm:$0xff]  ;;  %v3652_v3 = vld [vmem:[#allocation2] sm:$0xff]  ;;  %233 = vmatpush.msra.mxu0 %v3645_v0  ;;  %v210_v4 = vld [vmem:[#allocation5] sm:$0xff]  ;;  %s2991_s7 = sshll.u32 %s3529_s9, 4  ;;  %s2993_s17 = sshll.u32 %s4472_s10, 4  ;;  %s2992_s7 = int_to_ptr.vmem [resolvable:$true] %s2991_s7  ;;  %s2994_s17 = int_to_ptr.hbm [resolvable:$true] %s2993_s17 }
  0x2d   :  { %v327_v5 = vmul.f32 %v210_v4, %v3652_v3  ;;  %v211_v6 = vld [vmem:[#allocation5 + $0x8] sm:$0xff]  ;;  %v383_v8 = vmul.f32 %v3652_v3, %v3652_v3  ;;  %v384_v9 = vmul.f32 %v3650_v2, %v3650_v2  ;;  %v3681_v13 = vld [vmem:[#allocation8] sm:$0xff]  ;;  %v3699_v22 = vld [vmem:[#allocation10 + $0x8] sm:$0xff] }
  0x2e   :  { %3192 = vmatpush.msra.mxu2 %v3647_v1  ;;  %234 = vmatpush.msra.mxu0 %v3647_v1  ;;  %v328_v7 = vmul.f32 %v211_v6, %v3650_v2  ;;  %v3679_v12 = vld [vmem:[#allocation8 + $0x8] sm:$0xff]  ;;  %v3703_v24 = vld [vmem:[#allocation13 + $0x8] sm:$0xff]  ;;  %v3708_v26 = vld [vmem:[#allocation10] sm:$0xff] }
  0x2f   :  { %3012 = vmatmul.msk.f32.vlgmr.msra.gmra.mxu2 %vm212_vm0, %v3650_v2  ;;  %3011 = vmatmul.msk.f32.vlgmr.msra.gmra.mxu0 %vm212_vm0, %v3652_v3  ;;  %v3701_v23 = vld [vmem:[#allocation11 + $0x8] sm:$0xff]  ;;  %v3710_v27 = vld [vmem:[#allocation11] sm:$0xff]  ;;  %v3712_v28 = vld [vmem:[#allocation13] sm:$0xff] }
  0x30   :  { %293 = vmatpush.msrb.mxu2 %v3645_v0  ;;  %349 = vmatpush.msrb.mxu0 %v3645_v0 }
  0x32   :  { %294 = vmatpush.msrb.mxu2 %v3647_v1  ;;  %350 = vmatpush.msrb.mxu0 %v3647_v1 }
  0x34   :  { %405 = vmatpush.msra.mxu2 %v3645_v0  ;;  %503 = vmatpush.msra.mxu0 %v3699_v22 }
  0x36   :  { %406 = vmatpush.msra.mxu2 %v3647_v1  ;;  %504 = vmatpush.msra.mxu0 %v3708_v26 }
  0x37   :  { %3015 = vmatmul.msk.f32.vlgmr.msrb.gmra.mxu2 %vm212_vm0, %v210_v4  ;;  %3019 = vmatmul.msk.f32.vlgmr.msrb.gmra.mxu0 %vm212_vm0, %v327_v5 }
  0x38   :  { %549 = vmatpush.msrb.mxu2 %v3703_v24  ;;  %601 = vmatpush.msrb.mxu0 %v3701_v23 }
  0x3a   :  { %550 = vmatpush.msrb.mxu2 %v3712_v28  ;;  %602 = vmatpush.msrb.mxu0 %v3710_v27 }
  0x3f   :  { %3016 = vmatmul.msk.f32.gmra.mxu2 %vm212_vm0, %v211_v6  ;;  %3020 = vmatmul.msk.f32.gmra.mxu0 %vm212_vm0, %v328_v7 }
  0x47   :  { %3023 = vmatmul.msk.f32.vlgmr.msra.gmra.mxu2 %vm212_vm0, %v383_v8 }
  0x4f   :  { %3024 = vmatmul.msk.f32.gmra.mxu2 %vm212_vm0, %v384_v9 }
  0xac   :  { %v236_v10 = vpop.f32.mrf.mxu0 }
  0xb2   :  { %v239_v11 = vpop.f32.mrf.mxu2 }
  0xb3   :  { %262 = vmatpush.msra.mxu1 %v239_v11  ;;  %3193 = vmatpush.msra.mxu3 %v239_v11 }
  0xb4   :  { %v352_v14 = vpop.f32.mrf.mxu0 }
  0xb5   :  { %263 = vmatpush.msra.mxu1 %v236_v10  ;;  %3194 = vmatpush.msra.mxu3 %v236_v10 }
  0xb6   :  { %3014 = vmatmul.msk.f32.vlgmr.msra.gmra.mxu3 %vm212_vm0, %v3679_v12  ;;  %3013 = vmatmul.msk.f32.vlgmr.msra.gmra.mxu1 %vm212_vm0, %v3681_v13 }
  0xba   :  { %v296_v15 = vpop.f32.mrf.mxu2 }
  0xbc   :  { %v355_v16 = vpop.f32.mrf.mxu0 }
  0xbd   :  { %372 = vmatpush.msrb.mxu1 %v355_v16 }
  0xbf   :  { %373 = vmatpush.msrb.mxu1 %v352_v14 }
  0xc0   :  { %3021 = vmatmul.msk.f32.vlgmr.msrb.gmra.mxu1 %vm212_vm0, %v3681_v13 }
  0xc1   :  { %526 = vmatpush.msra.mxu1 %v3701_v23 }
  0xc2   :  { %v299_v17 = vpop.f32.mrf.mxu2 }
  0xc3   :  { %316 = vmatpush.msrb.mxu3 %v299_v17  ;;  %527 = vmatpush.msra.mxu1 %v3710_v27 }
  0xc5   :  { %317 = vmatpush.msrb.mxu3 %v296_v15  ;;  %624 = vmatpush.msrb.mxu1 %v3703_v24 }
  0xc6   :  { %3017 = vmatmul.msk.f32.vlgmr.msrb.gmra.mxu3 %vm212_vm0, %v3681_v13 }
  0xc7   :  { %625 = vmatpush.msrb.mxu1 %v3712_v28 }
  0xc8   :  { %3022 = vmatmul.msk.f32.gmra.mxu1 %vm212_vm0, %v3679_v12 }
  0xca   :  { %v408_v18 = vpop.f32.mrf.mxu2 }
  0xce   :  { %3018 = vmatmul.msk.f32.gmra.mxu3 %vm212_vm0, %v3679_v12 }
  0xd2   :  { %v411_v19 = vpop.f32.mrf.mxu2 }
  0xd3   :  { %428 = vmatpush.msra.mxu3 %v411_v19 }
  0xd5   :  { %429 = vmatpush.msra.mxu3 %v408_v18 }
  0xd6   :  { %3025 = vmatmul.msk.f32.vlgmr.msra.gmra.mxu3 %vm212_vm0, %v3681_v13 }
  0xd7   :  { %578 = vmatpush.msrb.mxu3 %v3699_v22 }
  0xd9   :  { %579 = vmatpush.msrb.mxu3 %v3708_v26 }
  0xde   :  { %3026 = vmatmul.msk.f32.gmra.mxu3 %vm212_vm0, %v3679_v12 }
 0x133   :  { %v265_v29 = vpop.f32.mrf.mxu1 }
 0x134   :  { %v271_v30 = vmul.f32 0.11111111, %v265_v29 }
 0x136   :  { %v443_v31 = vmul.f32 %v271_v30, %v271_v30 }
 0x139   :  { %v268_v20 = vpop.f32.mrf.mxu3 }
 0x13a   :  { %v272_v35 = vmul.f32 0.11111111, %v268_v20 }
 0x13c   :  { %v444_v39 = vmul.f32 %v272_v35, %v272_v35 }
 0x13d   :  { %v375_v41 = vpop.f32.mrf.mxu1 }
 0x13e   :  { %v381_v47 = vmul.f32 0.11111111, %v375_v41  ;;  %v3751_v41 = vld [vmem:[#allocation16] sm:$0xff] }
 0x145   :  { %v378_v57 = vpop.f32.mrf.mxu1 }
 0x146   :  { %v382_v4 = vmul.f32 0.11111111, %v378_v57 }
 0x149   :  { %v319_v21 = vpop.f32.mrf.mxu3 }
 0x14a   :  { %v325_v44 = vmul.f32 0.11111111, %v319_v21 }
 0x14c   :  { %v439_v49 = vmul.f32 %v325_v44, %v271_v30 }
 0x14e   :  { %v441_v56 = vsub.f32 %v381_v47, %v439_v49 }
 0x151   :  { %v322_v25 = vpop.f32.mrf.mxu3 }
 0x152   :  { %v326_v54 = vmul.f32 0.11111111, %v322_v25 }
 0x154   :  { %v440_v63 = vmul.f32 %v326_v54, %v272_v35 }
 0x156   :  { %v442_v14 = vsub.f32 %v382_v4, %v440_v63 }
 0x159   :  { %v431_v32 = vpop.f32.mrf.mxu3 }
 0x15a   :  { %v437_v33 = vmul.f32 0.11111111, %v431_v32 }
 0x15c   :  { %v445_v34 = vsub.f32 %v437_v33, %v443_v31  ;;  %v3735_v31 = vld [vmem:[#allocation17] sm:$0xff] }
 0x15e   :  { %v447_v36 = vadd.f32 0.0001, %v445_v34 }
 0x160   :  { %3208 = vrcp.f32 %v447_v36  ;;  %v460_v48 = vand.u32 2147483648, %v447_v36  ;;  %v458_v51 = vand.u32 2147483647, %v447_v36  ;;  %vm454_vm2 = vweird.f32 %v447_v36 }
 0x161   :  { %v434_v37 = vpop.f32.mrf.mxu3 }
 0x162   :  { %v438_v38 = vmul.f32 0.11111111, %v434_v37  ;;  %v461_v55 = vor.u32 1.1754944e-38, %v460_v48  ;;  %vm459_vm4 = vcmp.eq.f32.partialorder %v458_v51, 8.507059e+37 }
 0x164   :  { %v446_v40 = vsub.f32 %v438_v38, %v444_v39 }
 0x166   :  { %v3209_v42 = vpop.eup %3208  ;;  %v448_v43 = vadd.f32 0.0001, %v446_v40  ;;  %v3749_v40 = vld [vmem:[#allocation14] sm:$0xff] }
 0x167   :  { %v450_v45 = vmul.f32 %v3209_v42, %v447_v36  ;;  %vm455_vm1 = vweird.f32 %v3209_v42  ;;  %v3741_v36 = vld [vmem:[#allocation17 + $0x8] sm:$0xff] }
 0x168   :  { %3210 = vrcp.f32 %v448_v43  ;;  %vm456_vm3 = vmor %vm454_vm2, %vm455_vm1  ;;  %v475_v5 = vand.u32 2147483648, %v448_v43  ;;  %v473_v8 = vand.u32 2147483647, %v448_v43  ;;  %vm469_vm6 = vweird.f32 %v448_v43 }
 0x169   :  { %v451_v46 = vsub.f32 1.0, %v450_v45  ;;  %v1154_v45 = vld [vmem:[#allocation5 + $0x18] sm:$0xff] }
 0x16a   :  { %v476_v11 = vor.u32 1.1754944e-38, %v475_v5  ;;  %vm474_vm8 = vcmp.eq.f32.partialorder %v473_v8, 8.507059e+37 }
 0x16b   :  { %v452_v50 = vmul.f32 %v3209_v42, %v451_v46 }
 0x16d   :  { %v453_v52 = vadd.f32 %v3209_v42, %v452_v50 }
 0x16e   :  { %v3211_v53 = vpop.eup %3210 }
 0x16f   :  { %v465_v58 = vmul.f32 %v3211_v53, %v448_v43  ;;  %v457_v59 = vsel %vm456_vm3, %v3209_v42, %v453_v52  ;;  %vm470_vm5 = vweird.f32 %v3211_v53  ;;  %v3761_v42 = vld [vmem:[#allocation14 + $0x8] sm:$0xff]  ;;  %v3763_v43 = vld [vmem:[#allocation16 + $0x8] sm:$0xff] }
 0x170   :  { %v462_v60 = vsel %vm459_vm4, %v461_v55, %v457_v59  ;;  %vm471_vm7 = vmor %vm469_vm6, %vm470_vm5 }
 0x171   :  { %v466_v61 = vsub.f32 1.0, %v465_v58  ;;  %v463_v62 = vmul.f32 %v462_v60, %v441_v56 }
 0x173   :  { %3027 = vmatmul.msk.f32.vlgmr.msra.gmra.mxu0 %vm212_vm0, %v463_v62  ;;  %3029 = vmatmul.msk.f32.vlgmr.msra.gmra.mxu1 %vm212_vm0, %v463_v62  ;;  %v479_v6 = vmul.f32 %v463_v62, %v271_v30  ;;  %v467_v7 = vmul.f32 %v3211_v53, %v466_v61 }
 0x174   :  { %3031 = vmatmul.msk.f32.vlgmr.msrb.gmra.mxu2 %vm212_vm0, %v463_v62 }
 0x175   :  { %v481_v9 = vsub.f32 %v325_v44, %v479_v6  ;;  %v468_v10 = vadd.f32 %v3211_v53, %v467_v7  ;;  %v1153_v44 = vld [vmem:[#allocation5 + $0x10] sm:$0xff] }
 0x177   :  { %3033 = vmatmul.msk.f32.vlgmr.msrb.gmra.mxu3 %vm212_vm0, %v481_v9  ;;  %v472_v15 = vsel %vm471_vm7, %v3211_v53, %v468_v10 }
 0x178   :  { %v477_v16 = vsel %vm474_vm8, %v476_v11, %v472_v15 }
 0x179   :  { %v478_v17 = vmul.f32 %v477_v16, %v442_v14 }
 0x17b   :  { %3028 = vmatmul.msk.f32.gmra.mxu0 %vm212_vm0, %v478_v17  ;;  %3030 = vmatmul.msk.f32.gmra.mxu1 %vm212_vm0, %v478_v17  ;;  %v480_v18 = vmul.f32 %v478_v17, %v272_v35 }
 0x17c   :  { %3032 = vmatmul.msk.f32.gmra.mxu2 %vm212_vm0, %v478_v17 }
 0x17d   :  { %v482_v19 = vsub.f32 %v326_v54, %v480_v18 }
 0x17f   :  { %3034 = vmatmul.msk.f32.gmra.mxu3 %vm212_vm0, %v482_v19 }
 0x183   :  { %3035 = vmatmul.msk.f32.vlgmr.msrb.gmra.mxu0 %vm212_vm0, %v481_v9  ;;  %3037 = vmatmul.msk.f32.vlgmr.msrb.gmra.mxu1 %vm212_vm0, %v481_v9 }
 0x18b   :  { %3036 = vmatmul.msk.f32.gmra.mxu0 %vm212_vm0, %v482_v19  ;;  %3038 = vmatmul.msk.f32.gmra.mxu1 %vm212_vm0, %v482_v19 }
 0x1f0   :  { %v506_v20 = vpop.f32.mrf.mxu0  ;;  %v529_v21 = vpop.f32.mrf.mxu1 }
 0x1f7   :  { %v552_v25 = vpop.f32.mrf.mxu2 }
 0x1f8   :  { %v509_v29 = vpop.f32.mrf.mxu0  ;;  %v532_v30 = vpop.f32.mrf.mxu1 }
 0x1f9   :  { %653 = vmatpush.msra.mxu2 %v509_v29  ;;  %709 = vmatpush.msra.mxu0 %v532_v30 }
 0x1fa   :  { %v581_v32 = vpop.f32.mrf.mxu3 }
 0x1fb   :  { %654 = vmatpush.msra.mxu2 %v506_v20  ;;  %710 = vmatpush.msra.mxu0 %v529_v21 }
 0x1fc   :  { %3039 = vmatmul.msk.f32.vlgmr.msra.gmra.mxu2 %vm212_vm0, %v3735_v31  ;;  %3043 = vmatmul.msk.f32.vlgmr.msra.gmra.mxu0 %vm212_vm0, %v3735_v31 }
 0x1ff   :  { %v555_v33 = vpop.f32.mrf.mxu2 }
 0x200   :  { %777 = vmatpush.msrb.mxu2 %v555_v33  ;;  %845 = vmatpush.msrb.mxu0 %v555_v33  ;;  %v604_v34 = vpop.f32.mrf.mxu0  ;;  %v627_v35 = vpop.f32.mrf.mxu1 }
 0x202   :  { %778 = vmatpush.msrb.mxu2 %v552_v25  ;;  %846 = vmatpush.msrb.mxu0 %v552_v25  ;;  %v584_v37 = vpop.f32.mrf.mxu3 }
 0x203   :  { %678 = vmatpush.msra.mxu3 %v584_v37 }
 0x204   :  { %907 = vmatpush.msra.mxu2 %v509_v29  ;;  %969 = vmatpush.msra.mxu0 %v532_v30 }
 0x205   :  { %3040 = vmatmul.msk.f32.gmra.mxu2 %vm212_vm0, %v3741_v36  ;;  %3044 = vmatmul.msk.f32.gmra.mxu0 %vm212_vm0, %v3741_v36 }
 0x206   :  { %908 = vmatpush.msra.mxu2 %v506_v20  ;;  %970 = vmatpush.msra.mxu0 %v529_v21 }
 0x207   :  { %679 = vmatpush.msra.mxu3 %v581_v32 }
 0x208   :  { %3041 = vmatmul.msk.f32.vlgmr.msra.gmra.mxu3 %vm212_vm0, %v3735_v31  ;;  %v607_v38 = vpop.f32.mrf.mxu0  ;;  %v630_v39 = vpop.f32.mrf.mxu1 }
 0x209   :  { %734 = vmatpush.msra.mxu1 %v607_v38  ;;  %802 = vmatpush.msrb.mxu3 %v630_v39 }
 0x20b   :  { %735 = vmatpush.msra.mxu1 %v604_v34  ;;  %803 = vmatpush.msrb.mxu3 %v627_v35 }
 0x20c   :  { %3045 = vmatmul.msk.f32.vlgmr.msra.gmra.mxu1 %vm212_vm0, %v3735_v31 }
 0x20d   :  { %3047 = vmatmul.msk.f32.vlgmr.msrb.gmra.mxu2 %vm212_vm0, %v3749_v40  ;;  %3051 = vmatmul.msk.f32.vlgmr.msrb.gmra.mxu0 %vm212_vm0, %v3751_v41 }
 0x20e   :  { %870 = vmatpush.msrb.mxu1 %v630_v39  ;;  %932 = vmatpush.msra.mxu3 %v584_v37 }
 0x20f   :  { %1031 = vmatpush.msrb.mxu2 %v509_v29  ;;  %1093 = vmatpush.msrb.mxu0 %v532_v30 }
 0x210   :  { %3042 = vmatmul.msk.f32.gmra.mxu3 %vm212_vm0, %v3741_v36  ;;  %871 = vmatpush.msrb.mxu1 %v627_v35 }
 0x211   :  { %933 = vmatpush.msra.mxu3 %v581_v32  ;;  %1032 = vmatpush.msrb.mxu2 %v506_v20 }
 0x212   :  { %1094 = vmatpush.msrb.mxu0 %v529_v21  ;;  %994 = vmatpush.msra.mxu1 %v607_v38 }
 0x214   :  { %995 = vmatpush.msra.mxu1 %v604_v34 }
 0x215   :  { %3048 = vmatmul.msk.f32.gmra.mxu2 %vm212_vm0, %v3761_v42  ;;  %3046 = vmatmul.msk.f32.gmra.mxu1 %vm212_vm0, %v3741_v36 }
 0x216   :  { %3052 = vmatmul.msk.f32.gmra.mxu0 %vm212_vm0, %v3763_v43 }
 0x218   :  { %3049 = vmatmul.msk.f32.vlgmr.msrb.gmra.mxu3 %vm212_vm0, %v3749_v40 }
 0x219   :  { %1056 = vmatpush.msrb.mxu3 %v584_v37 }
 0x21b   :  { %1057 = vmatpush.msrb.mxu3 %v581_v32 }
 0x21d   :  { %3055 = vmatmul.msk.f32.vlgmr.msra.gmra.mxu2 %vm212_vm0, %v3749_v40  ;;  %3053 = vmatmul.msk.f32.vlgmr.msrb.gmra.mxu1 %vm212_vm0, %v3751_v41 }
 0x21e   :  { %3059 = vmatmul.msk.f32.vlgmr.msra.gmra.mxu0 %vm212_vm0, %v3749_v40  ;;  %1118 = vmatpush.msrb.mxu1 %v607_v38 }
 0x21f   :  { %1175 = vmatpush.msra.mxu2 %v3645_v0  ;;  %1229 = vmatpush.msra.mxu0 %v3645_v0 }
 0x220   :  { %3050 = vmatmul.msk.f32.gmra.mxu3 %vm212_vm0, %v3761_v42  ;;  %1119 = vmatpush.msrb.mxu1 %v604_v34 }
 0x221   :  { %1176 = vmatpush.msra.mxu2 %v3647_v1  ;;  %1230 = vmatpush.msra.mxu0 %v3647_v1 }
 0x225   :  { %3056 = vmatmul.msk.f32.gmra.mxu2 %vm212_vm0, %v3761_v42  ;;  %3054 = vmatmul.msk.f32.gmra.mxu1 %vm212_vm0, %v3763_v43 }
 0x226   :  { %3060 = vmatmul.msk.f32.gmra.mxu0 %vm212_vm0, %v3761_v42 }
 0x228   :  { %3057 = vmatmul.msk.f32.vlgmr.msra.gmra.mxu3 %vm212_vm0, %v3749_v40 }
 0x22d   :  { %3063 = vmatmul.msk.f32.vlgmr.msrb.gmra.mxu2 %vm212_vm0, %v3751_v41  ;;  %3061 = vmatmul.msk.f32.vlgmr.msra.gmra.mxu1 %vm212_vm0, %v3749_v40 }
 0x22e   :  { %3067 = vmatmul.msk.f32.vlgmr.msrb.gmra.mxu0 %vm212_vm0, %v3751_v41  ;;  %1285 = vmatpush.msrb.mxu2 %v3645_v0 }
 0x22f   :  { %1341 = vmatpush.msrb.mxu0 %v3645_v0  ;;  %v3813_v0 = vld [vmem:[#allocation2 + $0x10] sm:$0xff] }
 0x230   :  { %3058 = vmatmul.msk.f32.gmra.mxu3 %vm212_vm0, %v3761_v42  ;;  %1286 = vmatpush.msrb.mxu2 %v3647_v1  ;;  %v1263_v46 = vmul.f32 %v1153_v44, %v3813_v0  ;;  %v1319_v47 = vmul.f32 %v3813_v0, %v3813_v0 }
 0x231   :  { %1342 = vmatpush.msrb.mxu0 %v3647_v1  ;;  %v3826_v1 = vld [vmem:[#allocation2 + $0x18] sm:$0xff] }
 0x232   :  { %v1264_v48 = vmul.f32 %v1154_v45, %v3826_v1  ;;  %v1320_v49 = vmul.f32 %v3826_v1, %v3826_v1 }
 0x235   :  { %3064 = vmatmul.msk.f32.gmra.mxu2 %vm212_vm0, %v3763_v43  ;;  %3062 = vmatmul.msk.f32.gmra.mxu1 %vm212_vm0, %v3761_v42 }
 0x236   :  { %3068 = vmatmul.msk.f32.gmra.mxu0 %vm212_vm0, %v3763_v43 }
 0x238   :  { %3065 = vmatmul.msk.f32.vlgmr.msrb.gmra.mxu3 %vm212_vm0, %v3751_v41 }
 0x23d   :  { %3071 = vmatmul.msk.f32.vlgmr.msra.gmra.mxu2 %vm212_vm0, %v3813_v0  ;;  %3069 = vmatmul.msk.f32.vlgmr.msrb.gmra.mxu1 %vm212_vm0, %v3751_v41 }
 0x23e   :  { %3075 = vmatmul.msk.f32.vlgmr.msra.gmra.mxu0 %vm212_vm0, %v1153_v44  ;;  %1439 = vmatpush.msra.mxu2 %v3699_v22 }
 0x23f   :  { %1485 = vmatpush.msra.mxu0 %v3703_v24 }
 0x240   :  { %3066 = vmatmul.msk.f32.gmra.mxu3 %vm212_vm0, %v3763_v43  ;;  %1440 = vmatpush.msra.mxu2 %v3708_v26 }
 0x241   :  { %1486 = vmatpush.msra.mxu0 %v3712_v28 }
 0x245   :  { %3072 = vmatmul.msk.f32.gmra.mxu2 %vm212_vm0, %v3826_v1  ;;  %3070 = vmatmul.msk.f32.gmra.mxu1 %vm212_vm0, %v3763_v43 }
 0x246   :  { %3076 = vmatmul.msk.f32.gmra.mxu0 %vm212_vm0, %v1154_v45 }
 0x24d   :  { %3079 = vmatmul.msk.f32.vlgmr.msrb.gmra.mxu2 %vm212_vm0, %v1263_v46 }
 0x24e   :  { %3083 = vmatmul.msk.f32.vlgmr.msrb.gmra.mxu0 %vm212_vm0, %v1319_v47  ;;  %1537 = vmatpush.msrb.mxu2 %v3701_v23 }
 0x250   :  { %1538 = vmatpush.msrb.mxu2 %v3710_v27 }
 0x255   :  { %3080 = vmatmul.msk.f32.gmra.mxu2 %vm212_vm0, %v1264_v48 }
 0x256   :  { %3084 = vmatmul.msk.f32.gmra.mxu0 %vm212_vm0, %v1320_v49 }
 0x279   :  { %v712_v50 = vpop.f32.mrf.mxu0 }
 0x27a   :  { %v718_v62 = vmul.f32 %v712_v50, %v3652_v3 }
 0x27f   :  { %v656_v51 = vpop.f32.mrf.mxu2 }
 0x280   :  { %v662_v63 = vmul.f32 %v656_v51, %v3652_v3 }
 0x282   :  { %v715_v52 = vpop.f32.mrf.mxu0 }
 0x283   :  { %v719_v10 = vmul.f32 %v715_v52, %v3650_v2 }
 0x288   :  { %v659_v53 = vpop.f32.mrf.mxu2 }
 0x289   :  { %v737_v54 = vpop.f32.mrf.mxu1  ;;  %v663_v11 = vmul.f32 %v659_v53, %v3650_v2 }
 0x28a   :  { %v848_v56 = vpop.f32.mrf.mxu0  ;;  %v743_v7 = vadd.f32 %v737_v54, %v718_v62 }
 0x28b   :  { %v681_v55 = vpop.f32.mrf.mxu3  ;;  %v854_v34 = vmul.f32 %v848_v56, %v3652_v3 }
 0x28c   :  { %v687_v6 = vadd.f32 %v681_v55, %v662_v63  ;;  %v745_v15 = vmul.f32 0.16666667, %v743_v7 }
 0x28e   :  { %v689_v14 = vmul.f32 0.16666667, %v687_v6  ;;  %v3854_v29 = vsub.f32 %v745_v15, %v3652_v3 }
 0x290   :  { %v780_v57 = vpop.f32.mrf.mxu2  ;;  %v3851_v25 = vsub.f32 %v689_v14, %v3652_v3  ;;  %v749_v44 = vand.u32 2147483647, %v3854_v29 }
 0x291   :  { %v786_v9 = vmul.f32 %v780_v57, %v3652_v3 }
 0x292   :  { %v740_v59 = vpop.f32.mrf.mxu1  ;;  %v693_v39 = vand.u32 2147483647, %v3851_v25 }
 0x293   :  { %v684_v58 = vpop.f32.mrf.mxu3  ;;  %v851_v60 = vpop.f32.mrf.mxu0  ;;  %v744_v19 = vadd.f32 %v740_v59, %v719_v10 }
 0x294   :  { %v688_v18 = vadd.f32 %v684_v58, %v663_v11  ;;  %vm3868_vm9 = vcmp.lt.f32.partialorder %v749_v44, %v693_v39  ;;  %v855_v59 = vmul.f32 %v851_v60, %v3650_v2 }
 0x295   :  { %v746_v37 = vmul.f32 0.16666667, %v744_v19 }
 0x296   :  { %v690_v35 = vmul.f32 0.16666667, %v688_v18 }
 0x297   :  { %v3865_v49 = vsub.f32 %v746_v37, %v3650_v2 }
 0x298   :  { %v783_v61 = vpop.f32.mrf.mxu2  ;;  %v3862_v48 = vsub.f32 %v690_v35, %v3650_v2 }
 0x299   :  { %v787_v30 = vmul.f32 %v783_v61, %v3650_v2  ;;  %v750_v62 = vand.u32 2147483647, %v3865_v49 }
 0x29a   :  { %v873_v5 = vpop.f32.mrf.mxu1  ;;  %v694_v61 = vand.u32 2147483647, %v3862_v48 }
 0x29b   :  { %v805_v4 = vpop.f32.mrf.mxu3  ;;  %v972_v8 = vpop.f32.mrf.mxu0  ;;  %v879_v46 = vadd.f32 %v873_v5, %v854_v34  ;;  %v755_v5 = vsel %vm3868_vm9, %v749_v44, %v693_v39 }
 0x29c   :  { %v811_v16 = vadd.f32 %v805_v4, %v786_v9  ;;  %v978_v6 = vmul.f32 %v972_v8, %v3652_v3  ;;  %vm3886_vm11 = vcmp.lt.f32.partialorder %v750_v62, %v694_v61 }
 0x29d   :  { %v881_v56 = vmul.f32 0.16666667, %v879_v46  ;;  %v756_v34 = vsel %vm3886_vm11, %v750_v62, %v694_v61  ;;  %v753_v61 = vsel %vm3868_vm9, %v3854_v29, %v3851_v25 }
 0x29e   :  { %v813_v32 = vmul.f32 0.16666667, %v811_v16 }
 0x29f   :  { %v883_v60 = vsub.f32 %v881_v56, %v3652_v3 }
 0x2a0   :  { %v910_v17 = vpop.f32.mrf.mxu2  ;;  %v815_v45 = vsub.f32 %v813_v32, %v3652_v3 }
 0x2a1   :  { %v916_v50 = vmul.f32 %v910_v17, %v3652_v3 }
 0x2a2   :  { %v876_v21 = vpop.f32.mrf.mxu1  ;;  %v817_v55 = vand.u32 2147483647, %v815_v45 }
 0x2a3   :  { %v808_v20 = vpop.f32.mrf.mxu3  ;;  %v975_v33 = vpop.f32.mrf.mxu0  ;;  %v880_v7 = vadd.f32 %v876_v21, %v855_v59  ;;  %v885_v21 = vand.u32 2147483647, %v883_v60 }
 0x2a4   :  { %v812_v38 = vadd.f32 %v808_v20, %v787_v30  ;;  %vm3881_vm10 = vcmp.lt.f32.partialorder %v817_v55, %v755_v5 }
 0x2a5   :  { %v823_v8 = vsel %vm3881_vm10, %v817_v55, %v755_v5  ;;  %v882_v18 = vmul.f32 0.16666667, %v880_v7 }
 0x2a6   :  { %v814_v51 = vmul.f32 0.16666667, %v812_v38  ;;  %vm3897_vm12 = vcmp.lt.f32.partialorder %v885_v21, %v823_v8 }
 0x2a7   :  { %v3906_v46 = vsub.f32 %v882_v18, %v3650_v2 }
 0x2a8   :  { %v913_v47 = vpop.f32.mrf.mxu2  ;;  %v3876_v63 = vsub.f32 %v814_v51, %v3650_v2 }
 0x2a9   :  { %v917_v16 = vmul.f32 %v913_v47, %v3650_v2  ;;  %v979_v47 = vmul.f32 %v975_v33, %v3650_v2  ;;  %v886_v62 = vand.u32 2147483647, %v3906_v46 }
 0x2aa   :  { %v997_v53 = vpop.f32.mrf.mxu1  ;;  %v818_v15 = vand.u32 2147483647, %v3876_v63 }
 0x2ab   :  { %v935_v52 = vpop.f32.mrf.mxu3  ;;  %v1096_v58 = vpop.f32.mrf.mxu0  ;;  %v1003_v11 = vadd.f32 %v997_v53, %v978_v6 }
 0x2ac   :  { %v941_v57 = vadd.f32 %v935_v52, %v916_v50  ;;  %vm3901_vm13 = vcmp.lt.f32.partialorder %v818_v15, %v756_v34  ;;  %v891_v52 = vsel %vm3897_vm12, %v885_v21, %v823_v8  ;;  %v1102_v55 = vmul.f32 %v1096_v58, %v3652_v3 }
 0x2ad   :  { %v1005_v35 = vmul.f32 0.25, %v1003_v11  ;;  %v824_v51 = vsel %vm3901_vm13, %v818_v15, %v756_v34  ;;  %v821_v58 = vsel %vm3881_vm10, %v815_v45, %v753_v61 }
 0x2ae   :  { %v943_v4 = vmul.f32 0.25, %v941_v57  ;;  %vm3928_vm15 = vcmp.lt.f32.partialorder %v886_v62, %v824_v51  ;;  %v889_v18 = vsel %vm3897_vm12, %v883_v60, %v821_v58 }
 0x2af   :  { %v1007_v53 = vsub.f32 %v1005_v35, %v3652_v3  ;;  %v892_v60 = vsel %vm3928_vm15, %v886_v62, %v824_v51 }
 0x2b0   :  { %v1034_v10 = vpop.f32.mrf.mxu2  ;;  %v945_v17 = vsub.f32 %v943_v4, %v3652_v3 }
 0x2b1   :  { %v1040_v57 = vmul.f32 %v1034_v10, %v3652_v3 }
 0x2b2   :  { %v1000_v20 = vpop.f32.mrf.mxu1  ;;  %v947_v39 = vand.u32 2147483647, %v945_v17 }
 0x2b3   :  { %v938_v19 = vpop.f32.mrf.mxu3  ;;  %v1099_v32 = vpop.f32.mrf.mxu0  ;;  %v1004_v33 = vadd.f32 %v1000_v20, %v979_v47 }
 0x2b4   :  { %v942_v30 = vadd.f32 %v938_v19, %v917_v16  ;;  %vm3915_vm14 = vcmp.lt.f32.partialorder %v947_v39, %v891_v52  ;;  %v1009_v16 = vand.u32 2147483647, %v1007_v53  ;;  %v1103_v34 = vmul.f32 %v1099_v32, %v3650_v2 }
 0x2b5   :  { %v953_v15 = vsel %vm3915_vm14, %v947_v39, %v891_v52  ;;  %v1006_v25 = vmul.f32 0.25, %v1004_v33  ;;  %v951_v45 = vsel %vm3915_vm14, %v945_v17, %v889_v18 }
 0x2b6   :  { %v944_v44 = vmul.f32 0.25, %v942_v30  ;;  %vm3938_vm1 = vcmp.lt.f32.partialorder %v1009_v16, %v953_v15  ;;  %v754_v30 = vsel %vm3886_vm11, %v3865_v49, %v3862_v48 }
 0x2b7   :  { %v1008_v35 = vsub.f32 %v1006_v25, %v3650_v2  ;;  %v1013_v48 = vsel %vm3938_vm1, %v1007_v53, %v951_v45  ;;  %v1015_v49 = vsel %vm3938_vm1, %v1009_v16, %v953_v15 }
 0x2b8   :  { %v1037_v50 = vpop.f32.mrf.mxu2  ;;  %v946_v59 = vsub.f32 %v944_v44, %v3650_v2  ;;  %v822_v44 = vsel %vm3901_vm13, %v3876_v63, %v754_v30 }
 0x2b9   :  { %v1041_v37 = vmul.f32 %v1037_v50, %v3650_v2  ;;  %v1010_v63 = vand.u32 2147483647, %v1008_v35  ;;  %v890_v33 = vsel %vm3928_vm15, %v3906_v46, %v822_v44 }
 0x2ba   :  { %v1121_v5 = vpop.f32.mrf.mxu1  ;;  %v948_v54 = vand.u32 2147483647, %v946_v59 }
 0x2bb   :  { %v1059_v4 = vpop.f32.mrf.mxu3  ;;  %v1127_v7 = vadd.f32 %v1121_v5, %v1102_v55  ;;  %v1232_v11 = vpop.f32.mrf.mxu0 }
 0x2bc   :  { %v1065_v6 = vadd.f32 %v1059_v4, %v1040_v57  ;;  %vm3951_vm2 = vcmp.lt.f32.partialorder %v948_v54, %v892_v60 }
 0x2bd   :  { %v1129_v8 = vmul.f32 0.25, %v1127_v7  ;;  %v954_v50 = vsel %vm3951_vm2, %v948_v54, %v892_v60  ;;  %v952_v7 = vsel %vm3951_vm2, %v946_v59, %v890_v33 }
 0x2be   :  { %v1067_v29 = vmul.f32 0.25, %v1065_v6  ;;  %vm3969_vm5 = vcmp.lt.f32.partialorder %v1010_v63, %v954_v50 }
 0x2bf   :  { %v1131_v20 = vsub.f32 %v1129_v8, %v3652_v3  ;;  %v1016_v10 = vsel %vm3969_vm5, %v1010_v63, %v954_v50 }
 0x2c0   :  { %v1069_v19 = vsub.f32 %v1067_v29, %v3652_v3  ;;  %v1178_v21 = vpop.f32.mrf.mxu2 }
 0x2c1   :  { %v1133_v47 = vand.u32 2147483647, %v1131_v20 }
 0x2c2   :  { %v1071_v39 = vand.u32 2147483647, %v1069_v19  ;;  %v1124_v32 = vpop.f32.mrf.mxu1 }
 0x2c3   :  { %v1062_v14 = vpop.f32.mrf.mxu3  ;;  %v1128_v52 = vadd.f32 %v1124_v32, %v1103_v34  ;;  %v1235_v55 = vpop.f32.mrf.mxu0 }
 0x2c4   :  { %vm1073_vm3 = vcmp.lt.f32.partialorder %v1071_v39, %v1015_v49  ;;  %v1066_v51 = vadd.f32 %v1062_v14, %v1041_v37  ;;  %1252 = vmatpush.msra.mxu1 %v1235_v55 }
 0x2c5   :  { %v1075_v56 = vsel %vm1073_vm3, %v1069_v19, %v1013_v48  ;;  %v1077_v57 = vsel %vm1073_vm3, %v1071_v39, %v1015_v49  ;;  %v1130_v53 = vmul.f32 0.25, %v1128_v52 }
 0x2c6   :  { %vm1135_vm4 = vcmp.lt.f32.partialorder %v1133_v47, %v1077_v57  ;;  %v1068_v38 = vmul.f32 0.25, %v1066_v51  ;;  %1253 = vmatpush.msra.mxu1 %v1232_v11 }
 0x2c7   :  { %v1137_v61 = vsel %vm1135_vm4, %v1131_v20, %v1075_v56  ;;  %v1132_v58 = vsub.f32 %v1130_v53, %v3650_v2  ;;  %3077 = vmatmul.msk.f32.vlgmr.msra.gmra.mxu1 %vm212_vm0, %v3681_v13 }
 0x2c8   :  { %v1139_v4 = vadd.f32 %v1137_v61, %v3652_v3  ;;  %v1070_v5 = vsub.f32 %v1068_v38, %v3650_v2  ;;  %v1181_v6 = vpop.f32.mrf.mxu2  ;;  %v1014_v3 = vsel %vm3969_vm5, %v1008_v35, %v952_v7 }
 0x2c9   :  { %1198 = vmatpush.msra.mxu3 %v1181_v6  ;;  %v1134_v16 = vand.u32 2147483647, %v1132_v58 }
 0x2ca   :  { %v1141_v46 = vmax.f32 %v1139_v4, 0.0  ;;  %v1072_v11 = vand.u32 2147483647, %v1070_v5 }
 0x2cb   :  { %1199 = vmatpush.msra.mxu3 %v1178_v21  ;;  %v1344_v54 = vpop.f32.mrf.mxu0 }
 0x2cc   :  { %v1143_v15 = vmin.f32 %v1141_v46, 255.0  ;;  %vm1074_vm6 = vcmp.lt.f32.partialorder %v1072_v11, %v1016_v10  ;;  %3073 = vmatmul.msk.f32.vlgmr.msra.gmra.mxu3 %vm212_vm0, %v3681_v13 }
 0x2cd   :  { %v1076_v25 = vsel %vm1074_vm6, %v1070_v5, %v1014_v3  ;;  %v1078_v29 = vsel %vm1074_vm6, %v1072_v11, %v1016_v10 }
 0x2ce   :  { %v1145_v59 = vfloor.f32 %v1143_v15  ;;  %vm1136_vm7 = vcmp.lt.f32.partialorder %v1134_v16, %v1078_v29 }
 0x2cf   :  { %v1138_v8 = vsel %vm1136_vm7, %v1132_v58, %v1076_v25  ;;  %3078 = vmatmul.msk.f32.gmra.mxu1 %vm212_vm0, %v3679_v12 }
 0x2d0   :  { %1147 = vst.msk [vmem:[#allocation19] sm:$0xff] %vm212_vm0, %v1145_v59  ;;  %v1140_v18 = vadd.f32 %v1138_v8, %v3650_v2  ;;  %v1288_v45 = vpop.f32.mrf.mxu2 }
 0x2d2   :  { %v1142_v9 = vmax.f32 %v1140_v18, 0.0 }
 0x2d3   :  { %v1347_v20 = vpop.f32.mrf.mxu0 }
 0x2d4   :  { %v1144_v19 = vmin.f32 %v1142_v9, 255.0  ;;  %3074 = vmatmul.msk.f32.gmra.mxu3 %vm212_vm0, %v3679_v12  ;;  %1364 = vmatpush.msrb.mxu1 %v1347_v20 }
 0x2d6   :  { %v1146_v21 = vfloor.f32 %v1144_v19  ;;  %1365 = vmatpush.msrb.mxu1 %v1344_v54 }
 0x2d7   :  { %3085 = vmatmul.msk.f32.vlgmr.msrb.gmra.mxu1 %vm212_vm0, %v3681_v13 }
 0x2d8   :  { %1148 = vst.msk [vmem:[#allocation19 + $0x8] sm:$0xff] %vm212_vm0, %v1146_v21  ;;  %v1291_v30 = vpop.f32.mrf.mxu2  ;;  %1514 = vmatpush.msra.mxu1 %v3699_v22 }
 0x2d9   :  { %1308 = vmatpush.msrb.mxu3 %v1291_v30 }
 0x2da   :  { %1515 = vmatpush.msra.mxu1 %v3708_v26 }
 0x2db   :  { %1309 = vmatpush.msrb.mxu3 %v1288_v45 }
 0x2dc   :  { %3081 = vmatmul.msk.f32.vlgmr.msrb.gmra.mxu3 %vm212_vm0, %v3681_v13 }
 0x2dd   :  { %1462 = vmatpush.msra.mxu3 %v3701_v23 }
 0x2df   :  { %1463 = vmatpush.msra.mxu3 %v3710_v27  ;;  %3086 = vmatmul.msk.f32.gmra.mxu1 %vm212_vm0, %v3679_v12 }
 0x2e1   :  { %1560 = vmatpush.msrb.mxu3 %v3703_v24 }
 0x2e3   :  { %1561 = vmatpush.msrb.mxu3 %v3712_v28 }
 0x2e4   :  { %3082 = vmatmul.msk.f32.gmra.mxu3 %vm212_vm0, %v3679_v12 }
 0x344   :  { %v1255_v2 = vpop.f32.mrf.mxu1 }
 0x345   :  { %v1261_v47 = vmul.f32 0.11111111, %v1255_v2 }
 0x34c   :  { %v1258_v22 = vpop.f32.mrf.mxu1 }
 0x34d   :  { %v1262_v6 = vmul.f32 0.11111111, %v1258_v22 }
 0x34f   :  { %v1201_v26 = vpop.f32.mrf.mxu3 }
 0x350   :  { %v1207_v60 = vmul.f32 0.11111111, %v1201_v26 }
 0x352   :  { %v1379_v34 = vmul.f32 %v1207_v60, %v1207_v60  ;;  %v1375_v56 = vmul.f32 %v1261_v47, %v1207_v60 }
 0x354   :  { %v1367_v13 = vpop.f32.mrf.mxu1 }
 0x355   :  { %v1373_v17 = vmul.f32 0.11111111, %v1367_v13 }
 0x357   :  { %v1204_v23 = vpop.f32.mrf.mxu3  ;;  %v1381_v35 = vsub.f32 %v1373_v17, %v1379_v34 }
 0x358   :  { %v1208_v37 = vmul.f32 0.11111111, %v1204_v23 }
 0x359   :  { %v1383_v27 = vadd.f32 0.0001, %v1381_v35  ;;  %v2072_v35 = vld [vmem:[#allocation5 + $0x20] sm:$0xff] }
 0x35a   :  { %v1380_v39 = vmul.f32 %v1208_v37, %v1208_v37  ;;  %v1376_v15 = vmul.f32 %v1262_v6, %v1208_v37 }
 0x35b   :  { %3212 = vrcp.f32 %v1383_v27  ;;  %v1396_v51 = vand.u32 2147483648, %v1383_v27  ;;  %v1394_v50 = vand.u32 2147483647, %v1383_v27  ;;  %vm1390_vm9 = vweird.f32 %v1383_v27 }
 0x35c   :  { %v1370_v44 = vpop.f32.mrf.mxu1 }
 0x35d   :  { %v1374_v24 = vmul.f32 0.11111111, %v1370_v44  ;;  %v1397_v38 = vor.u32 1.1754944e-38, %v1396_v51  ;;  %vm1395_vm11 = vcmp.eq.f32.partialorder %v1394_v50, 8.507059e+37  ;;  %v2073_v44 = vld [vmem:[#allocation5 + $0x28] sm:$0xff] }
 0x35f   :  { %v1382_v48 = vsub.f32 %v1374_v24, %v1380_v39  ;;  %v1311_v14 = vpop.f32.mrf.mxu3  ;;  %v4095_v39 = vld [vmem:[#allocation13] sm:$0xff] }
 0x360   :  { %v1317_v52 = vmul.f32 0.11111111, %v1311_v14 }
 0x361   :  { %v3213_v28 = vpop.eup %3212  ;;  %v1384_v49 = vadd.f32 0.0001, %v1382_v48 }
 0x362   :  { %v1386_v12 = vmul.f32 %v3213_v28, %v1383_v27  ;;  %vm1391_vm8 = vweird.f32 %v3213_v28  ;;  %v1377_v33 = vsub.f32 %v1317_v52, %v1375_v56  ;;  %v4089_v27 = vld [vmem:[#allocation13 + $0x8] sm:$0xff] }
 0x363   :  { %3214 = vrcp.f32 %v1384_v49  ;;  %vm1392_vm10 = vmor %vm1390_vm9, %vm1391_vm8  ;;  %v1409_v7 = vand.u32 2147483647, %v1384_v49  ;;  %v1411_v46 = vand.u32 2147483648, %v1384_v49  ;;  %vm1405_vm13 = vweird.f32 %v1384_v49 }
 0x364   :  { %v1387_v32 = vsub.f32 1.0, %v1386_v12 }
 0x365   :  { %v1412_v25 = vor.u32 1.1754944e-38, %v1411_v46  ;;  %vm1410_vm15 = vcmp.eq.f32.partialorder %v1409_v7, 8.507059e+37 }
 0x366   :  { %v1388_v55 = vmul.f32 %v3213_v28, %v1387_v32 }
 0x367   :  { %v1314_v4 = vpop.f32.mrf.mxu3 }
 0x368   :  { %v1389_v57 = vadd.f32 %v3213_v28, %v1388_v55  ;;  %v1318_v10 = vmul.f32 0.11111111, %v1314_v4 }
 0x369   :  { %v3215_v63 = vpop.eup %3214 }
 0x36a   :  { %v1401_v53 = vmul.f32 %v3215_v63, %v1384_v49  ;;  %v1393_v61 = vsel %vm1392_vm10, %v3213_v28, %v1389_v57  ;;  %vm1406_vm12 = vweird.f32 %v3215_v63  ;;  %v1378_v29 = vsub.f32 %v1318_v10, %v1376_v15  ;;  %v4110_v28 = vld [vmem:[#allocation11 + $0x8] sm:$0xff]  ;;  %v4113_v49 = vld [vmem:[#allocation11] sm:$0xff] }
 0x36b   :  { %v1398_v62 = vsel %vm1395_vm11, %v1397_v38, %v1393_v61  ;;  %vm1407_vm14 = vmor %vm1405_vm13, %vm1406_vm12 }
 0x36c   :  { %v1402_v5 = vsub.f32 1.0, %v1401_v53  ;;  %v1399_v58 = vmul.f32 %v1398_v62, %v1377_v33 }
 0x36e   :  { %v1415_v11 = vmul.f32 %v1399_v58, %v1207_v60  ;;  %v1403_v3 = vmul.f32 %v3215_v63, %v1402_v5  ;;  %3087 = vmatmul.msk.f32.vlgmr.msra.gmra.mxu2 %vm212_vm0, %v1399_v58  ;;  %3089 = vmatmul.msk.f32.vlgmr.msra.gmra.mxu3 %vm212_vm0, %v1399_v58 }
 0x36f   :  { %3091 = vmatmul.msk.f32.vlgmr.msra.gmra.mxu0 %vm212_vm0, %v1399_v58 }
 0x370   :  { %v1404_v16 = vadd.f32 %v3215_v63, %v1403_v3  ;;  %v1417_v54 = vsub.f32 %v1261_v47, %v1415_v11 }
 0x372   :  { %v1408_v59 = vsel %vm1407_vm14, %v3215_v63, %v1404_v16  ;;  %3093 = vmatmul.msk.f32.vlgmr.msra.gmra.mxu1 %vm212_vm0, %v1417_v54 }
 0x373   :  { %v1413_v8 = vsel %vm1410_vm15, %v1412_v25, %v1408_v59 }
 0x374   :  { %v1414_v18 = vmul.f32 %v1413_v8, %v1378_v29 }
 0x376   :  { %3088 = vmatmul.msk.f32.gmra.mxu2 %vm212_vm0, %v1414_v18  ;;  %3090 = vmatmul.msk.f32.gmra.mxu3 %vm212_vm0, %v1414_v18  ;;  %v1416_v45 = vmul.f32 %v1414_v18, %v1208_v37  ;;  %v4092_v37 = vld [vmem:[#allocation10] sm:$0xff] }
 0x377   :  { %3092 = vmatmul.msk.f32.gmra.mxu0 %vm212_vm0, %v1414_v18 }
 0x378   :  { %v1418_v9 = vsub.f32 %v1262_v6, %v1416_v45 }
 0x37a   :  { %3094 = vmatmul.msk.f32.gmra.mxu1 %vm212_vm0, %v1418_v9 }
 0x37e   :  { %3095 = vmatmul.msk.f32.vlgmr.msrb.gmra.mxu2 %vm212_vm0, %v1417_v54  ;;  %3097 = vmatmul.msk.f32.vlgmr.msrb.gmra.mxu3 %vm212_vm0, %v1417_v54 }
 0x386   :  { %3096 = vmatmul.msk.f32.gmra.mxu2 %vm212_vm0, %v1418_v9  ;;  %3098 = vmatmul.msk.f32.gmra.mxu3 %vm212_vm0, %v1418_v9 }
 0x3ec   :  { %v1488_v30 = vpop.f32.mrf.mxu0 }
 0x3ef   :  { %v1517_v19 = vpop.f32.mrf.mxu1 }
 0x3f1   :  { %v1442_v20 = vpop.f32.mrf.mxu2  ;;  %v1465_v21 = vpop.f32.mrf.mxu3 }
 0x3f4   :  { %v1491_v60 = vpop.f32.mrf.mxu0 }
 0x3f7   :  { %v1520_v2 = vpop.f32.mrf.mxu1 }
 0x3f8   :  { %1608 = vmatpush.msrb.mxu1 %v1520_v2 }
 0x3f9   :  { %v1445_v22 = vpop.f32.mrf.mxu2  ;;  %v1468_v26 = vpop.f32.mrf.mxu3 }
 0x3fa   :  { %1583 = vmatpush.msrb.mxu0 %v1445_v22  ;;  %1609 = vmatpush.msrb.mxu1 %v1517_v19 }
 0x3fb   :  { %1639 = vmatpush.msra.mxu2 %v1468_v26  ;;  %3101 = vmatmul.msk.f32.vlgmr.msrb.gmra.mxu1 %vm212_vm0, %v3735_v31 }
 0x3fc   :  { %1584 = vmatpush.msrb.mxu0 %v1442_v20 }
 0x3fd   :  { %1640 = vmatpush.msra.mxu2 %v1465_v21  ;;  %3099 = vmatmul.msk.f32.vlgmr.msrb.gmra.mxu0 %vm212_vm0, %v3735_v31 }
 0x3fe   :  { %3103 = vmatmul.msk.f32.vlgmr.msra.gmra.mxu2 %vm212_vm0, %v3735_v31  ;;  %1701 = vmatpush.msra.mxu0 %v1491_v60 }
 0x3ff   :  { %1763 = vmatpush.msrb.mxu2 %v1491_v60 }
 0x400   :  { %1702 = vmatpush.msra.mxu0 %v1488_v30 }
 0x401   :  { %1764 = vmatpush.msrb.mxu2 %v1488_v30  ;;  %v1540_v34 = vpop.f32.mrf.mxu2  ;;  %v1563_v13 = vpop.f32.mrf.mxu3 }
 0x402   :  { %1825 = vmatpush.msrb.mxu0 %v1445_v22 }
 0x403   :  { %1887 = vmatpush.msra.mxu2 %v1468_v26  ;;  %3102 = vmatmul.msk.f32.gmra.mxu1 %vm212_vm0, %v3741_v36 }
 0x404   :  { %1826 = vmatpush.msrb.mxu0 %v1442_v20 }
 0x405   :  { %1888 = vmatpush.msra.mxu2 %v1465_v21  ;;  %3100 = vmatmul.msk.f32.gmra.mxu0 %vm212_vm0, %v3741_v36 }
 0x406   :  { %3104 = vmatmul.msk.f32.gmra.mxu2 %vm212_vm0, %v3741_v36 }
 0x409   :  { %v1543_v17 = vpop.f32.mrf.mxu2  ;;  %v1566_v23 = vpop.f32.mrf.mxu3 }
 0x40a   :  { %1664 = vmatpush.msra.mxu3 %v1543_v17  ;;  %1726 = vmatpush.msra.mxu1 %v1566_v23 }
 0x40c   :  { %1665 = vmatpush.msra.mxu3 %v1540_v34  ;;  %1727 = vmatpush.msra.mxu1 %v1563_v13 }
 0x40d   :  { %3105 = vmatmul.msk.f32.vlgmr.msra.gmra.mxu3 %vm212_vm0, %v3735_v31  ;;  %3107 = vmatmul.msk.f32.vlgmr.msra.gmra.mxu0 %vm212_vm0, %v3749_v40  ;;  %v3220_v31 = vld [vmem:[#allocation7 + $0x8] sm:$0xff] }
 0x40e   :  { %3111 = vmatmul.msk.f32.vlgmr.msrb.gmra.mxu2 %vm212_vm0, %v3751_v41  ;;  %1788 = vmatpush.msrb.mxu3 %v1566_v23 }
 0x40f   :  { %1850 = vmatpush.msrb.mxu1 %v1520_v2  ;;  %1949 = vmatpush.msra.mxu0 %v1445_v22 }
 0x410   :  { %2011 = vmatpush.msrb.mxu2 %v1468_v26  ;;  %1789 = vmatpush.msrb.mxu3 %v1563_v13 }
 0x411   :  { %1851 = vmatpush.msrb.mxu1 %v1517_v19  ;;  %1950 = vmatpush.msra.mxu0 %v1442_v20 }
 0x412   :  { %2012 = vmatpush.msrb.mxu2 %v1465_v21  ;;  %3109 = vmatmul.msk.f32.vlgmr.msra.gmra.mxu1 %vm212_vm0, %v3749_v40 }
 0x413   :  { %1912 = vmatpush.msra.mxu3 %v1543_v17  ;;  %1974 = vmatpush.msra.mxu1 %v1520_v2 }
 0x415   :  { %1913 = vmatpush.msra.mxu3 %v1540_v34  ;;  %1975 = vmatpush.msra.mxu1 %v1517_v19 }
 0x416   :  { %3106 = vmatmul.msk.f32.gmra.mxu3 %vm212_vm0, %v3741_v36  ;;  %3108 = vmatmul.msk.f32.gmra.mxu0 %vm212_vm0, %v3761_v42  ;;  %v3221_v36 = vld [vmem:[#allocation7] sm:$0xff] }
 0x417   :  { %3112 = vmatmul.msk.f32.gmra.mxu2 %vm212_vm0, %v3763_v43 }
 0x41a   :  { %3110 = vmatmul.msk.f32.gmra.mxu1 %vm212_vm0, %v3761_v42 }
 0x41e   :  { %3113 = vmatmul.msk.f32.vlgmr.msrb.gmra.mxu3 %vm212_vm0, %v3751_v41  ;;  %3115 = vmatmul.msk.f32.vlgmr.msrb.gmra.mxu0 %vm212_vm0, %v3749_v40 }
 0x41f   :  { %3119 = vmatmul.msk.f32.vlgmr.msra.gmra.mxu2 %vm212_vm0, %v3749_v40  ;;  %2036 = vmatpush.msrb.mxu3 %v1543_v17 }
 0x420   :  { %2094 = vmatpush.msrb.mxu0 %v3220_v31  ;;  %2148 = vmatpush.msra.mxu2 %v3220_v31 }
 0x421   :  { %2037 = vmatpush.msrb.mxu3 %v1540_v34 }
 0x422   :  { %3117 = vmatmul.msk.f32.vlgmr.msrb.gmra.mxu1 %vm212_vm0, %v3749_v40  ;;  %2095 = vmatpush.msrb.mxu0 %v3221_v36 }
 0x423   :  { %2149 = vmatpush.msra.mxu2 %v3221_v36 }
 0x426   :  { %3114 = vmatmul.msk.f32.gmra.mxu3 %vm212_vm0, %v3763_v43  ;;  %3116 = vmatmul.msk.f32.gmra.mxu0 %vm212_vm0, %v3761_v42 }
 0x427   :  { %3120 = vmatmul.msk.f32.gmra.mxu2 %vm212_vm0, %v3761_v42 }
 0x42a   :  { %3118 = vmatmul.msk.f32.gmra.mxu1 %vm212_vm0, %v3761_v42 }
 0x42e   :  { %3121 = vmatmul.msk.f32.vlgmr.msra.gmra.mxu3 %vm212_vm0, %v3749_v40  ;;  %3123 = vmatmul.msk.f32.vlgmr.msra.gmra.mxu0 %vm212_vm0, %v3751_v41  ;;  %v4079_v40 = vld [vmem:[#allocation2 + $0x20] sm:$0xff] }
 0x42f   :  { %3127 = vmatmul.msk.f32.vlgmr.msrb.gmra.mxu2 %vm212_vm0, %v3751_v41  ;;  %2204 = vmatpush.msra.mxu0 %v3220_v31  ;;  %v2182_v24 = vmul.f32 %v2072_v35, %v4079_v40  ;;  %v2238_v48 = vmul.f32 %v4079_v40, %v4079_v40 }
 0x430   :  { %2260 = vmatpush.msrb.mxu2 %v3220_v31 }
 0x431   :  { %2205 = vmatpush.msra.mxu0 %v3221_v36 }
 0x432   :  { %3125 = vmatmul.msk.f32.vlgmr.msra.gmra.mxu1 %vm212_vm0, %v3751_v41  ;;  %2261 = vmatpush.msrb.mxu2 %v3221_v36 }
 0x436   :  { %3122 = vmatmul.msk.f32.gmra.mxu3 %vm212_vm0, %v3761_v42  ;;  %3124 = vmatmul.msk.f32.gmra.mxu0 %vm212_vm0, %v3763_v43  ;;  %v4086_v42 = vld [vmem:[#allocation10 + $0x8] sm:$0xff] }
 0x437   :  { %3128 = vmatmul.msk.f32.gmra.mxu2 %vm212_vm0, %v3763_v43 }
 0x43a   :  { %3126 = vmatmul.msk.f32.gmra.mxu1 %vm212_vm0, %v3763_v43 }
 0x43e   :  { %3129 = vmatmul.msk.f32.vlgmr.msrb.gmra.mxu3 %vm212_vm0, %v3751_v41  ;;  %3131 = vmatmul.msk.f32.vlgmr.msrb.gmra.mxu0 %vm212_vm0, %v4079_v40  ;;  %v4098_v41 = vld [vmem:[#allocation2 + $0x28] sm:$0xff] }
 0x43f   :  { %3135 = vmatmul.msk.f32.vlgmr.msra.gmra.mxu2 %vm212_vm0, %v2072_v35  ;;  %2358 = vmatpush.msrb.mxu0 %v4086_v42  ;;  %v2239_v14 = vmul.f32 %v4098_v41, %v4098_v41 }
 0x440   :  { %2404 = vmatpush.msra.mxu2 %v4089_v27 }
 0x441   :  { %2359 = vmatpush.msrb.mxu0 %v4092_v37 }
 0x442   :  { %2405 = vmatpush.msra.mxu2 %v4095_v39 }
 0x446   :  { %3130 = vmatmul.msk.f32.gmra.mxu3 %vm212_vm0, %v3763_v43  ;;  %3132 = vmatmul.msk.f32.gmra.mxu0 %vm212_vm0, %v4098_v41  ;;  %v2183_v43 = vmul.f32 %v2073_v44, %v4098_v41 }
 0x447   :  { %3136 = vmatmul.msk.f32.gmra.mxu2 %vm212_vm0, %v2073_v44 }
 0x44e   :  { %3139 = vmatmul.msk.f32.vlgmr.msra.gmra.mxu0 %vm212_vm0, %v2182_v24 }
 0x44f   :  { %3143 = vmatmul.msk.f32.vlgmr.msrb.gmra.mxu2 %vm212_vm0, %v2238_v48  ;;  %2456 = vmatpush.msra.mxu0 %v4110_v28 }
 0x451   :  { %2457 = vmatpush.msra.mxu0 %v4113_v49 }
 0x456   :  { %3140 = vmatmul.msk.f32.gmra.mxu0 %vm212_vm0, %v2183_v43 }
 0x457   :  { %3144 = vmatmul.msk.f32.gmra.mxu2 %vm212_vm0, %v2239_v14 }
 0x478   :  { %v1611_v32 = vpop.f32.mrf.mxu1 }
 0x47a   :  { %v1586_v12 = vpop.f32.mrf.mxu0 }
 0x47b   :  { %v1592_v53 = vmul.f32 %v1586_v12, %v3813_v0 }
 0x47d   :  { %v1617_v4 = vadd.f32 %v1611_v32, %v1592_v53 }
 0x47f   :  { %v1619_v46 = vmul.f32 0.16666667, %v1617_v4 }
 0x480   :  { %v1614_v52 = vpop.f32.mrf.mxu1 }
 0x481   :  { %v1642_v47 = vpop.f32.mrf.mxu2  ;;  %v4127_v25 = vsub.f32 %v1619_v46, %v3813_v0 }
 0x482   :  { %v1589_v51 = vpop.f32.mrf.mxu0  ;;  %v1648_v61 = vmul.f32 %v1642_v47, %v3813_v0 }
 0x483   :  { %v1593_v11 = vmul.f32 %v1589_v51, %v3826_v1  ;;  %v1623_v21 = vand.u32 2147483647, %v4127_v25 }
 0x485   :  { %v1618_v59 = vadd.f32 %v1614_v52, %v1593_v11 }
 0x487   :  { %v1620_v2 = vmul.f32 0.16666667, %v1618_v59 }
 0x489   :  { %v1645_v55 = vpop.f32.mrf.mxu2  ;;  %v4141_v35 = vsub.f32 %v1620_v2, %v3826_v1 }
 0x48a   :  { %v1704_v50 = vpop.f32.mrf.mxu0  ;;  %v1649_v15 = vmul.f32 %v1645_v55, %v3826_v1 }
 0x48b   :  { %v1710_v7 = vmul.f32 %v1704_v50, %v3813_v0  ;;  %v1624_v55 = vand.u32 2147483647, %v4141_v35 }
 0x48f   :  { %v1729_v56 = vpop.f32.mrf.mxu1 }
 0x490   :  { %v1667_v57 = vpop.f32.mrf.mxu3  ;;  %v1735_v16 = vadd.f32 %v1729_v56, %v1710_v7  ;;  %v3230_v7 = vld [vmem:[#allocation8] sm:$0xff] }
 0x491   :  { %v1766_v63 = vpop.f32.mrf.mxu2  ;;  %v1673_v58 = vadd.f32 %v1667_v57, %v1648_v61 }
 0x492   :  { %v1772_v9 = vmul.f32 %v1766_v63, %v3813_v0  ;;  %v1737_v20 = vmul.f32 0.16666667, %v1735_v16 }
 0x493   :  { %v1707_v38 = vpop.f32.mrf.mxu0  ;;  %v1675_v10 = vmul.f32 0.16666667, %v1673_v58 }
 0x494   :  { %v1711_v19 = vmul.f32 %v1707_v38, %v3826_v1  ;;  %v4138_v13 = vsub.f32 %v1737_v20, %v3813_v0 }
 0x495   :  { %v4130_v8 = vsub.f32 %v1675_v10, %v3813_v0 }
 0x496   :  { %v1741_v12 = vand.u32 2147483647, %v4138_v13 }
 0x497   :  { %v1732_v33 = vpop.f32.mrf.mxu1  ;;  %v1679_v22 = vand.u32 2147483647, %v4130_v8 }
 0x498   :  { %v1736_v17 = vadd.f32 %v1732_v33, %v1711_v19 }
 0x499   :  { %v1670_v62 = vpop.f32.mrf.mxu3  ;;  %vm4143_vm1 = vcmp.lt.f32.partialorder %v1679_v22, %v1623_v21 }
 0x49a   :  { %v1769_v5 = vpop.f32.mrf.mxu2  ;;  %v1674_v18 = vadd.f32 %v1670_v62, %v1649_v15  ;;  %v1738_v32 = vmul.f32 0.16666667, %v1736_v17  ;;  %v1685_v47 = vsel %vm4143_vm1, %v1679_v22, %v1623_v21 }
 0x49b   :  { %v1828_v6 = vpop.f32.mrf.mxu0  ;;  %v1773_v43 = vmul.f32 %v1769_v5, %v3826_v1  ;;  %vm4161_vm2 = vcmp.lt.f32.partialorder %v1741_v12, %v1685_v47 }
 0x49c   :  { %v1676_v26 = vmul.f32 0.16666667, %v1674_v18  ;;  %v1834_v34 = vmul.f32 %v1828_v6, %v3813_v0  ;;  %v4166_v53 = vsub.f32 %v1738_v32, %v3826_v1  ;;  %v1747_v16 = vsel %vm4161_vm2, %v1741_v12, %v1685_v47 }
 0x49e   :  { %v4148_v24 = vsub.f32 %v1676_v26, %v3826_v1  ;;  %v1742_v15 = vand.u32 2147483647, %v4166_v53 }
 0x49f   :  { %v1853_v3 = vpop.f32.mrf.mxu1 }
 0x4a0   :  { %v1859_v14 = vadd.f32 %v1853_v3, %v1834_v34  ;;  %v1680_v50 = vand.u32 2147483647, %v4148_v24 }
 0x4a1   :  { %v1791_v54 = vpop.f32.mrf.mxu3 }
 0x4a2   :  { %v1890_v29 = vpop.f32.mrf.mxu2  ;;  %v1797_v30 = vadd.f32 %v1791_v54, %v1772_v9  ;;  %v1861_v63 = vmul.f32 0.25, %v1859_v14  ;;  %vm4170_vm3 = vcmp.lt.f32.partialorder %v1680_v50, %v1624_v55 }
 0x4a3   :  { %v1831_v45 = vpop.f32.mrf.mxu0  ;;  %v1896_v56 = vmul.f32 %v1890_v29, %v3813_v0  ;;  %v1686_v54 = vsel %vm4170_vm3, %v1680_v50, %v1624_v55  ;;  %v1683_v55 = vsel %vm4143_vm1, %v4130_v8, %v4127_v25 }
 0x4a4   :  { %v1799_v31 = vmul.f32 0.16666667, %v1797_v30  ;;  %v1835_v57 = vmul.f32 %v1831_v45, %v3826_v1  ;;  %v1863_v11 = vsub.f32 %v1861_v63, %v3813_v0  ;;  %vm4189_vm5 = vcmp.lt.f32.partialorder %v1742_v15, %v1686_v54 }
 0x4a5   :  { %v1748_v12 = vsel %vm4189_vm5, %v1742_v15, %v1686_v54  ;;  %v1745_v25 = vsel %vm4161_vm2, %v4138_v13, %v1683_v55  ;;  %v1684_v13 = vsel %vm4170_vm3, %v4148_v24, %v4141_v35 }
 0x4a6   :  { %v4155_v51 = vsub.f32 %v1799_v31, %v3813_v0  ;;  %v1865_v45 = vand.u32 2147483647, %v1863_v11 }
 0x4a7   :  { %v1856_v60 = vpop.f32.mrf.mxu1 }
 0x4a8   :  { %v1803_v62 = vand.u32 2147483647, %v4155_v51  ;;  %v1860_v10 = vadd.f32 %v1856_v60, %v1835_v57 }
 0x4a9   :  { %v1794_v23 = vpop.f32.mrf.mxu3 }
 0x4aa   :  { %v1893_v36 = vpop.f32.mrf.mxu2  ;;  %v1798_v52 = vadd.f32 %v1794_v23, %v1773_v43  ;;  %vm4180_vm4 = vcmp.lt.f32.partialorder %v1803_v62, %v1747_v16  ;;  %v1862_v19 = vmul.f32 0.25, %v1860_v10 }
 0x4ab   :  { %v1952_v48 = vpop.f32.mrf.mxu0  ;;  %v1897_v9 = vmul.f32 %v1893_v36, %v3826_v1  ;;  %v1809_v30 = vsel %vm4180_vm4, %v1803_v62, %v1747_v16  ;;  %v3229_v16 = vld [vmem:[#allocation2 + $0x10] sm:$0xff] }
 0x4ac   :  { %v1800_v4 = vmul.f32 0.16666667, %v1798_v52  ;;  %v1958_v5 = vmul.f32 %v1952_v48, %v3813_v0  ;;  %vm4197_vm6 = vcmp.lt.f32.partialorder %v1865_v45, %v1809_v30  ;;  %v1864_v48 = vsub.f32 %v1862_v19, %v3826_v1 }
 0x4ad   :  { %v1871_v50 = vsel %vm4197_vm6, %v1865_v45, %v1809_v30  ;;  %v1746_v45 = vsel %vm4189_vm5, %v4166_v53, %v1684_v13 }
 0x4ae   :  { %v4185_v59 = vsub.f32 %v1800_v4, %v3826_v1 }
 0x4af   :  { %v1977_v61 = vpop.f32.mrf.mxu1 }
 0x4b0   :  { %v1983_v18 = vadd.f32 %v1977_v61, %v1958_v5  ;;  %v1804_v22 = vand.u32 2147483647, %v4185_v59 }
 0x4b1   :  { %v1915_v33 = vpop.f32.mrf.mxu3 }
 0x4b2   :  { %v1921_v58 = vadd.f32 %v1915_v33, %v1896_v56  ;;  %v2014_v6 = vpop.f32.mrf.mxu2  ;;  %v1985_v60 = vmul.f32 0.25, %v1983_v18  ;;  %vm4204_vm7 = vcmp.lt.f32.partialorder %v1804_v22, %v1748_v12  ;;  %v1866_v56 = vand.u32 2147483647, %v1864_v48 }
 0x4b3   :  { %v1955_v46 = vpop.f32.mrf.mxu0  ;;  %v2020_v63 = vmul.f32 %v2014_v6, %v3813_v0  ;;  %v1810_v61 = vsel %vm4204_vm7, %v1804_v22, %v1748_v12 }
 0x4b4   :  { %v1923_v3 = vmul.f32 0.25, %v1921_v58  ;;  %v1959_v26 = vmul.f32 %v1955_v46, %v3826_v1  ;;  %v1987_v47 = vsub.f32 %v1985_v60, %v3813_v0  ;;  %v1807_v58 = vsel %vm4180_vm4, %v4155_v51, %v1745_v25 }
 0x4b5   :  { %vm4231_vm9 = vcmp.lt.f32.partialorder %v1866_v56, %v1810_v61  ;;  %v1869_v38 = vsel %vm4197_vm6, %v1863_v11, %v1807_v58 }
 0x4b6   :  { %v1925_v20 = vsub.f32 %v1923_v3, %v3813_v0  ;;  %v1989_v8 = vand.u32 2147483647, %v1987_v47  ;;  %v3228_v3 = vld [vmem:[#allocation2 + $0x18] sm:$0xff]  ;;  %v1872_v18 = vsel %vm4231_vm9, %v1866_v56, %v1810_v61 }
 0x4b7   :  { %v1980_v23 = vpop.f32.mrf.mxu1 }
 0x4b8   :  { %v1927_v43 = vand.u32 2147483647, %v1925_v20  ;;  %v1984_v52 = vadd.f32 %v1980_v23, %v1959_v26  ;;  %v1808_v26 = vsel %vm4204_vm7, %v4185_v59, %v1746_v45 }
 0x4b9   :  { %v1918_v2 = vpop.f32.mrf.mxu3  ;;  %v1870_v23 = vsel %vm4231_vm9, %v1864_v48, %v1808_v26 }
 0x4ba   :  { %v1922_v34 = vadd.f32 %v1918_v2, %v1897_v9  ;;  %v2017_v17 = vpop.f32.mrf.mxu2  ;;  %vm4215_vm8 = vcmp.lt.f32.partialorder %v1927_v43, %v1871_v50  ;;  %v1986_v44 = vmul.f32 0.25, %v1984_v52 }
 0x4bb   :  { %v2097_v31 = vpop.f32.mrf.mxu0  ;;  %v1933_v0 = vsel %vm4215_vm8, %v1927_v43, %v1871_v50  ;;  %v1931_v29 = vsel %vm4215_vm8, %v1925_v20, %v1869_v38  ;;  %v2021_v24 = vmul.f32 %v3228_v3, %v2017_v17  ;;  %v3231_v43 = vld [vmem:[#allocation8 + $0x8] sm:$0xff] }
 0x4bc   :  { %v1924_v14 = vmul.f32 0.25, %v1922_v34  ;;  %vm4241_vm10 = vcmp.lt.f32.partialorder %v1989_v8, %v1933_v0  ;;  %v1988_v15 = vsub.f32 %v1986_v44, %v3228_v3 }
 0x4bd   :  { %v1995_v9 = vsel %vm4241_vm10, %v1989_v8, %v1933_v0  ;;  %v1993_v20 = vsel %vm4241_vm10, %v1987_v47, %v1931_v29 }
 0x4be   :  { %v1926_v33 = vsub.f32 %v1924_v14, %v3826_v1  ;;  %v1990_v30 = vand.u32 2147483647, %v1988_v15 }
 0x4c0   :  { %v1928_v46 = vand.u32 2147483647, %v1926_v33 }
 0x4c1   :  { %v2039_v62 = vpop.f32.mrf.mxu3 }
 0x4c2   :  { %v2045_v4 = vadd.f32 %v2039_v62, %v2020_v63  ;;  %v2151_v5 = vpop.f32.mrf.mxu2  ;;  %vm4250_vm11 = vcmp.lt.f32.partialorder %v1928_v46, %v1872_v18 }
 0x4c3   :  { %v2100_v1 = vpop.f32.mrf.mxu0  ;;  %v1934_v60 = vsel %vm4250_vm11, %v1928_v46, %v1872_v18  ;;  %v1932_v59 = vsel %vm4250_vm11, %v1926_v33, %v1870_v23 }
 0x4c4   :  { %v2047_v10 = vmul.f32 0.25, %v2045_v4  ;;  %2117 = vmatpush.msrb.mxu1 %v2100_v1  ;;  %vm1992_vm13 = vcmp.lt.f32.partialorder %v1990_v30, %v1934_v60 }
 0x4c5   :  { %v1996_v32 = vsel %vm1992_vm13, %v1990_v30, %v1934_v60  ;;  %v1994_v47 = vsel %vm1992_vm13, %v1988_v15, %v1932_v59 }
 0x4c6   :  { %v2049_v54 = vsub.f32 %v2047_v10, %v3229_v16  ;;  %2118 = vmatpush.msrb.mxu1 %v2097_v31 }
 0x4c7   :  { %3133 = vmatmul.msk.f32.vlgmr.msrb.gmra.mxu1 %vm212_vm0, %v3230_v7 }
 0x4c8   :  { %v2051_v11 = vand.u32 2147483647, %v2049_v54 }
 0x4c9   :  { %v2042_v19 = vpop.f32.mrf.mxu3 }
 0x4ca   :  { %vm2053_vm12 = vcmp.lt.f32.partialorder %v2051_v11, %v1995_v9  ;;  %v2046_v2 = vadd.f32 %v2042_v19, %v2021_v24  ;;  %v2154_v22 = vpop.f32.mrf.mxu2 }
 0x4cb   :  { %v2055_v21 = vsel %vm2053_vm12, %v2049_v54, %v1993_v20  ;;  %2171 = vmatpush.msra.mxu3 %v2154_v22  ;;  %v2207_v53 = vpop.f32.mrf.mxu0 }
 0x4cc   :  { %v2057_v34 = vadd.f32 %v3229_v16, %v2055_v21  ;;  %v2048_v17 = vmul.f32 0.25, %v2046_v2 }
 0x4cd   :  { %2172 = vmatpush.msra.mxu3 %v2151_v5 }
 0x4ce   :  { %v2059_v31 = vmax.f32 %v2057_v34, 0.0  ;;  %v2050_v36 = vsub.f32 %v2048_v17, %v3228_v3  ;;  %3137 = vmatmul.msk.f32.vlgmr.msra.gmra.mxu3 %vm212_vm0, %v3230_v7 }
 0x4cf   :  { %3134 = vmatmul.msk.f32.gmra.mxu1 %vm212_vm0, %v3231_v43 }
 0x4d0   :  { %v2061_v14 = vmin.f32 %v2059_v31, 255.0  ;;  %v2052_v12 = vand.u32 2147483647, %v2050_v36 }
 0x4d2   :  { %v2063_v52 = vfloor.f32 %v2061_v14  ;;  %vm2054_vm14 = vcmp.lt.f32.partialorder %v2052_v12, %v1996_v32  ;;  %v2263_v55 = vpop.f32.mrf.mxu2 }
 0x4d3   :  { %v2056_v50 = vsel %vm2054_vm14, %v2050_v36, %v1994_v47  ;;  %v2210_v48 = vpop.f32.mrf.mxu0 }
 0x4d4   :  { %2066 = vst.msk [vmem:[#allocation19 + $0x10] sm:$0xff] %vm212_vm0, %v2063_v52  ;;  %v2058_v56 = vadd.f32 %v3228_v3, %v2056_v50  ;;  %2227 = vmatpush.msra.mxu1 %v2210_v48 }
 0x4d6   :  { %v2060_v57 = vmax.f32 %v2058_v56, 0.0  ;;  %3138 = vmatmul.msk.f32.gmra.mxu3 %vm212_vm0, %v3231_v43  ;;  %2228 = vmatpush.msra.mxu1 %v2207_v53 }
 0x4d7   :  { %3141 = vmatmul.msk.f32.vlgmr.msra.gmra.mxu1 %vm212_vm0, %v3230_v7 }
 0x4d8   :  { %v2062_v63 = vmin.f32 %v2060_v57, 255.0  ;;  %2381 = vmatpush.msrb.mxu1 %v4110_v28  ;;  %v3232_v57 = vld [vmem:[#allocation17] sm:$0xff] }
 0x4da   :  { %v2064_v33 = vfloor.f32 %v2062_v63  ;;  %v2266_v61 = vpop.f32.mrf.mxu2  ;;  %2382 = vmatpush.msrb.mxu1 %v4113_v49 }
 0x4db   :  { %2283 = vmatpush.msrb.mxu3 %v2266_v61 }
 0x4dc   :  { %2479 = vmatpush.msra.mxu1 %v4089_v27  ;;  %2067 = vst.msk [vmem:[#allocation19 + $0x18] sm:$0xff] %vm212_vm0, %v2064_v33 }
 0x4dd   :  { %2284 = vmatpush.msrb.mxu3 %v2263_v55 }
 0x4de   :  { %2480 = vmatpush.msra.mxu1 %v4095_v39  ;;  %3145 = vmatmul.msk.f32.vlgmr.msrb.gmra.mxu3 %vm212_vm0, %v3230_v7 }
 0x4df   :  { %3142 = vmatmul.msk.f32.gmra.mxu1 %vm212_vm0, %v3231_v43  ;;  %2433 = vmatpush.msra.mxu3 %v4086_v42 }
 0x4e1   :  { %2434 = vmatpush.msra.mxu3 %v4092_v37 }
 0x4e6   :  { %3146 = vmatmul.msk.f32.gmra.mxu3 %vm212_vm0, %v3231_v43 }
 0x544   :  { %v2120_v49 = vpop.f32.mrf.mxu1 }
 0x545   :  { %v2126_v25 = vmul.f32 0.11111111, %v2120_v49  ;;  %v3233_v49 = vld [vmem:[#allocation17 + $0x8] sm:$0xff] }
 0x547   :  { %v2298_v27 = vmul.f32 %v2126_v25, %v2126_v25 }
 0x54c   :  { %v2123_v4 = vpop.f32.mrf.mxu1 }
 0x54d   :  { %v2127_v39 = vmul.f32 0.11111111, %v2123_v4  ;;  %v3237_v4 = vld [vmem:[#allocation16 + $0x8] sm:$0xff] }
 0x54f   :  { %v2299_v0 = vmul.f32 %v2127_v39, %v2127_v39 }
 0x551   :  { %v2174_v28 = vpop.f32.mrf.mxu3 }
 0x552   :  { %v2180_v38 = vmul.f32 0.11111111, %v2174_v28 }
 0x554   :  { %v2230_v46 = vpop.f32.mrf.mxu1  ;;  %v2294_v29 = vmul.f32 %v2180_v38, %v2126_v25 }
 0x555   :  { %v2236_v15 = vmul.f32 0.11111111, %v2230_v46 }
 0x557   :  { %v2296_v24 = vsub.f32 %v2236_v15, %v2294_v29 }
 0x559   :  { %v2177_v62 = vpop.f32.mrf.mxu3 }
 0x55a   :  { %v2181_v20 = vmul.f32 0.11111111, %v2177_v62 }
 0x55c   :  { %v2233_v11 = vpop.f32.mrf.mxu1  ;;  %v2295_v34 = vmul.f32 %v2181_v20, %v2127_v39 }
 0x55d   :  { %v2237_v22 = vmul.f32 0.11111111, %v2233_v11 }
 0x55f   :  { %v2297_v36 = vsub.f32 %v2237_v22, %v2295_v34 }
 0x561   :  { %v2286_v8 = vpop.f32.mrf.mxu3 }
 0x562   :  { %v2292_v44 = vmul.f32 0.11111111, %v2286_v8  ;;  %v3235_v8 = vld [vmem:[#allocation16] sm:$0xff] }
 0x564   :  { %v2300_v5 = vsub.f32 %v2292_v44, %v2298_v27  ;;  %v3234_v27 = vld [vmem:[#allocation14] sm:$0xff]  ;;  %v3236_v44 = vld [vmem:[#allocation14 + $0x8] sm:$0xff] }
 0x566   :  { %v2302_v58 = vadd.f32 0.0001, %v2300_v5 }
 0x568   :  { %3216 = vrcp.f32 %v2302_v58  ;;  %v2315_v3 = vand.u32 2147483648, %v2302_v58  ;;  %v2313_v54 = vand.u32 2147483647, %v2302_v58  ;;  %vm2309_vm1 = vweird.f32 %v2302_v58 }
 0x569   :  { %v2289_v1 = vpop.f32.mrf.mxu3 }
 0x56a   :  { %v2293_v6 = vmul.f32 0.11111111, %v2289_v1  ;;  %v2316_v35 = vor.u32 1.1754944e-38, %v2315_v3  ;;  %vm2314_vm3 = vcmp.eq.f32.partialorder %v2313_v54, 8.507059e+37 }
 0x56c   :  { %v2301_v42 = vsub.f32 %v2293_v6, %v2299_v0 }
 0x56e   :  { %v3217_v37 = vpop.eup %3216  ;;  %v2303_v10 = vadd.f32 0.0001, %v2301_v42 }
 0x56f   :  { %v2305_v13 = vmul.f32 %v3217_v37, %v2302_v58  ;;  %vm2310_vm15 = vweird.f32 %v3217_v37 }
 0x570   :  { %3218 = vrcp.f32 %v2303_v10  ;;  %vm2311_vm2 = vmor %vm2309_vm1, %vm2310_vm15  ;;  %v2330_v26 = vand.u32 2147483648, %v2303_v10  ;;  %v2328_v53 = vand.u32 2147483647, %v2303_v10  ;;  %vm2324_vm5 = vweird.f32 %v2303_v10 }
 0x571   :  { %v2306_v51 = vsub.f32 1.0, %v2305_v13 }
 0x572   :  { %v2331_v31 = vor.u32 1.1754944e-38, %v2330_v26  ;;  %vm2329_vm7 = vcmp.eq.f32.partialorder %v2328_v53, 8.507059e+37 }
 0x573   :  { %v2307_v16 = vmul.f32 %v3217_v37, %v2306_v51 }
 0x575   :  { %v2308_v18 = vadd.f32 %v3217_v37, %v2307_v16 }
 0x576   :  { %v3219_v7 = vpop.eup %3218 }
 0x577   :  { %v2312_v45 = vsel %vm2311_vm2, %v3217_v37, %v2308_v18  ;;  %v2320_v9 = vmul.f32 %v3219_v7, %v2303_v10  ;;  %vm2325_vm4 = vweird.f32 %v3219_v7 }
 0x578   :  { %v2317_v19 = vsel %vm2314_vm3, %v2316_v35, %v2312_v45  ;;  %vm2326_vm6 = vmor %vm2324_vm5, %vm2325_vm4 }
 0x579   :  { %v2321_v30 = vsub.f32 1.0, %v2320_v9  ;;  %v2318_v2 = vmul.f32 %v2317_v19, %v2296_v24 }
 0x57b   :  { %3147 = vmatmul.msk.f32.vlgmr.msrb.gmra.mxu0 %vm212_vm0, %v2318_v2  ;;  %3149 = vmatmul.msk.f32.vlgmr.msrb.gmra.mxu1 %vm212_vm0, %v2318_v2  ;;  %v2334_v60 = vmul.f32 %v2318_v2, %v2126_v25  ;;  %v2322_v21 = vmul.f32 %v3219_v7, %v2321_v30 }
 0x57c   :  { %3151 = vmatmul.msk.f32.vlgmr.msra.gmra.mxu2 %vm212_vm0, %v2318_v2 }
 0x57d   :  { %v2336_v17 = vsub.f32 %v2180_v38, %v2334_v60  ;;  %v2323_v23 = vadd.f32 %v3219_v7, %v2322_v21 }
 0x57f   :  { %3153 = vmatmul.msk.f32.vlgmr.msra.gmra.mxu3 %vm212_vm0, %v2336_v17  ;;  %v2327_v59 = vsel %vm2326_vm6, %v3219_v7, %v2323_v23 }
 0x580   :  { %v2332_v43 = vsel %vm2329_vm7, %v2331_v31, %v2327_v59 }
 0x581   :  { %v2333_v14 = vmul.f32 %v2332_v43, %v2297_v36 }
 0x583   :  { %3148 = vmatmul.msk.f32.gmra.mxu0 %vm212_vm0, %v2333_v14  ;;  %3150 = vmatmul.msk.f32.gmra.mxu1 %vm212_vm0, %v2333_v14  ;;  %v2335_v12 = vmul.f32 %v2333_v14, %v2127_v39 }
 0x584   :  { %3152 = vmatmul.msk.f32.gmra.mxu2 %vm212_vm0, %v2333_v14 }
 0x585   :  { %v2337_v32 = vsub.f32 %v2181_v20, %v2335_v12 }
 0x587   :  { %3154 = vmatmul.msk.f32.gmra.mxu3 %vm212_vm0, %v2337_v32 }
 0x58b   :  { %3155 = vmatmul.msk.f32.vlgmr.msra.gmra.mxu0 %vm212_vm0, %v2336_v17  ;;  %3157 = vmatmul.msk.f32.vlgmr.msra.gmra.mxu1 %vm212_vm0, %v2336_v17 }
 0x593   :  { %3156 = vmatmul.msk.f32.gmra.mxu0 %vm212_vm0, %v2337_v32  ;;  %3158 = vmatmul.msk.f32.gmra.mxu1 %vm212_vm0, %v2337_v32 }
 0x5f8   :  { %v2361_v47 = vpop.f32.mrf.mxu0  ;;  %v2384_v52 = vpop.f32.mrf.mxu1 }
 0x5ff   :  { %v2407_v55 = vpop.f32.mrf.mxu2 }
 0x600   :  { %v2364_v50 = vpop.f32.mrf.mxu0  ;;  %v2387_v48 = vpop.f32.mrf.mxu1 }
 0x601   :  { %2502 = vmatpush.msrb.mxu2 %v2364_v50  ;;  %2558 = vmatpush.msrb.mxu0 %v2387_v48 }
 0x602   :  { %v2436_v56 = vpop.f32.mrf.mxu3 }
 0x603   :  { %2503 = vmatpush.msrb.mxu2 %v2361_v47  ;;  %2559 = vmatpush.msrb.mxu0 %v2384_v52 }
 0x604   :  { %3159 = vmatmul.msk.f32.vlgmr.msrb.gmra.mxu2 %vm212_vm0, %v3232_v57  ;;  %3163 = vmatmul.msk.f32.vlgmr.msrb.gmra.mxu0 %vm212_vm0, %v3232_v57 }
 0x607   :  { %v2410_v63 = vpop.f32.mrf.mxu2 }
 0x608   :  { %2620 = vmatpush.msra.mxu2 %v2410_v63  ;;  %2682 = vmatpush.msra.mxu0 %v2410_v63  ;;  %v2459_v33 = vpop.f32.mrf.mxu0  ;;  %v2482_v61 = vpop.f32.mrf.mxu1 }
 0x60a   :  { %2621 = vmatpush.msra.mxu2 %v2407_v55  ;;  %2683 = vmatpush.msra.mxu0 %v2407_v55  ;;  %v2439_v28 = vpop.f32.mrf.mxu3 }
 0x60b   :  { %2527 = vmatpush.msrb.mxu3 %v2439_v28 }
 0x60c   :  { %2744 = vmatpush.msrb.mxu2 %v2364_v50  ;;  %2806 = vmatpush.msrb.mxu0 %v2387_v48 }
 0x60d   :  { %3160 = vmatmul.msk.f32.gmra.mxu2 %vm212_vm0, %v3233_v49  ;;  %3164 = vmatmul.msk.f32.gmra.mxu0 %vm212_vm0, %v3233_v49 }
 0x60e   :  { %2745 = vmatpush.msrb.mxu2 %v2361_v47  ;;  %2807 = vmatpush.msrb.mxu0 %v2384_v52 }
 0x60f   :  { %2528 = vmatpush.msrb.mxu3 %v2436_v56 }
 0x610   :  { %3161 = vmatmul.msk.f32.vlgmr.msrb.gmra.mxu3 %vm212_vm0, %v3232_v57  ;;  %v2462_v62 = vpop.f32.mrf.mxu0  ;;  %v2485_v25 = vpop.f32.mrf.mxu1 }
 0x611   :  { %2583 = vmatpush.msrb.mxu1 %v2462_v62  ;;  %2645 = vmatpush.msra.mxu3 %v2485_v25 }
 0x613   :  { %2584 = vmatpush.msrb.mxu1 %v2459_v33  ;;  %2646 = vmatpush.msra.mxu3 %v2482_v61 }
 0x614   :  { %3165 = vmatmul.msk.f32.vlgmr.msrb.gmra.mxu1 %vm212_vm0, %v3232_v57 }
 0x615   :  { %3167 = vmatmul.msk.f32.vlgmr.msra.gmra.mxu2 %vm212_vm0, %v3234_v27  ;;  %3171 = vmatmul.msk.f32.vlgmr.msra.gmra.mxu0 %vm212_vm0, %v3235_v8 }
 0x616   :  { %2707 = vmatpush.msra.mxu1 %v2485_v25  ;;  %2769 = vmatpush.msrb.mxu3 %v2439_v28 }
 0x617   :  { %2868 = vmatpush.msra.mxu2 %v2364_v50  ;;  %2930 = vmatpush.msra.mxu0 %v2387_v48 }
 0x618   :  { %3162 = vmatmul.msk.f32.gmra.mxu3 %vm212_vm0, %v3233_v49  ;;  %2708 = vmatpush.msra.mxu1 %v2482_v61 }
 0x619   :  { %2770 = vmatpush.msrb.mxu3 %v2436_v56  ;;  %2869 = vmatpush.msra.mxu2 %v2361_v47 }
 0x61a   :  { %2931 = vmatpush.msra.mxu0 %v2384_v52  ;;  %2831 = vmatpush.msrb.mxu1 %v2462_v62 }
 0x61c   :  { %2832 = vmatpush.msrb.mxu1 %v2459_v33 }
 0x61d   :  { %3168 = vmatmul.msk.f32.gmra.mxu2 %vm212_vm0, %v3236_v44  ;;  %3166 = vmatmul.msk.f32.gmra.mxu1 %vm212_vm0, %v3233_v49 }
 0x61e   :  { %3172 = vmatmul.msk.f32.gmra.mxu0 %vm212_vm0, %v3237_v4 }
 0x620   :  { %3169 = vmatmul.msk.f32.vlgmr.msra.gmra.mxu3 %vm212_vm0, %v3234_v27 }
 0x621   :  { %2893 = vmatpush.msra.mxu3 %v2439_v28 }
 0x623   :  { %2894 = vmatpush.msra.mxu3 %v2436_v56 }
 0x625   :  { %3175 = vmatmul.msk.f32.vlgmr.msrb.gmra.mxu2 %vm212_vm0, %v3234_v27  ;;  %3173 = vmatmul.msk.f32.vlgmr.msra.gmra.mxu1 %vm212_vm0, %v3235_v8 }
 0x626   :  { %3179 = vmatmul.msk.f32.vlgmr.msrb.gmra.mxu0 %vm212_vm0, %v3234_v27  ;;  %2955 = vmatpush.msra.mxu1 %v2462_v62 }
 0x628   :  { %3170 = vmatmul.msk.f32.gmra.mxu3 %vm212_vm0, %v3236_v44  ;;  %2956 = vmatpush.msra.mxu1 %v2459_v33 }
 0x62d   :  { %3176 = vmatmul.msk.f32.gmra.mxu2 %vm212_vm0, %v3236_v44  ;;  %3174 = vmatmul.msk.f32.gmra.mxu1 %vm212_vm0, %v3237_v4 }
 0x62e   :  { %3180 = vmatmul.msk.f32.gmra.mxu0 %vm212_vm0, %v3236_v44 }
 0x630   :  { %3177 = vmatmul.msk.f32.vlgmr.msrb.gmra.mxu3 %vm212_vm0, %v3234_v27 }
 0x635   :  { %3183 = vmatmul.msk.f32.vlgmr.msra.gmra.mxu2 %vm212_vm0, %v3235_v8  ;;  %3181 = vmatmul.msk.f32.vlgmr.msrb.gmra.mxu1 %vm212_vm0, %v3234_v27 }
 0x636   :  { %3187 = vmatmul.msk.f32.vlgmr.msra.gmra.mxu0 %vm212_vm0, %v3235_v8 }
 0x638   :  { %3178 = vmatmul.msk.f32.gmra.mxu3 %vm212_vm0, %v3236_v44 }
 0x63d   :  { %3184 = vmatmul.msk.f32.gmra.mxu2 %vm212_vm0, %v3237_v4  ;;  %3182 = vmatmul.msk.f32.gmra.mxu1 %vm212_vm0, %v3236_v44 }
 0x63e   :  { %3188 = vmatmul.msk.f32.gmra.mxu0 %vm212_vm0, %v3237_v4 }
 0x640   :  { %3185 = vmatmul.msk.f32.vlgmr.msra.gmra.mxu3 %vm212_vm0, %v3235_v8 }
 0x645   :  { %3189 = vmatmul.msk.f32.vlgmr.msra.gmra.mxu1 %vm212_vm0, %v3235_v8 }
 0x648   :  { %3186 = vmatmul.msk.f32.gmra.mxu3 %vm212_vm0, %v3237_v4 }
 0x64d   :  { %3190 = vmatmul.msk.f32.gmra.mxu1 %vm212_vm0, %v3237_v4 }
 0x681   :  { %v2561_v5 = vpop.f32.mrf.mxu0 }
 0x682   :  { %v2567_v51 = vmul.f32 %v2561_v5, %v4079_v40 }
 0x687   :  { %v2505_v39 = vpop.f32.mrf.mxu2 }
 0x688   :  { %v2511_v38 = vmul.f32 %v2505_v39, %v4079_v40 }
 0x68a   :  { %v2564_v58 = vpop.f32.mrf.mxu0 }
 0x68b   :  { %v2568_v9 = vmul.f32 %v2564_v58, %v4098_v41 }
 0x690   :  { %v2508_v0 = vpop.f32.mrf.mxu2 }
 0x691   :  { %v2586_v1 = vpop.f32.mrf.mxu1  ;;  %v2512_v45 = vmul.f32 %v2508_v0, %v4098_v41 }
 0x692   :  { %v2685_v42 = vpop.f32.mrf.mxu0  ;;  %v2592_v16 = vadd.f32 %v2586_v1, %v2567_v51 }
 0x693   :  { %v2530_v6 = vpop.f32.mrf.mxu3  ;;  %v2691_v19 = vmul.f32 %v2685_v42, %v4079_v40 }
 0x694   :  { %v2536_v15 = vadd.f32 %v2530_v6, %v2511_v38  ;;  %v2594_v35 = vmul.f32 0.16666667, %v2592_v16 }
 0x696   :  { %v2538_v7 = vmul.f32 0.16666667, %v2536_v15  ;;  %v4339_v2 = vsub.f32 %v2594_v35, %v4079_v40 }
 0x698   :  { %v2623_v46 = vpop.f32.mrf.mxu2  ;;  %v4336_v30 = vsub.f32 %v2538_v7, %v4079_v40  ;;  %v2598_v31 = vand.u32 2147483647, %v4339_v2 }
 0x699   :  { %v2629_v54 = vmul.f32 %v2623_v46, %v4079_v40 }
 0x69a   :  { %v2589_v10 = vpop.f32.mrf.mxu1  ;;  %v2542_v23 = vand.u32 2147483647, %v4336_v30 }
 0x69b   :  { %v2533_v37 = vpop.f32.mrf.mxu3  ;;  %v2688_v13 = vpop.f32.mrf.mxu0  ;;  %v2593_v60 = vadd.f32 %v2589_v10, %v2568_v9 }
 0x69c   :  { %v2537_v26 = vadd.f32 %v2533_v37, %v2512_v45  ;;  %vm4346_vm8 = vcmp.lt.f32.partialorder %v2598_v31, %v2542_v23  ;;  %v2692_v48 = vmul.f32 %v2688_v13, %v4098_v41 }
 0x69d   :  { %v2595_v43 = vmul.f32 0.16666667, %v2593_v60  ;;  %v2604_v25 = vsel %vm4346_vm8, %v2598_v31, %v2542_v23 }
 0x69e   :  { %v2539_v59 = vmul.f32 0.16666667, %v2537_v26  ;;  %v2602_v26 = vsel %vm4346_vm8, %v4339_v2, %v4336_v30 }
 0x69f   :  { %v4355_v57 = vsub.f32 %v2595_v43, %v4098_v41 }
 0x6a0   :  { %v2626_v3 = vpop.f32.mrf.mxu2  ;;  %v4352_v56 = vsub.f32 %v2539_v59, %v4098_v41 }
 0x6a1   :  { %v2630_v17 = vmul.f32 %v2626_v3, %v4098_v41  ;;  %v2599_v5 = vand.u32 2147483647, %v4355_v57 }
 0x6a2   :  { %v2710_v18 = vpop.f32.mrf.mxu1  ;;  %v2543_v4 = vand.u32 2147483647, %v4352_v56 }
 0x6a3   :  { %v2648_v29 = vpop.f32.mrf.mxu3  ;;  %v2809_v11 = vpop.f32.mrf.mxu0  ;;  %v2716_v34 = vadd.f32 %v2710_v18, %v2691_v19 }
 0x6a4   :  { %v2654_v24 = vadd.f32 %v2648_v29, %v2629_v54  ;;  %v2815_v33 = vmul.f32 %v2809_v11, %v4079_v40  ;;  %vm4372_vm10 = vcmp.lt.f32.partialorder %v2599_v5, %v2543_v4 }
 0x6a5   :  { %v2718_v14 = vmul.f32 0.16666667, %v2716_v34  ;;  %v2603_v27 = vsel %vm4372_vm10, %v4355_v57, %v4352_v56 }
 0x6a6   :  { %v2656_v22 = vmul.f32 0.16666667, %v2654_v24  ;;  %v2605_v24 = vsel %vm4372_vm10, %v2599_v5, %v2543_v4 }
 0x6a7   :  { %v2720_v28 = vsub.f32 %v2718_v14, %v4079_v40 }
 0x6a8   :  { %v2747_v20 = vpop.f32.mrf.mxu2  ;;  %v2658_v36 = vsub.f32 %v2656_v22, %v4079_v40 }
 0x6a9   :  { %v2753_v32 = vmul.f32 %v2747_v20, %v4079_v40  ;;  %v2722_v58 = vand.u32 2147483647, %v2720_v28 }
 0x6aa   :  { %v2713_v53 = vpop.f32.mrf.mxu1  ;;  %v2660_v50 = vand.u32 2147483647, %v2658_v36 }
 0x6ab   :  { %v2651_v21 = vpop.f32.mrf.mxu3  ;;  %v2812_v52 = vpop.f32.mrf.mxu0  ;;  %v2717_v8 = vadd.f32 %v2713_v53, %v2692_v48 }
 0x6ac   :  { %v2655_v12 = vadd.f32 %v2651_v21, %v2630_v17  ;;  %vm4361_vm9 = vcmp.lt.f32.partialorder %v2660_v50, %v2604_v25  ;;  %v2816_v29 = vmul.f32 %v2812_v52, %v4098_v41 }
 0x6ad   :  { %v2666_v6 = vsel %vm4361_vm9, %v2660_v50, %v2604_v25  ;;  %v2719_v46 = vmul.f32 0.16666667, %v2717_v8  ;;  %v2664_v21 = vsel %vm4361_vm9, %v2658_v36, %v2602_v26 }
 0x6ae   :  { %v2657_v49 = vmul.f32 0.16666667, %v2655_v12  ;;  %vm4376_vm11 = vcmp.lt.f32.partialorder %v2722_v58, %v2666_v6 }
 0x6af   :  { %v4382_v7 = vsub.f32 %v2719_v46, %v4098_v41  ;;  %v2728_v11 = vsel %vm4376_vm11, %v2722_v58, %v2666_v6  ;;  %v2726_v36 = vsel %vm4376_vm11, %v2720_v28, %v2664_v21 }
 0x6b0   :  { %v2750_v47 = vpop.f32.mrf.mxu2  ;;  %v2659_v0 = vsub.f32 %v2657_v49, %v4098_v41 }
 0x6b1   :  { %v2754_v1 = vmul.f32 %v2750_v47, %v4098_v41  ;;  %v2723_v53 = vand.u32 2147483647, %v4382_v7 }
 0x6b2   :  { %v2834_v61 = vpop.f32.mrf.mxu1  ;;  %v2661_v16 = vand.u32 2147483647, %v2659_v0 }
 0x6b3   :  { %v2772_v63 = vpop.f32.mrf.mxu3  ;;  %v2840_v39 = vadd.f32 %v2834_v61, %v2815_v33  ;;  %v2933_v10 = vpop.f32.mrf.mxu0 }
 0x6b4   :  { %v2778_v62 = vadd.f32 %v2772_v63, %v2753_v32  ;;  %vm4389_vm12 = vcmp.lt.f32.partialorder %v2661_v16, %v2605_v24  ;;  %v2939_v22 = vmul.f32 %v2933_v10, %v4079_v40 }
 0x6b5   :  { %v2842_v38 = vmul.f32 0.25, %v2840_v39  ;;  %v2667_v17 = vsel %vm4389_vm12, %v2661_v16, %v2605_v24  ;;  %v2665_v5 = vsel %vm4389_vm12, %v2659_v0, %v2603_v27 }
 0x6b6   :  { %v2780_v44 = vmul.f32 0.25, %v2778_v62  ;;  %vm4413_vm14 = vcmp.lt.f32.partialorder %v2723_v53, %v2667_v17 }
 0x6b7   :  { %v2844_v45 = vsub.f32 %v2842_v38, %v4079_v40  ;;  %v2729_v25 = vsel %vm4413_vm14, %v2723_v53, %v2667_v17  ;;  %v2727_v38 = vsel %vm4413_vm14, %v4382_v7, %v2665_v5 }
 0x6b8   :  { %v2782_v42 = vsub.f32 %v2780_v44, %v4079_v40  ;;  %v2871_v37 = vpop.f32.mrf.mxu2 }
 0x6b9   :  { %v2877_v20 = vmul.f32 %v2871_v37, %v4079_v40  ;;  %v2846_v23 = vand.u32 2147483647, %v2844_v45 }
 0x6ba   :  { %v2837_v3 = vpop.f32.mrf.mxu1  ;;  %v2784_v18 = vand.u32 2147483647, %v2782_v42 }
 0x6bb   :  { %v2775_v51 = vpop.f32.mrf.mxu3  ;;  %v2841_v19 = vadd.f32 %v2837_v3, %v2816_v29  ;;  %v2936_v12 = vpop.f32.mrf.mxu0 }
 0x6bc   :  { %v2779_v54 = vadd.f32 %v2775_v51, %v2754_v1  ;;  %vm4399_vm13 = vcmp.lt.f32.partialorder %v2784_v18, %v2728_v11  ;;  %v2940_v33 = vmul.f32 %v2936_v12, %v4098_v41 }
 0x6bd   :  { %v2790_v30 = vsel %vm4399_vm13, %v2784_v18, %v2728_v11  ;;  %v2843_v2 = vmul.f32 0.25, %v2841_v19  ;;  %v2788_v48 = vsel %vm4399_vm13, %v2782_v42, %v2726_v36 }
 0x6be   :  { %v2781_v35 = vmul.f32 0.25, %v2779_v54  ;;  %vm4419_vm15 = vcmp.lt.f32.partialorder %v2846_v23, %v2790_v30 }
 0x6bf   :  { %v2845_v61 = vsub.f32 %v2843_v2, %v4098_v41  ;;  %v2850_v39 = vsel %vm4419_vm15, %v2844_v45, %v2788_v48  ;;  %v2852_v58 = vsel %vm4419_vm15, %v2846_v23, %v2790_v30 }
 0x6c0   :  { %v2783_v34 = vsub.f32 %v2781_v35, %v4098_v41  ;;  %v2874_v32 = vpop.f32.mrf.mxu2 }
 0x6c1   :  { %v2878_v62 = vmul.f32 %v2874_v32, %v4098_v41  ;;  %v2847_v42 = vand.u32 2147483647, %v2845_v61 }
 0x6c2   :  { %v2958_v59 = vpop.f32.mrf.mxu1  ;;  %v2785_v52 = vand.u32 2147483647, %v2783_v34 }
 0x6c3   :  { %v2896_v31 = vpop.f32.mrf.mxu3  ;;  %v2964_v14 = vadd.f32 %v2958_v59, %v2939_v22 }
 0x6c4   :  { %v2902_v43 = vadd.f32 %v2896_v31, %v2877_v20  ;;  %vm4434_vm1 = vcmp.lt.f32.partialorder %v2785_v52, %v2729_v25 }
 0x6c5   :  { %v2966_v50 = vmul.f32 0.25, %v2964_v14  ;;  %v2791_v46 = vsel %vm4434_vm1, %v2785_v52, %v2729_v25  ;;  %v2789_v54 = vsel %vm4434_vm1, %v2783_v34, %v2727_v38 }
 0x6c6   :  { %v2904_v55 = vmul.f32 0.25, %v2902_v43  ;;  %vm2849_vm4 = vcmp.lt.f32.partialorder %v2847_v42, %v2791_v46 }
 0x6c7   :  { %v2968_v49 = vsub.f32 %v2966_v50, %v4079_v40  ;;  %v2853_v24 = vsel %vm2849_vm4, %v2847_v42, %v2791_v46  ;;  %v2851_v11 = vsel %vm2849_vm4, %v2845_v61, %v2789_v54 }
 0x6c8   :  { %v2906_v28 = vsub.f32 %v2904_v55, %v4079_v40 }
 0x6c9   :  { %v2970_v4 = vand.u32 2147483647, %v2968_v49 }
 0x6ca   :  { %v2908_v44 = vand.u32 2147483647, %v2906_v28  ;;  %v2961_v6 = vpop.f32.mrf.mxu1 }
 0x6cb   :  { %v2899_v1 = vpop.f32.mrf.mxu3  ;;  %v2965_v57 = vadd.f32 %v2961_v6, %v2940_v33 }
 0x6cc   :  { %vm2910_vm2 = vcmp.lt.f32.partialorder %v2908_v44, %v2852_v58  ;;  %v2903_v56 = vadd.f32 %v2899_v1, %v2878_v62 }
 0x6cd   :  { %v2912_v37 = vsel %vm2910_vm2, %v2906_v28, %v2850_v39  ;;  %v2914_v10 = vsel %vm2910_vm2, %v2908_v44, %v2852_v58  ;;  %v2967_v0 = vmul.f32 0.25, %v2965_v57 }
 0x6ce   :  { %vm2972_vm3 = vcmp.lt.f32.partialorder %v2970_v4, %v2914_v10  ;;  %v2905_v13 = vmul.f32 0.25, %v2903_v56 }
 0x6cf   :  { %v2974_v51 = vsel %vm2972_vm3, %v2968_v49, %v2912_v37  ;;  %v2969_v16 = vsub.f32 %v2967_v0, %v4098_v41 }
 0x6d0   :  { %v2976_v3 = vadd.f32 %v2974_v51, %v4079_v40  ;;  %v2907_v15 = vsub.f32 %v2905_v13, %v4098_v41  ;;  %v3238_v40 = vld [vmem:[#allocation2 + $0x28] sm:$0xff] }
 0x6d1   :  { %v2971_v35 = vand.u32 2147483647, %v2969_v16 }
 0x6d2   :  { %v2978_v29 = vmax.f32 %v2976_v3, 0.0  ;;  %v2909_v18 = vand.u32 2147483647, %v2907_v15 }
 0x6d4   :  { %v2980_v45 = vmin.f32 %v2978_v29, 255.0  ;;  %vm2911_vm5 = vcmp.lt.f32.partialorder %v2909_v18, %v2853_v24 }
 0x6d5   :  { %v2913_v9 = vsel %vm2911_vm5, %v2907_v15, %v2851_v11  ;;  %v2915_v7 = vsel %vm2911_vm5, %v2909_v18, %v2853_v24 }
 0x6d6   :  { %v2982_v19 = vfloor.f32 %v2980_v45  ;;  %vm2973_vm6 = vcmp.lt.f32.partialorder %v2971_v35, %v2915_v7 }
 0x6d7   :  { %v2975_v20 = vsel %vm2973_vm6, %v2969_v16, %v2913_v9 }
 0x6d8   :  { %2985 = vst.msk [vmem:[#allocation19 + $0x20] sm:$0xff] %vm212_vm0, %v2982_v19  ;;  %v2977_v22 = vadd.f32 %v3238_v40, %v2975_v20 }
 0x6da   :  { %v2979_v41 = vmax.f32 %v2977_v22, 0.0 }
 0x6dc   :  { %v2981_v26 = vmin.f32 %v2979_v41, 255.0 }
 0x6de   :  { %v2983_v60 = vfloor.f32 %v2981_v26 }
 0x6e0   :  { %2986 = vst.msk [vmem:[#allocation19 + $0x28] sm:$0xff] %vm212_vm0, %v2983_v60 }
 0x6e1   :  { %2999 = dma.vmem_to_hbm [thread:$0]  %s2992_s7, 768, %s2994_s17, [#allocation4], %s3518_s21, %s3518_s21, %s3519_s22  }
 0x6e2   :  { %3515 = dma.done.wait [#allocation4], 768  }
 0x6e3   :  { %3516 = vsyncadd [#allocation4], 4294966528 }
 0x6e4   :  { %3004 = vsyncpa [#allocation3], 1 }
 0x6e5   :  { %3005 = vsyncpa [#allocation6], 1 }
 0x6e6   :  { %3006 = vsyncpa [#allocation9], 1 }
 0x6e7   :  { %3007 = vsyncpa [#allocation12], 1 }
 0x6e8   :  { %3008 = vsyncpa [#allocation15], 1 }
 0x6e9   :  { %3009 = vsyncpa [#allocation18], 1 }
 0x6ea   :  { %3010 = vsyncpa [#allocation4], 1 }

</bundles_post_ra>
